<compile_context>
chip_gen: v6e
topology: v6e:2x2x1
jax: 0.10.0
libtpu: 0.0.40
codegen_flags: <defaults>
</compile_context>

<pallas_src>
import functools

import jax
import jax.numpy as jnp
from jax.experimental import pallas as pl
from jax.experimental.pallas import tpu as pltpu

LANE = 128


def _round_up(x, m):
    return (x + m - 1) // m * m


# ----------------------------- Pallas kernels ------------------------------ #

def conv3x3_relu_kernel(x_ref, w_ref, o_ref, xpad_ref, acc_ref):
    """3x3 same-padding conv (bias=False) + ReLU for one batch element.

    x_ref:    (1, H, W, Cin)   bf16 input tile
    w_ref:    (9, Cin, Cout)   bf16 filter taps (kh*3 + kw major)
    o_ref:    (1, H, W, Cout)  bf16 output tile
    xpad_ref: (H+2, W+2, Cin)  f32 VMEM scratch (halo built on-chip)
    acc_ref:  (H*W, Cout)      f32 VMEM scratch accumulator
    """
    _, H, W, Cout = o_ref.shape
    Cin = x_ref.shape[-1]

    # Build the zero halo in VMEM (avoids an extra HBM write+read of the
    # activation that a wrapper-side jnp.pad would cost).
    xpad_ref[...] = jnp.zeros_like(xpad_ref)
    xpad_ref[1:H + 1, 1:W + 1, :] = x_ref[0].astype(xpad_ref.dtype)

    acc_ref[...] = jnp.zeros_like(acc_ref)
    for kh in range(3):
        for kw in range(3):
            patch = xpad_ref[kh:kh + H, kw:kw + W, :].reshape(H * W, Cin)
            # bf16 at the MXU, f32 accumulation.
            acc_ref[...] += jnp.dot(patch.astype(w_ref.dtype),
                                    w_ref[kh * 3 + kw],
                                    preferred_element_type=jnp.float32)

    o_ref[...] = (jnp.maximum(acc_ref[...], 0.0)     # ReLU epilogue in f32
                  .reshape(1, H, W, Cout).astype(o_ref.dtype))


def fused_concat_ese_kernel(*args, n_branch, has_identity):
    """Fused [channel-concat -> 1x1 conv -> ReLU -> eSE (+ optional identity)].

    args = (branch_0 .. branch_{n-1}, [identity], concat_w, fc_w, fc_b,
            o_ref, acc_ref)
      branches: (1, H, W, C_i) bf16      concat_w: (sum_i C_i, Cout) bf16
      fc_w: (Cout, Cout) f32             fc_b: (1, Cout) f32
      identity (optional): (1, H, W, Cout) f32
      o_ref: (1, H, W, Cout)             acc_ref: (H*W, Cout) f32 scratch
    """
    branch_refs = args[:n_branch]
    id_ref = args[n_branch] if has_identity else None
    wc_ref, fcw_ref, fcb_ref = args[-5], args[-4], args[-3]
    o_ref, acc_ref = args[-2], args[-1]

    _, H, W, Cout = o_ref.shape

    # concat + 1x1 conv as a sum of per-branch matmuls: the concatenated
    # (H*W, sum C_i) tensor is never materialized in HBM.
    acc_ref[...] = jnp.zeros_like(acc_ref)
    off = 0
    for br in branch_refs:
        Ci = br.shape[-1]
        xb = br[0].reshape(H * W, Ci)                       # bf16
        acc_ref[...] += jnp.dot(xb, wc_ref[off:off + Ci, :],
                                preferred_element_type=jnp.float32)
        off += Ci

    xt = jnp.maximum(acc_ref[...], 0.0)                     # (H*W, Cout), f32

    # eSE: AdaptiveAvgPool2d(1) -> 1x1 fc (with bias) -> hard-sigmoid -> scale.
    pooled = jnp.sum(xt, axis=0, keepdims=True) * (1.0 / (H * W))   # (1, Cout)
    y = jnp.dot(pooled, fcw_ref[...],
                preferred_element_type=jnp.float32) + fcb_ref[...]
    gate = jnp.clip(y + 3.0, 0.0, 6.0) * (1.0 / 6.0)        # relu6(y+3)/6
    out = xt * gate                                          # broadcast over H*W

    if has_identity:
        out = out + id_ref[0].reshape(H * W, Cout).astype(jnp.float32)

    o_ref[...] = out.reshape(1, H, W, Cout).astype(o_ref.dtype)


# ------------------------------ JAX wrappers -------------------------------- #

def conv3x3_relu(x, w):
    """x: (N,H,W,Cin) bf16, w: (3,3,Cin,Cout) bf16 -> (N,H,W,Cout) bf16."""
    N, H, W, Cin = x.shape
    Cout = w.shape[-1]
    wf = w.reshape(9, Cin, Cout)
    return pl.pallas_call(
        conv3x3_relu_kernel,
        out_shape=jax.ShapeDtypeStruct((N, H, W, Cout), x.dtype),
        grid=(N,),
        in_specs=[
            pl.BlockSpec((1, H, W, Cin), lambda n: (n, 0, 0, 0)),
            pl.BlockSpec((9, Cin, Cout), lambda n: (0, 0, 0)),
        ],
        out_specs=pl.BlockSpec((1, H, W, Cout), lambda n: (n, 0, 0, 0)),
        scratch_shapes=[
            pltpu.VMEM((H + 2, W + 2, Cin), jnp.float32),
            pltpu.VMEM((H * W, Cout), jnp.float32),
        ],
        compiler_params=pltpu.CompilerParams(
            dimension_semantics=("parallel",)),
    )(x, wf)


def fused_concat_ese(branches, concat_w, fc_w, fc_b, identity_feat=None,
                     out_dtype=jnp.float32):
    """branches: list of (N,H,W,C_i) bf16; concat_w: (sum C_i, Cout) bf16."""
    N, H, W, _ = branches[0].shape
    K, Cout = concat_w.shape
    n_branch = len(branches)
    has_identity = identity_feat is not None

    inputs = list(branches)
    in_specs = [pl.BlockSpec((1, H, W, b.shape[-1]), lambda n: (n, 0, 0, 0))
                for b in branches]
    if has_identity:
        inputs.append(identity_feat)
        in_specs.append(pl.BlockSpec((1, H, W, identity_feat.shape[-1]),
                                     lambda n: (n, 0, 0, 0)))
    inputs += [concat_w, fc_w, fc_b.reshape(1, Cout)]
    in_specs += [
        pl.BlockSpec((K, Cout), lambda n: (0, 0)),
        pl.BlockSpec((Cout, Cout), lambda n: (0, 0)),
        pl.BlockSpec((1, Cout), lambda n: (0, 0)),
    ]

    kernel = functools.partial(fused_concat_ese_kernel,
                               n_branch=n_branch, has_identity=has_identity)
    return pl.pallas_call(
        kernel,
        out_shape=jax.ShapeDtypeStruct((N, H, W, Cout), out_dtype),
        grid=(N,),
        in_specs=in_specs,
        out_specs=pl.BlockSpec((1, H, W, Cout), lambda n: (n, 0, 0, 0)),
        scratch_shapes=[pltpu.VMEM((H * W, Cout), jnp.float32)],
        compiler_params=pltpu.CompilerParams(
            dimension_semantics=("parallel",)),
    )(*inputs)


# ---------------------------- _OSA_module forward ---------------------------- #

def init_osa_params(key, in_ch, stage_ch, concat_ch, layer_per_block):
    keys = jax.random.split(key, layer_per_block + 3)
    layer_ws = []
    c = in_ch
    for i in range(layer_per_block):
        layer_ws.append(0.05 * jax.random.normal(keys[i], (3, 3, c, stage_ch),
                                                 jnp.float32))
        c = stage_ch
    cat_in = in_ch + layer_per_block * stage_ch
    concat_w = 0.05 * jax.random.normal(keys[layer_per_block],
                                        (cat_in, concat_ch), jnp.float32)
    fc_w = 0.05 * jax.random.normal(keys[layer_per_block + 1],
                                    (concat_ch, concat_ch), jnp.float32)
    fc_b = 0.05 * jax.random.normal(keys[layer_per_block + 2],
                                    (concat_ch,), jnp.float32)
    return dict(layer_weights=layer_ws, concat_w=concat_w, fc_w=fc_w, fc_b=fc_b)


def osa_module_forward(x, params, identity=False):
    """x: (N, H, W, in_ch) float32.  Returns (N, H, W, concat_ch) in x.dtype."""
    N, H, W, in_ch = x.shape
    layer_ws = params["layer_weights"]
    concat_w = params["concat_w"]
    fc_w, fc_b = params["fc_w"], params["fc_b"]
    L = len(layer_ws)
    stage_ch = layer_ws[0].shape[-1]
    concat_ch = concat_w.shape[-1]

    in_p = _round_up(in_ch, LANE)
    st_p = _round_up(stage_ch, LANE)
    cc_p = _round_up(concat_ch, LANE)
    if identity and in_p != cc_p:
        raise ValueError("identity=True requires in_ch == concat_ch")

    # Lane-dense channel padding (exact: padded channels stay zero everywhere).
    x_p = jnp.pad(x, ((0, 0), (0, 0), (0, 0), (0, in_p - in_ch)))
    x_bf = x_p.astype(jnp.bfloat16)

    ws_p = []
    for wt in layer_ws:
        cin = wt.shape[2]
        cin_p = _round_up(cin, LANE)
        ws_p.append(jnp.pad(wt, ((0, 0), (0, 0), (0, cin_p - cin),
                                 (0, st_p - stage_ch))).astype(jnp.bfloat16))

    # Re-pack the concat (1x1) weight so each branch's rows sit at its padded
    # channel offsets in the fused kernel's K axis.
    branch_c = [in_ch] + [stage_ch] * L
    branch_cp = [in_p] + [st_p] * L
    segs, off = [], 0
    for c, cp in zip(branch_c, branch_cp):
        seg = concat_w[off:off + c]
        segs.append(jnp.pad(seg, ((0, cp - c), (0, cc_p - concat_ch))))
        off += c
    concat_w_p = jnp.concatenate(segs, axis=0).astype(jnp.bfloat16)

    fc_w_p = jnp.pad(fc_w, ((0, cc_p - concat_ch), (0, cc_p - concat_ch)))
    fc_b_p = jnp.pad(fc_b, ((0, cc_p - concat_ch),))

    # 3x3 conv + ReLU chain (each output is one OSA branch).
    branches = [x_bf]
    h = x_bf
    for w in ws_p:
        h = conv3x3_relu(h, w)
        branches.append(h)

    # Fused concat-1x1-conv + ReLU + eSE (+ identity).  Identity kept in f32.
    ident = x_p if identity else None
    out_p = fused_concat_ese(branches, concat_w_p, fc_w_p, fc_b_p,
                             identity_feat=ident, out_dtype=x.dtype)
    return out_p[..., :concat_ch]


if __name__ == "__main__":
    # Small deterministic example; identity=True requires in_ch == concat_ch.
    N, H, W = 2, 16, 16
    in_ch, stage_ch, concat_ch, layer_per_block = 16, 8, 16, 3

    key = jax.random.PRNGKey(0)
    kx, kp = jax.random.split(key)
    x = jax.random.normal(kx, (N, H, W, in_ch), jnp.float32)
    params = init_osa_params(kp, in_ch, stage_ch, concat_ch, layer_per_block)

    fwd = jax.jit(functools.partial(osa_module_forward, identity=True))
    out = jax.block_until_ready(fwd(x, params))
    assert out.shape == (N, H, W, concat_ch)
    print("KERNEL_OK")
</pallas_src>

<mosaic_0001>
module attributes {stable_mosaic.version = 11 : i64} {
  func.func @conv3x3_relu_kernel(%arg0: i32, %arg1: memref<1x16x16x128xbf16, #tpu.memory_space<vmem>>, %arg2: memref<9x128x128xbf16, #tpu.memory_space<vmem>>, %arg3: memref<1x16x16x128xbf16, #tpu.memory_space<vmem>>, %arg4: memref<18x18x128xf32, #tpu.memory_space<vmem>>, %arg5: memref<256x128xf32, #tpu.memory_space<vmem>>) attributes {dimension_semantics = [#tpu.dimension_semantics<parallel>], iteration_bounds = array<i64: 2>, scalar_prefetch = 0 : i64, scratch_operands = 2 : i64, tpu.core_type = #tpu.core_type<tc>, window_params = [{transform_indices = @transform_0, window_bounds = array<i64: 1, 16, 16, 128>}, {pipeline_mode = #tpu.pipeline_mode<synchronous>, transform_indices = @transform_1, window_bounds = array<i64: 9, 128, 128>}, {transform_indices = @transform_2, window_bounds = array<i64: 1, 16, 16, 128>}]} {
    %cst = arith.constant 0.000000e+00 : f32
    %0 = vector.broadcast %cst : f32 to vector<18x18x128xf32>
    %c0 = arith.constant 0 : index
    %c0_0 = arith.constant 0 : index
    %c0_1 = arith.constant 0 : index
    %1 = vector.load %arg4[%c0, %c0_0, %c0_1] : memref<18x18x128xf32, #tpu.memory_space<vmem>>, vector<18x18x128xf32>
    tpu.vector_store %arg4[%c0, %c0_0, %c0_1], %0 {strides = array<i32>} : memref<18x18x128xf32, #tpu.memory_space<vmem>>, vector<18x18x128xf32>,
    %c0_2 = arith.constant 0 : index
    %c0_3 = arith.constant 0 : index
    %c0_4 = arith.constant 0 : index
    %c0_5 = arith.constant 0 : index
    %2 = vector.load %arg1[%c0_2, %c0_3, %c0_4, %c0_5] : memref<1x16x16x128xbf16, #tpu.memory_space<vmem>>, vector<1x16x16x128xbf16>
    %3 = vector.shape_cast %2 : vector<1x16x16x128xbf16> to vector<16x16x128xbf16>
    %4 = arith.extf %3 : vector<16x16x128xbf16> to vector<16x16x128xf32>
    %c1 = arith.constant 1 : index
    %c1_6 = arith.constant 1 : index
    %c0_7 = arith.constant 0 : index
    %5 = vector.load %arg4[%c1, %c1_6, %c0_7] : memref<18x18x128xf32, #tpu.memory_space<vmem>>, vector<16x16x128xf32>
    tpu.vector_store %arg4[%c1, %c1_6, %c0_7], %4 {strides = array<i32>} : memref<18x18x128xf32, #tpu.memory_space<vmem>>, vector<16x16x128xf32>,
    %cst_8 = arith.constant 0.000000e+00 : f32
    %6 = vector.broadcast %cst_8 : f32 to vector<256x128xf32>
    %c0_9 = arith.constant 0 : index
    %c0_10 = arith.constant 0 : index
    %7 = vector.load %arg5[%c0_9, %c0_10] : memref<256x128xf32, #tpu.memory_space<vmem>>, vector<256x128xf32>
    tpu.vector_store %arg5[%c0_9, %c0_10], %6 {strides = array<i32>} : memref<256x128xf32, #tpu.memory_space<vmem>>, vector<256x128xf32>,
    %c0_11 = arith.constant 0 : index
    %c0_12 = arith.constant 0 : index
    %c0_13 = arith.constant 0 : index
    %8 = vector.load %arg4[%c0_11, %c0_12, %c0_13] : memref<18x18x128xf32, #tpu.memory_space<vmem>>, vector<16x16x128xf32>
    %9 = vector.shape_cast %8 : vector<16x16x128xf32> to vector<256x128xf32>
    %c0_14 = arith.constant 0 : index
    %c0_15 = arith.constant 0 : index
    %10 = vector.load %arg5[%c0_14, %c0_15] : memref<256x128xf32, #tpu.memory_space<vmem>>, vector<256x128xf32>
    %11 = arith.truncf %9 : vector<256x128xf32> to vector<256x128xbf16>
    %c0_16 = arith.constant 0 : index
    %c0_17 = arith.constant 0 : index
    %c0_18 = arith.constant 0 : index
    %12 = vector.load %arg2[%c0_16, %c0_17, %c0_18] : memref<9x128x128xbf16, #tpu.memory_space<vmem>>, vector<1x128x128xbf16>
    %13 = vector.shape_cast %12 : vector<1x128x128xbf16> to vector<128x128xbf16>
    %cst_19 = arith.constant dense<0.000000e+00> : vector<256x128xf32>
    %14 = tpu.matmul %11, %13, %cst_19 {dimension_numbers = #tpu.dot_dimension_numbers<[1], [0], [0], [1], [0, 0, 1, 1], [], []>} : vector<256x128xbf16>, vector<128x128xbf16>, vector<256x128xf32> -> vector<256x128xf32>
    %15 = arith.addf %10, %14 : vector<256x128xf32>
    %c0_20 = arith.constant 0 : index
    %c0_21 = arith.constant 0 : index
    %16 = vector.load %arg5[%c0_20, %c0_21] : memref<256x128xf32, #tpu.memory_space<vmem>>, vector<256x128xf32>
    tpu.vector_store %arg5[%c0_20, %c0_21], %15 {strides = array<i32>} : memref<256x128xf32, #tpu.memory_space<vmem>>, vector<256x128xf32>,
    %c0_22 = arith.constant 0 : index
    %c1_23 = arith.constant 1 : index
    %c0_24 = arith.constant 0 : index
    %17 = vector.load %arg4[%c0_22, %c1_23, %c0_24] : memref<18x18x128xf32, #tpu.memory_space<vmem>>, vector<16x16x128xf32>
    %18 = vector.shape_cast %17 : vector<16x16x128xf32> to vector<256x128xf32>
    %c0_25 = arith.constant 0 : index
    %c0_26 = arith.constant 0 : index
    %19 = vector.load %arg5[%c0_25, %c0_26] : memref<256x128xf32, #tpu.memory_space<vmem>>, vector<256x128xf32>
    %20 = arith.truncf %18 : vector<256x128xf32> to vector<256x128xbf16>
    %c1_27 = arith.constant 1 : index
    %c0_28 = arith.constant 0 : index
    %c0_29 = arith.constant 0 : index
    %21 = vector.load %arg2[%c1_27, %c0_28, %c0_29] : memref<9x128x128xbf16, #tpu.memory_space<vmem>>, vector<1x128x128xbf16>
    %22 = vector.shape_cast %21 : vector<1x128x128xbf16> to vector<128x128xbf16>
    %cst_30 = arith.constant dense<0.000000e+00> : vector<256x128xf32>
    %23 = tpu.matmul %20, %22, %cst_30 {dimension_numbers = #tpu.dot_dimension_numbers<[1], [0], [0], [1], [0, 0, 1, 1], [], []>} : vector<256x128xbf16>, vector<128x128xbf16>, vector<256x128xf32> -> vector<256x128xf32>
    %24 = arith.addf %19, %23 : vector<256x128xf32>
    %c0_31 = arith.constant 0 : index
    %c0_32 = arith.constant 0 : index
    %25 = vector.load %arg5[%c0_31, %c0_32] : memref<256x128xf32, #tpu.memory_space<vmem>>, vector<256x128xf32>
    tpu.vector_store %arg5[%c0_31, %c0_32], %24 {strides = array<i32>} : memref<256x128xf32, #tpu.memory_space<vmem>>, vector<256x128xf32>,
    %c0_33 = arith.constant 0 : index
    %c2 = arith.constant 2 : index
    %c0_34 = arith.constant 0 : index
    %26 = vector.load %arg4[%c0_33, %c2, %c0_34] : memref<18x18x128xf32, #tpu.memory_space<vmem>>, vector<16x16x128xf32>
    %27 = vector.shape_cast %26 : vector<16x16x128xf32> to vector<256x128xf32>
    %c0_35 = arith.constant 0 : index
    %c0_36 = arith.constant 0 : index
    %28 = vector.load %arg5[%c0_35, %c0_36] : memref<256x128xf32, #tpu.memory_space<vmem>>, vector<256x128xf32>
    %29 = arith.truncf %27 : vector<256x128xf32> to vector<256x128xbf16>
    %c2_37 = arith.constant 2 : index
    %c0_38 = arith.constant 0 : index
    %c0_39 = arith.constant 0 : index
    %30 = vector.load %arg2[%c2_37, %c0_38, %c0_39] : memref<9x128x128xbf16, #tpu.memory_space<vmem>>, vector<1x128x128xbf16>
    %31 = vector.shape_cast %30 : vector<1x128x128xbf16> to vector<128x128xbf16>
    %cst_40 = arith.constant dense<0.000000e+00> : vector<256x128xf32>
    %32 = tpu.matmul %29, %31, %cst_40 {dimension_numbers = #tpu.dot_dimension_numbers<[1], [0], [0], [1], [0, 0, 1, 1], [], []>} : vector<256x128xbf16>, vector<128x128xbf16>, vector<256x128xf32> -> vector<256x128xf32>
    %33 = arith.addf %28, %32 : vector<256x128xf32>
    %c0_41 = arith.constant 0 : index
    %c0_42 = arith.constant 0 : index
    %34 = vector.load %arg5[%c0_41, %c0_42] : memref<256x128xf32, #tpu.memory_space<vmem>>, vector<256x128xf32>
    tpu.vector_store %arg5[%c0_41, %c0_42], %33 {strides = array<i32>} : memref<256x128xf32, #tpu.memory_space<vmem>>, vector<256x128xf32>,
    %c1_43 = arith.constant 1 : index
    %c0_44 = arith.constant 0 : index
    %c0_45 = arith.constant 0 : index
    %35 = vector.load %arg4[%c1_43, %c0_44, %c0_45] : memref<18x18x128xf32, #tpu.memory_space<vmem>>, vector<16x16x128xf32>
    %36 = vector.shape_cast %35 : vector<16x16x128xf32> to vector<256x128xf32>
    %c0_46 = arith.constant 0 : index
    %c0_47 = arith.constant 0 : index
    %37 = vector.load %arg5[%c0_46, %c0_47] : memref<256x128xf32, #tpu.memory_space<vmem>>, vector<256x128xf32>
    %38 = arith.truncf %36 : vector<256x128xf32> to vector<256x128xbf16>
    %c3 = arith.constant 3 : index
    %c0_48 = arith.constant 0 : index
    %c0_49 = arith.constant 0 : index
    %39 = vector.load %arg2[%c3, %c0_48, %c0_49] : memref<9x128x128xbf16, #tpu.memory_space<vmem>>, vector<1x128x128xbf16>
    %40 = vector.shape_cast %39 : vector<1x128x128xbf16> to vector<128x128xbf16>
    %cst_50 = arith.constant dense<0.000000e+00> : vector<256x128xf32>
    %41 = tpu.matmul %38, %40, %cst_50 {dimension_numbers = #tpu.dot_dimension_numbers<[1], [0], [0], [1], [0, 0, 1, 1], [], []>} : vector<256x128xbf16>, vector<128x128xbf16>, vector<256x128xf32> -> vector<256x128xf32>
    %42 = arith.addf %37, %41 : vector<256x128xf32>
    %c0_51 = arith.constant 0 : index
    %c0_52 = arith.constant 0 : index
    %43 = vector.load %arg5[%c0_51, %c0_52] : memref<256x128xf32, #tpu.memory_space<vmem>>, vector<256x128xf32>
    tpu.vector_store %arg5[%c0_51, %c0_52], %42 {strides = array<i32>} : memref<256x128xf32, #tpu.memory_space<vmem>>, vector<256x128xf32>,
    %c1_53 = arith.constant 1 : index
    %c1_54 = arith.constant 1 : index
    %c0_55 = arith.constant 0 : index
    %44 = vector.load %arg4[%c1_53, %c1_54, %c0_55] : memref<18x18x128xf32, #tpu.memory_space<vmem>>, vector<16x16x128xf32>
    %45 = vector.shape_cast %44 : vector<16x16x128xf32> to vector<256x128xf32>
    %c0_56 = arith.constant 0 : index
    %c0_57 = arith.constant 0 : index
    %46 = vector.load %arg5[%c0_56, %c0_57] : memref<256x128xf32, #tpu.memory_space<vmem>>, vector<256x128xf32>
    %47 = arith.truncf %45 : vector<256x128xf32> to vector<256x128xbf16>
    %c4 = arith.constant 4 : index
    %c0_58 = arith.constant 0 : index
    %c0_59 = arith.constant 0 : index
    %48 = vector.load %arg2[%c4, %c0_58, %c0_59] : memref<9x128x128xbf16, #tpu.memory_space<vmem>>, vector<1x128x128xbf16>
    %49 = vector.shape_cast %48 : vector<1x128x128xbf16> to vector<128x128xbf16>
    %cst_60 = arith.constant dense<0.000000e+00> : vector<256x128xf32>
    %50 = tpu.matmul %47, %49, %cst_60 {dimension_numbers = #tpu.dot_dimension_numbers<[1], [0], [0], [1], [0, 0, 1, 1], [], []>} : vector<256x128xbf16>, vector<128x128xbf16>, vector<256x128xf32> -> vector<256x128xf32>
    %51 = arith.addf %46, %50 : vector<256x128xf32>
    %c0_61 = arith.constant 0 : index
    %c0_62 = arith.constant 0 : index
    %52 = vector.load %arg5[%c0_61, %c0_62] : memref<256x128xf32, #tpu.memory_space<vmem>>, vector<256x128xf32>
    tpu.vector_store %arg5[%c0_61, %c0_62], %51 {strides = array<i32>} : memref<256x128xf32, #tpu.memory_space<vmem>>, vector<256x128xf32>,
    %c1_63 = arith.constant 1 : index
    %c2_64 = arith.constant 2 : index
    %c0_65 = arith.constant 0 : index
    %53 = vector.load %arg4[%c1_63, %c2_64, %c0_65] : memref<18x18x128xf32, #tpu.memory_space<vmem>>, vector<16x16x128xf32>
    %54 = vector.shape_cast %53 : vector<16x16x128xf32> to vector<256x128xf32>
    %c0_66 = arith.constant 0 : index
    %c0_67 = arith.constant 0 : index
    %55 = vector.load %arg5[%c0_66, %c0_67] : memref<256x128xf32, #tpu.memory_space<vmem>>, vector<256x128xf32>
    %56 = arith.truncf %54 : vector<256x128xf32> to vector<256x128xbf16>
    %c5 = arith.constant 5 : index
    %c0_68 = arith.constant 0 : index
    %c0_69 = arith.constant 0 : index
    %57 = vector.load %arg2[%c5, %c0_68, %c0_69] : memref<9x128x128xbf16, #tpu.memory_space<vmem>>, vector<1x128x128xbf16>
    %58 = vector.shape_cast %57 : vector<1x128x128xbf16> to vector<128x128xbf16>
    %cst_70 = arith.constant dense<0.000000e+00> : vector<256x128xf32>
    %59 = tpu.matmul %56, %58, %cst_70 {dimension_numbers = #tpu.dot_dimension_numbers<[1], [0], [0], [1], [0, 0, 1, 1], [], []>} : vector<256x128xbf16>, vector<128x128xbf16>, vector<256x128xf32> -> vector<256x128xf32>
    %60 = arith.addf %55, %59 : vector<256x128xf32>
    %c0_71 = arith.constant 0 : index
    %c0_72 = arith.constant 0 : index
    %61 = vector.load %arg5[%c0_71, %c0_72] : memref<256x128xf32, #tpu.memory_space<vmem>>, vector<256x128xf32>
    tpu.vector_store %arg5[%c0_71, %c0_72], %60 {strides = array<i32>} : memref<256x128xf32, #tpu.memory_space<vmem>>, vector<256x128xf32>,
    %c2_73 = arith.constant 2 : index
    %c0_74 = arith.constant 0 : index
    %c0_75 = arith.constant 0 : index
    %62 = vector.load %arg4[%c2_73, %c0_74, %c0_75] : memref<18x18x128xf32, #tpu.memory_space<vmem>>, vector<16x16x128xf32>
    %63 = vector.shape_cast %62 : vector<16x16x128xf32> to vector<256x128xf32>
    %c0_76 = arith.constant 0 : index
    %c0_77 = arith.constant 0 : index
    %64 = vector.load %arg5[%c0_76, %c0_77] : memref<256x128xf32, #tpu.memory_space<vmem>>, vector<256x128xf32>
    %65 = arith.truncf %63 : vector<256x128xf32> to vector<256x128xbf16>
    %c6 = arith.constant 6 : index
    %c0_78 = arith.constant 0 : index
    %c0_79 = arith.constant 0 : index
    %66 = vector.load %arg2[%c6, %c0_78, %c0_79] : memref<9x128x128xbf16, #tpu.memory_space<vmem>>, vector<1x128x128xbf16>
    %67 = vector.shape_cast %66 : vector<1x128x128xbf16> to vector<128x128xbf16>
    %cst_80 = arith.constant dense<0.000000e+00> : vector<256x128xf32>
    %68 = tpu.matmul %65, %67, %cst_80 {dimension_numbers = #tpu.dot_dimension_numbers<[1], [0], [0], [1], [0, 0, 1, 1], [], []>} : vector<256x128xbf16>, vector<128x128xbf16>, vector<256x128xf32> -> vector<256x128xf32>
    %69 = arith.addf %64, %68 : vector<256x128xf32>
    %c0_81 = arith.constant 0 : index
    %c0_82 = arith.constant 0 : index
    %70 = vector.load %arg5[%c0_81, %c0_82] : memref<256x128xf32, #tpu.memory_space<vmem>>, vector<256x128xf32>
    tpu.vector_store %arg5[%c0_81, %c0_82], %69 {strides = array<i32>} : memref<256x128xf32, #tpu.memory_space<vmem>>, vector<256x128xf32>,
    %c2_83 = arith.constant 2 : index
    %c1_84 = arith.constant 1 : index
    %c0_85 = arith.constant 0 : index
    %71 = vector.load %arg4[%c2_83, %c1_84, %c0_85] : memref<18x18x128xf32, #tpu.memory_space<vmem>>, vector<16x16x128xf32>
    %72 = vector.shape_cast %71 : vector<16x16x128xf32> to vector<256x128xf32>
    %c0_86 = arith.constant 0 : index
    %c0_87 = arith.constant 0 : index
    %73 = vector.load %arg5[%c0_86, %c0_87] : memref<256x128xf32, #tpu.memory_space<vmem>>, vector<256x128xf32>
    %74 = arith.truncf %72 : vector<256x128xf32> to vector<256x128xbf16>
    %c7 = arith.constant 7 : index
    %c0_88 = arith.constant 0 : index
    %c0_89 = arith.constant 0 : index
    %75 = vector.load %arg2[%c7, %c0_88, %c0_89] : memref<9x128x128xbf16, #tpu.memory_space<vmem>>, vector<1x128x128xbf16>
    %76 = vector.shape_cast %75 : vector<1x128x128xbf16> to vector<128x128xbf16>
    %cst_90 = arith.constant dense<0.000000e+00> : vector<256x128xf32>
    %77 = tpu.matmul %74, %76, %cst_90 {dimension_numbers = #tpu.dot_dimension_numbers<[1], [0], [0], [1], [0, 0, 1, 1], [], []>} : vector<256x128xbf16>, vector<128x128xbf16>, vector<256x128xf32> -> vector<256x128xf32>
    %78 = arith.addf %73, %77 : vector<256x128xf32>
    %c0_91 = arith.constant 0 : index
    %c0_92 = arith.constant 0 : index
    %79 = vector.load %arg5[%c0_91, %c0_92] : memref<256x128xf32, #tpu.memory_space<vmem>>, vector<256x128xf32>
    tpu.vector_store %arg5[%c0_91, %c0_92], %78 {strides = array<i32>} : memref<256x128xf32, #tpu.memory_space<vmem>>, vector<256x128xf32>,
    %c2_93 = arith.constant 2 : index
    %c2_94 = arith.constant 2 : index
    %c0_95 = arith.constant 0 : index
    %80 = vector.load %arg4[%c2_93, %c2_94, %c0_95] : memref<18x18x128xf32, #tpu.memory_space<vmem>>, vector<16x16x128xf32>
    %81 = vector.shape_cast %80 : vector<16x16x128xf32> to vector<256x128xf32>
    %c0_96 = arith.constant 0 : index
    %c0_97 = arith.constant 0 : index
    %82 = vector.load %arg5[%c0_96, %c0_97] : memref<256x128xf32, #tpu.memory_space<vmem>>, vector<256x128xf32>
    %83 = arith.truncf %81 : vector<256x128xf32> to vector<256x128xbf16>
    %c8 = arith.constant 8 : index
    %c0_98 = arith.constant 0 : index
    %c0_99 = arith.constant 0 : index
    %84 = vector.load %arg2[%c8, %c0_98, %c0_99] : memref<9x128x128xbf16, #tpu.memory_space<vmem>>, vector<1x128x128xbf16>
    %85 = vector.shape_cast %84 : vector<1x128x128xbf16> to vector<128x128xbf16>
    %cst_100 = arith.constant dense<0.000000e+00> : vector<256x128xf32>
    %86 = tpu.matmul %83, %85, %cst_100 {dimension_numbers = #tpu.dot_dimension_numbers<[1], [0], [0], [1], [0, 0, 1, 1], [], []>} : vector<256x128xbf16>, vector<128x128xbf16>, vector<256x128xf32> -> vector<256x128xf32>
    %87 = arith.addf %82, %86 : vector<256x128xf32>
    %c0_101 = arith.constant 0 : index
    %c0_102 = arith.constant 0 : index
    %88 = vector.load %arg5[%c0_101, %c0_102] : memref<256x128xf32, #tpu.memory_space<vmem>>, vector<256x128xf32>
    tpu.vector_store %arg5[%c0_101, %c0_102], %87 {strides = array<i32>} : memref<256x128xf32, #tpu.memory_space<vmem>>, vector<256x128xf32>,
    %c0_103 = arith.constant 0 : index
    %c0_104 = arith.constant 0 : index
    %89 = vector.load %arg5[%c0_103, %c0_104] : memref<256x128xf32, #tpu.memory_space<vmem>>, vector<256x128xf32>
    %cst_105 = arith.constant 0.000000e+00 : f32
    %90 = vector.broadcast %cst_105 : f32 to vector<256x128xf32>
    %91 = arith.maximumf %89, %90 : vector<256x128xf32>
    %92 = vector.shape_cast %91 : vector<256x128xf32> to vector<1x16x16x128xf32>
    %93 = arith.truncf %92 : vector<1x16x16x128xf32> to vector<1x16x16x128xbf16>
    %c0_106 = arith.constant 0 : index
    %c0_107 = arith.constant 0 : index
    %c0_108 = arith.constant 0 : index
    %c0_109 = arith.constant 0 : index
    %94 = vector.load %arg3[%c0_106, %c0_107, %c0_108, %c0_109] : memref<1x16x16x128xbf16, #tpu.memory_space<vmem>>, vector<1x16x16x128xbf16>
    tpu.vector_store %arg3[%c0_106, %c0_107, %c0_108, %c0_109], %93 {strides = array<i32>} : memref<1x16x16x128xbf16, #tpu.memory_space<vmem>>, vector<1x16x16x128xbf16>,
    return
  }
  func.func @transform_0(%arg0: i32) -> (i32, i32, i32, i32) {
    %c0_i32 = arith.constant 0 : i32
    %c0_i32_0 = arith.constant 0 : i32
    %c0_i32_1 = arith.constant 0 : i32
    %c0_i32_2 = arith.constant 0 : i32
    return %arg0, %c0_i32, %c0_i32_0, %c0_i32_1 : i32, i32, i32, i32
  }
  func.func @transform_1(%arg0: i32) -> (i32, i32, i32) {
    %c0_i32 = arith.constant 0 : i32
    %c0_i32_0 = arith.constant 0 : i32
    %c0_i32_1 = arith.constant 0 : i32
    %c0_i32_2 = arith.constant 0 : i32
    return %c0_i32, %c0_i32_0, %c0_i32_1 : i32, i32, i32
  }
  func.func @transform_2(%arg0: i32) -> (i32, i32, i32, i32) {
    %c0_i32 = arith.constant 0 : i32
    %c0_i32_0 = arith.constant 0 : i32
    %c0_i32_1 = arith.constant 0 : i32
    %c0_i32_2 = arith.constant 0 : i32
    return %arg0, %c0_i32, %c0_i32_0, %c0_i32_1 : i32, i32, i32, i32
  }
}

module attributes {stable_mosaic.version = 11 : i64} {
  func.func @fused_concat_ese_kernel(%arg0: i32, %arg1: memref<1x16x16x128xbf16, #tpu.memory_space<vmem>>, %arg2: memref<1x16x16x128xbf16, #tpu.memory_space<vmem>>, %arg3: memref<1x16x16x128xbf16, #tpu.memory_space<vmem>>, %arg4: memref<1x16x16x128xbf16, #tpu.memory_space<vmem>>, %arg5: memref<1x16x16x128xf32, #tpu.memory_space<vmem>>, %arg6: memref<512x128xbf16, #tpu.memory_space<vmem>>, %arg7: memref<128x128xf32, #tpu.memory_space<vmem>>, %arg8: memref<1x128xf32, #tpu.memory_space<vmem>>, %arg9: memref<1x16x16x128xf32, #tpu.memory_space<vmem>>, %arg10: memref<256x128xf32, #tpu.memory_space<vmem>>) attributes {dimension_semantics = [#tpu.dimension_semantics<parallel>], iteration_bounds = array<i64: 2>, scalar_prefetch = 0 : i64, scratch_operands = 1 : i64, tpu.core_type = #tpu.core_type<tc>, window_params = [{transform_indices = @transform_0, window_bounds = array<i64: 1, 16, 16, 128>}, {transform_indices = @transform_1, window_bounds = array<i64: 1, 16, 16, 128>}, {transform_indices = @transform_2, window_bounds = array<i64: 1, 16, 16, 128>}, {transform_indices = @transform_3, window_bounds = array<i64: 1, 16, 16, 128>}, {transform_indices = @transform_4, window_bounds = array<i64: 1, 16, 16, 128>}, {pipeline_mode = #tpu.pipeline_mode<synchronous>, transform_indices = @transform_5, window_bounds = array<i64: 512, 128>}, {pipeline_mode = #tpu.pipeline_mode<synchronous>, transform_indices = @transform_6, window_bounds = array<i64: 128, 128>}, {pipeline_mode = #tpu.pipeline_mode<synchronous>, transform_indices = @transform_7, window_bounds = array<i64: 1, 128>}, {transform_indices = @transform_8, window_bounds = array<i64: 1, 16, 16, 128>}]} {
    %cst = arith.constant 0.000000e+00 : f32
    %0 = vector.broadcast %cst : f32 to vector<256x128xf32>
    %c0 = arith.constant 0 : index
    %c0_0 = arith.constant 0 : index
    %1 = vector.load %arg10[%c0, %c0_0] : memref<256x128xf32, #tpu.memory_space<vmem>>, vector<256x128xf32>
    tpu.vector_store %arg10[%c0, %c0_0], %0 {strides = array<i32>} : memref<256x128xf32, #tpu.memory_space<vmem>>, vector<256x128xf32>,
    %c0_1 = arith.constant 0 : index
    %c0_2 = arith.constant 0 : index
    %c0_3 = arith.constant 0 : index
    %c0_4 = arith.constant 0 : index
    %2 = vector.load %arg1[%c0_1, %c0_2, %c0_3, %c0_4] : memref<1x16x16x128xbf16, #tpu.memory_space<vmem>>, vector<1x16x16x128xbf16>
    %3 = vector.shape_cast %2 : vector<1x16x16x128xbf16> to vector<16x16x128xbf16>
    %4 = vector.shape_cast %3 : vector<16x16x128xbf16> to vector<256x128xbf16>
    %c0_5 = arith.constant 0 : index
    %c0_6 = arith.constant 0 : index
    %5 = vector.load %arg10[%c0_5, %c0_6] : memref<256x128xf32, #tpu.memory_space<vmem>>, vector<256x128xf32>
    %c0_7 = arith.constant 0 : index
    %c0_8 = arith.constant 0 : index
    %6 = vector.load %arg6[%c0_7, %c0_8] : memref<512x128xbf16, #tpu.memory_space<vmem>>, vector<128x128xbf16>
    %cst_9 = arith.constant dense<0.000000e+00> : vector<256x128xf32>
    %7 = tpu.matmul %4, %6, %cst_9 {dimension_numbers = #tpu.dot_dimension_numbers<[1], [0], [0], [1], [0, 0, 1, 1], [], []>} : vector<256x128xbf16>, vector<128x128xbf16>, vector<256x128xf32> -> vector<256x128xf32>
    %8 = arith.addf %5, %7 : vector<256x128xf32>
    %c0_10 = arith.constant 0 : index
    %c0_11 = arith.constant 0 : index
    %9 = vector.load %arg10[%c0_10, %c0_11] : memref<256x128xf32, #tpu.memory_space<vmem>>, vector<256x128xf32>
    tpu.vector_store %arg10[%c0_10, %c0_11], %8 {strides = array<i32>} : memref<256x128xf32, #tpu.memory_space<vmem>>, vector<256x128xf32>,
    %c0_12 = arith.constant 0 : index
    %c0_13 = arith.constant 0 : index
    %c0_14 = arith.constant 0 : index
    %c0_15 = arith.constant 0 : index
    %10 = vector.load %arg2[%c0_12, %c0_13, %c0_14, %c0_15] : memref<1x16x16x128xbf16, #tpu.memory_space<vmem>>, vector<1x16x16x128xbf16>
    %11 = vector.shape_cast %10 : vector<1x16x16x128xbf16> to vector<16x16x128xbf16>
    %12 = vector.shape_cast %11 : vector<16x16x128xbf16> to vector<256x128xbf16>
    %c0_16 = arith.constant 0 : index
    %c0_17 = arith.constant 0 : index
    %13 = vector.load %arg10[%c0_16, %c0_17] : memref<256x128xf32, #tpu.memory_space<vmem>>, vector<256x128xf32>
    %c128 = arith.constant 128 : index
    %c0_18 = arith.constant 0 : index
    %14 = vector.load %arg6[%c128, %c0_18] : memref<512x128xbf16, #tpu.memory_space<vmem>>, vector<128x128xbf16>
    %cst_19 = arith.constant dense<0.000000e+00> : vector<256x128xf32>
    %15 = tpu.matmul %12, %14, %cst_19 {dimension_numbers = #tpu.dot_dimension_numbers<[1], [0], [0], [1], [0, 0, 1, 1], [], []>} : vector<256x128xbf16>, vector<128x128xbf16>, vector<256x128xf32> -> vector<256x128xf32>
    %16 = arith.addf %13, %15 : vector<256x128xf32>
    %c0_20 = arith.constant 0 : index
    %c0_21 = arith.constant 0 : index
    %17 = vector.load %arg10[%c0_20, %c0_21] : memref<256x128xf32, #tpu.memory_space<vmem>>, vector<256x128xf32>
    tpu.vector_store %arg10[%c0_20, %c0_21], %16 {strides = array<i32>} : memref<256x128xf32, #tpu.memory_space<vmem>>, vector<256x128xf32>,
    %c0_22 = arith.constant 0 : index
    %c0_23 = arith.constant 0 : index
    %c0_24 = arith.constant 0 : index
    %c0_25 = arith.constant 0 : index
    %18 = vector.load %arg3[%c0_22, %c0_23, %c0_24, %c0_25] : memref<1x16x16x128xbf16, #tpu.memory_space<vmem>>, vector<1x16x16x128xbf16>
    %19 = vector.shape_cast %18 : vector<1x16x16x128xbf16> to vector<16x16x128xbf16>
    %20 = vector.shape_cast %19 : vector<16x16x128xbf16> to vector<256x128xbf16>
    %c0_26 = arith.constant 0 : index
    %c0_27 = arith.constant 0 : index
    %21 = vector.load %arg10[%c0_26, %c0_27] : memref<256x128xf32, #tpu.memory_space<vmem>>, vector<256x128xf32>
    %c256 = arith.constant 256 : index
    %c0_28 = arith.constant 0 : index
    %22 = vector.load %arg6[%c256, %c0_28] : memref<512x128xbf16, #tpu.memory_space<vmem>>, vector<128x128xbf16>
    %cst_29 = arith.constant dense<0.000000e+00> : vector<256x128xf32>
    %23 = tpu.matmul %20, %22, %cst_29 {dimension_numbers = #tpu.dot_dimension_numbers<[1], [0], [0], [1], [0, 0, 1, 1], [], []>} : vector<256x128xbf16>, vector<128x128xbf16>, vector<256x128xf32> -> vector<256x128xf32>
    %24 = arith.addf %21, %23 : vector<256x128xf32>
    %c0_30 = arith.constant 0 : index
    %c0_31 = arith.constant 0 : index
    %25 = vector.load %arg10[%c0_30, %c0_31] : memref<256x128xf32, #tpu.memory_space<vmem>>, vector<256x128xf32>
    tpu.vector_store %arg10[%c0_30, %c0_31], %24 {strides = array<i32>} : memref<256x128xf32, #tpu.memory_space<vmem>>, vector<256x128xf32>,
    %c0_32 = arith.constant 0 : index
    %c0_33 = arith.constant 0 : index
    %c0_34 = arith.constant 0 : index
    %c0_35 = arith.constant 0 : index
    %26 = vector.load %arg4[%c0_32, %c0_33, %c0_34, %c0_35] : memref<1x16x16x128xbf16, #tpu.memory_space<vmem>>, vector<1x16x16x128xbf16>
    %27 = vector.shape_cast %26 : vector<1x16x16x128xbf16> to vector<16x16x128xbf16>
    %28 = vector.shape_cast %27 : vector<16x16x128xbf16> to vector<256x128xbf16>
    %c0_36 = arith.constant 0 : index
    %c0_37 = arith.constant 0 : index
    %29 = vector.load %arg10[%c0_36, %c0_37] : memref<256x128xf32, #tpu.memory_space<vmem>>, vector<256x128xf32>
    %c384 = arith.constant 384 : index
    %c0_38 = arith.constant 0 : index
    %30 = vector.load %arg6[%c384, %c0_38] : memref<512x128xbf16, #tpu.memory_space<vmem>>, vector<128x128xbf16>
    %cst_39 = arith.constant dense<0.000000e+00> : vector<256x128xf32>
    %31 = tpu.matmul %28, %30, %cst_39 {dimension_numbers = #tpu.dot_dimension_numbers<[1], [0], [0], [1], [0, 0, 1, 1], [], []>} : vector<256x128xbf16>, vector<128x128xbf16>, vector<256x128xf32> -> vector<256x128xf32>
    %32 = arith.addf %29, %31 : vector<256x128xf32>
    %c0_40 = arith.constant 0 : index
    %c0_41 = arith.constant 0 : index
    %33 = vector.load %arg10[%c0_40, %c0_41] : memref<256x128xf32, #tpu.memory_space<vmem>>, vector<256x128xf32>
    tpu.vector_store %arg10[%c0_40, %c0_41], %32 {strides = array<i32>} : memref<256x128xf32, #tpu.memory_space<vmem>>, vector<256x128xf32>,
    %c0_42 = arith.constant 0 : index
    %c0_43 = arith.constant 0 : index
    %34 = vector.load %arg10[%c0_42, %c0_43] : memref<256x128xf32, #tpu.memory_space<vmem>>, vector<256x128xf32>
    %cst_44 = arith.constant 0.000000e+00 : f32
    %35 = vector.broadcast %cst_44 : f32 to vector<256x128xf32>
    %36 = arith.maximumf %34, %35 : vector<256x128xf32>
    %cst_45 = arith.constant dense<0.000000e+00> : vector<128xf32>
    %37 = vector.multi_reduction <add>, %36, %cst_45 [0] : vector<256x128xf32> to vector<128xf32>
    %38 = vector.shape_cast %37 : vector<128xf32> to vector<1x128xf32>
    %cst_46 = arith.constant 3.906250e-03 : f32
    %39 = vector.broadcast %cst_46 : f32 to vector<1x128xf32>
    %40 = arith.mulf %38, %39 : vector<1x128xf32>
    %c0_47 = arith.constant 0 : index
    %c0_48 = arith.constant 0 : index
    %41 = vector.load %arg7[%c0_47, %c0_48] : memref<128x128xf32, #tpu.memory_space<vmem>>, vector<128x128xf32>
    %cst_49 = arith.constant dense<0.000000e+00> : vector<1x128xf32>
    %42 = tpu.matmul %40, %41, %cst_49 {dimension_numbers = #tpu.dot_dimension_numbers<[1], [0], [0], [1], [0, 0, 1, 1], [], []>} : vector<1x128xf32>, vector<128x128xf32>, vector<1x128xf32> -> vector<1x128xf32>
    %c0_50 = arith.constant 0 : index
    %c0_51 = arith.constant 0 : index
    %43 = vector.load %arg8[%c0_50, %c0_51] : memref<1x128xf32, #tpu.memory_space<vmem>>, vector<1x128xf32>
    %44 = arith.addf %42, %43 : vector<1x128xf32>
    %cst_52 = arith.constant 3.000000e+00 : f32
    %45 = vector.broadcast %cst_52 : f32 to vector<1x128xf32>
    %46 = arith.addf %44, %45 : vector<1x128xf32>
    %cst_53 = arith.constant 0.000000e+00 : f32
    %cst_54 = arith.constant 6.000000e+00 : f32
    %47 = vector.broadcast %cst_53 : f32 to vector<1x128xf32>
    %48 = arith.maximumf %47, %46 : vector<1x128xf32>
    %49 = vector.broadcast %cst_54 : f32 to vector<1x128xf32>
    %50 = arith.minimumf %49, %48 : vector<1x128xf32>
    %cst_55 = arith.constant 0.166666672 : f32
    %51 = vector.broadcast %cst_55 : f32 to vector<1x128xf32>
    %52 = arith.mulf %50, %51 : vector<1x128xf32>
    %53 = vector.broadcast %52 : vector<1x128xf32> to vector<256x128xf32>
    %54 = arith.mulf %36, %53 : vector<256x128xf32>
    %c0_56 = arith.constant 0 : index
    %c0_57 = arith.constant 0 : index
    %c0_58 = arith.constant 0 : index
    %c0_59 = arith.constant 0 : index
    %55 = vector.load %arg5[%c0_56, %c0_57, %c0_58, %c0_59] : memref<1x16x16x128xf32, #tpu.memory_space<vmem>>, vector<1x16x16x128xf32>
    %56 = vector.shape_cast %55 : vector<1x16x16x128xf32> to vector<16x16x128xf32>
    %57 = vector.shape_cast %56 : vector<16x16x128xf32> to vector<256x128xf32>
    %58 = arith.addf %54, %57 : vector<256x128xf32>
    %59 = vector.shape_cast %58 : vector<256x128xf32> to vector<1x16x16x128xf32>
    %c0_60 = arith.constant 0 : index
    %c0_61 = arith.constant 0 : index
    %c0_62 = arith.constant 0 : index
    %c0_63 = arith.constant 0 : index
    %60 = vector.load %arg9[%c0_60, %c0_61, %c0_62, %c0_63] : memref<1x16x16x128xf32, #tpu.memory_space<vmem>>, vector<1x16x16x128xf32>
    tpu.vector_store %arg9[%c0_60, %c0_61, %c0_62, %c0_63], %59 {strides = array<i32>} : memref<1x16x16x128xf32, #tpu.memory_space<vmem>>, vector<1x16x16x128xf32>,
    return
  }
  func.func @transform_0(%arg0: i32) -> (i32, i32, i32, i32) {
    %c0_i32 = arith.constant 0 : i32
    %c0_i32_0 = arith.constant 0 : i32
    %c0_i32_1 = arith.constant 0 : i32
    %c0_i32_2 = arith.constant 0 : i32
    return %arg0, %c0_i32, %c0_i32_0, %c0_i32_1 : i32, i32, i32, i32
  }
  func.func @transform_1(%arg0: i32) -> (i32, i32, i32, i32) {
    %c0_i32 = arith.constant 0 : i32
    %c0_i32_0 = arith.constant 0 : i32
    %c0_i32_1 = arith.constant 0 : i32
    %c0_i32_2 = arith.constant 0 : i32
    return %arg0, %c0_i32, %c0_i32_0, %c0_i32_1 : i32, i32, i32, i32
  }
  func.func @transform_2(%arg0: i32) -> (i32, i32, i32, i32) {
    %c0_i32 = arith.constant 0 : i32
    %c0_i32_0 = arith.constant 0 : i32
    %c0_i32_1 = arith.constant 0 : i32
    %c0_i32_2 = arith.constant 0 : i32
    return %arg0, %c0_i32, %c0_i32_0, %c0_i32_1 : i32, i32, i32, i32
  }
  func.func @transform_3(%arg0: i32) -> (i32, i32, i32, i32) {
    %c0_i32 = arith.constant 0 : i32
    %c0_i32_0 = arith.constant 0 : i32
    %c0_i32_1 = arith.constant 0 : i32
    %c0_i32_2 = arith.constant 0 : i32
    return %arg0, %c0_i32, %c0_i32_0, %c0_i32_1 : i32, i32, i32, i32
  }
  func.func @transform_4(%arg0: i32) -> (i32, i32, i32, i32) {
    %c0_i32 = arith.constant 0 : i32
    %c0_i32_0 = arith.constant 0 : i32
    %c0_i32_1 = arith.constant 0 : i32
    %c0_i32_2 = arith.constant 0 : i32
    return %arg0, %c0_i32, %c0_i32_0, %c0_i32_1 : i32, i32, i32, i32
  }
  func.func @transform_5(%arg0: i32) -> (i32, i32) {
    %c0_i32 = arith.constant 0 : i32
    %c0_i32_0 = arith.constant 0 : i32
    %c0_i32_1 = arith.constant 0 : i32
    return %c0_i32, %c0_i32_0 : i32, i32
  }
  func.func @transform_6(%arg0: i32) -> (i32, i32) {
    %c0_i32 = arith.constant 0 : i32
    %c0_i32_0 = arith.constant 0 : i32
    %c0_i32_1 = arith.constant 0 : i32
    return %c0_i32, %c0_i32_0 : i32, i32
  }
  func.func @transform_7(%arg0: i32) -> (i32, i32) {
    %c0_i32 = arith.constant 0 : i32
    %c0_i32_0 = arith.constant 0 : i32
    %c0_i32_1 = arith.constant 0 : i32
    return %c0_i32, %c0_i32_0 : i32, i32
  }
  func.func @transform_8(%arg0: i32) -> (i32, i32, i32, i32) {
    %c0_i32 = arith.constant 0 : i32
    %c0_i32_0 = arith.constant 0 : i32
    %c0_i32_1 = arith.constant 0 : i32
    %c0_i32_2 = arith.constant 0 : i32
    return %arg0, %c0_i32, %c0_i32_0, %c0_i32_1 : i32, i32, i32, i32
  }
}

</mosaic_0001>

<bundles_post_ra>
// kernel: osa_module_forward.7
= control target key start
LH: loop header
LB: loop body
LE: loop exit
PB: predicated region body
PF: predicated region fallthrough
CT: control target
= control target key end

     0   :  { %s4240_s0 = inlined_call_operand.vmem [shape: bf16[2,16,16,128], index: 0, kind: input, shape index: {}]   ;;  %s4241_s1 = inlined_call_operand.vmem [shape: bf16[2,16,16,128], index: 1, kind: input, shape index: {}]   ;;  %s4242_s2 = inlined_call_operand.vmem [shape: bf16[2,16,16,128], index: 2, kind: input, shape index: {}]   ;;  %s4243_s3 = inlined_call_operand.vmem [shape: bf16[2,16,16,128], index: 3, kind: input, shape index: {}]   ;;  %s4244_s4 = inlined_call_operand.vmem [shape: f32[2,16,16,128], index: 4, kind: input, shape index: {}]   ;;  %s4245_s5 = inlined_call_operand.vmem [shape: bf16[512,128], index: 5, kind: input, shape index: {}]   ;;  %s4246_s6 = inlined_call_operand.vmem [shape: f32[128,128], index: 6, kind: input, shape index: {}]   ;;  %s4247_s7 = inlined_call_operand.vmem [shape: f32[1,128], index: 7, kind: input, shape index: {}]   ;;  %s4248_s8 = inlined_call_operand.hbm [shape: f32[2,16,16,128], index: 8, kind: output, shape index: {}]  }
   0x1   :  { %4265 = sst [smem:[#allocation10_spill]] %s4240_s0 }
   0x2   :  { %13 = vsyncpa [#allocation4], 0 }
   0x3   :  { %15 = vsyncpa [#allocation4 + $0x1], 0  ;;  %s3375_s27 = smov 0   ;;  %s3377_s28 = smov 0  }
   0x4   :  { %s3379_s29 = smov 0   ;;  %s3381_s30 = smov 0  }
   0x5 LB: > { %s3396_s9 = sadd.s32 4294967295, %s3323_s30   ;;  %s2662_s10 = sadd.s32 4294967294, %s3323_s30   ;;  %s3323_s30 = sphi %s3381_s30, %s4296_s30   ;;  %s3319_s29 = sphi %s3379_s29, %s4295_s29   ;;  %s3315_s28 = sphi %s3377_s28, %s4294_s28   ;;  %s3311_s27 = sphi %s3375_s27, %s4293_s27  }
   0x6   : > { %s3400_s11 = sadd.s32 1, %s3323_s30   ;;  %s221_s12 = sadd.s32 1, %s3319_s29 }
   0x7   : > { %s218_s13 = ssub.s32 %s3323_s30, %s3400_s11  ;;  %p231_p0 = scmp.ne.s32.totalorder %s3319_s29, %s3315_s28 }
   0x8   : > { %p219_p1 = scmp.eq.s32.totalorder %s218_s13, 0  ;;  %p232_p2 = scmp.eq.s32.totalorder %s3396_s9, 1 }
   0x9   : > { %p237_p3 = scmp.ne.s32.totalorder %s3315_s28, %s3311_s27  ;;  %p238_p4 = scmp.eq.s32.totalorder %s2662_s10, 1 }
   0xa   : > { %s3411_s14 = scalar_select %p219_p1, %s3319_s29, %s221_s12  }
   0xb   : > { %p3413_p5 = por %p232_p2, %p231_p0  ;;  %p3417_p6 = por %p238_p4, %p237_p3 }
   0xc   : > { %p2665_p7 = scmp.ge.s32.totalorder %s3323_s30, 1  ;;  %p305_p8 = scmp.lt.s32.totalorder %s3323_s30, 3 }
   0xe   : > { %p306_p9 = pnand %p2665_p7, %p305_p8 }
  0x10   : > { %309 = sbr.rel (%p306_p9) target bundleno = 646 (0x286), region = 52 }
  0x15   : > { %v3167_v0 = vld [vmem:[%s4245_s5 + $0x38] sm:$0xff]   ;;  %v3169_v2 = vld [vmem:[%s4245_s5 + $0x30] sm:$0xff]   ;;  %p359_p10 = scmp.lt.s32.totalorder %s3396_s9, 1  ;;  %v3171_v4 = vld [vmem:[%s4245_s5 + $0x28] sm:$0xff]   ;;  %s4268_s0 = sld [smem:[#allocation10_spill]]  ;;  %vm3326_vm0 = vmmov 0  }
  0x16   : > { %v3168_v1 = vld [vmem:[%s4245_s5 + $0x78] sm:$0xff]   ;;  %2897 = vmatprep.subr.bf16.mxu0 %v3167_v0  ;;  %v3170_v3 = vld [vmem:[%s4245_s5 + $0x70] sm:$0xff]   ;;  %v3172_v5 = vld [vmem:[%s4245_s5 + $0x68] sm:$0xff]   ;;  %s3327_s17 = smov [#allocation3]  }
  0x17   : > { %2945 = vmatprep.subr.bf16.mxu1 %v3168_v1  ;;  %2898 = vmatpush3.bf16.msra.mxu0 %v3167_v0  ;;  %s3443_s13 = scalar_select %p359_p10, %s3396_s9, 1  ;;  %v3173_v6 = vld [vmem:[%s4245_s5 + $0x20] sm:$0xff]   ;;  %v3175_v8 = vld [vmem:[%s4245_s5 + $0x18] sm:$0xff]   ;;  %v3177_v10 = vld [vmem:[%s4245_s5 + $0x10] sm:$0xff]  }
  0x18   : > { %2946 = vmatpush3.bf16.msra.mxu1 %v3168_v1  ;;  %2899 = vmatprep.subr.bf16.mxu0 %v3169_v2  ;;  %v3174_v7 = vld [vmem:[%s4245_s5 + $0x60] sm:$0xff]   ;;  %v3176_v9 = vld [vmem:[%s4245_s5 + $0x58] sm:$0xff]   ;;  %v3178_v11 = vld [vmem:[%s4245_s5 + $0x50] sm:$0xff]  }
  0x19   : > { %2947 = vmatprep.subr.bf16.mxu1 %v3170_v3  ;;  %s3452_s21 = sshll.u32 %s3443_s13, 7  ;;  %v3179_v14 = vld [vmem:[%s4245_s5 + $0x8] sm:$0xff]   ;;  %v3181_v16 = vld [vmem:[%s4245_s5] sm:$0xff]   ;;  %v3187_v19 = vld [vmem:[%s4245_s5 + $0xb8] sm:$0xff]   ;;  %s2782_s18 = sshll.u32 %s3443_s13, 8 }
  0x1a   : > { %s3473_s22 = scalar_lea.vmem %s4241_s1, %s3452_s21  ;;  %v3180_v15 = vld [vmem:[%s4245_s5 + $0x48] sm:$0xff]   ;;  %v3182_v17 = vld [vmem:[%s4245_s5 + $0x40] sm:$0xff]   ;;  %v3188_v20 = vld [vmem:[%s4245_s5 + $0xf8] sm:$0xff]   ;;  %s3563_s20 = scalar_lea.vmem %s4242_s2, %s3452_s21 }
  0x1b   : > { %2900 = vmatpush3.bf16.msra.mxu0 %v3169_v2  ;;  %s3464_s12 = scalar_lea.vmem %s4268_s0, %s3452_s21  ;;  %v3184_v13 = vld [vmem:[%s3473_s22] sm:$0xff]   ;;  %v3186_v21 = vld [vmem:[%s3473_s22 + $0x8] sm:$0xff]   ;;  %v3190_v23 = vld [vmem:[%s3473_s22 + $0x10] sm:$0xff]   ;;  %s3570_s0 = scalar_lea.vmem %s4243_s3, %s3452_s21 }
  0x1c   : > { %2948 = vmatpush3.bf16.msra.mxu1 %v3170_v3  ;;  %2901 = vmatprep.subr.bf16.mxu0 %v3171_v4  ;;  %v3183_v12 = vld [vmem:[%s3464_s12] sm:$0xff]   ;;  %v3185_v18 = vld [vmem:[%s3464_s12 + $0x8] sm:$0xff]   ;;  %v3189_v22 = vld [vmem:[%s3464_s12 + $0x10] sm:$0xff]   ;;  %s3987_s23 = scalar_lea.vmem %s4244_s4, %s2782_s18  ;;  %s356_s13 = sand.u32 1, %s3315_s28  }
  0x1d   : > { %2949 = vmatprep.subr.bf16.mxu1 %v3172_v5  ;;  %2913 = vmatprep.mubr.bf16.mxu0 %v3183_v12  ;;  %v3193_v24 = vld [vmem:[%s4245_s5 + $0xb0] sm:$0xff]   ;;  %v3191_v26 = vld [vmem:[%s3464_s12 + $0x18] sm:$0xff]   ;;  %v3199_v27 = vld [vmem:[%s4245_s5 + $0xa8] sm:$0xff]   ;;  %s4036_s24 = sshll.u32 %s356_s13, 8  ;;  %s3267_s18 = sshll.u32 %s3327_s17, 4  ;;  %s3268_s18 = int_to_ptr.vmem [resolvable:$false] %s3267_s18 }
  0x1e   : > { %2961 = vmatprep.mubr.bf16.mxu1 %v3184_v13  ;;  %v3194_v25 = vld [vmem:[%s4245_s5 + $0xf0] sm:$0xff]   ;;  %v3200_v28 = vld [vmem:[%s4245_s5 + $0xe8] sm:$0xff]   ;;  %v3192_v29 = vld [vmem:[%s3473_s22 + $0x18] sm:$0xff]   ;;  %s4125_s21 = scalar_lea.vmem [#allocation3], %s4036_s24  ;;  %s3269_s19 = scalar_lea.vmem %s3268_s18, 8192 }
  0x1f   : > { %2902 = vmatpush3.bf16.msra.mxu0 %v3171_v4  ;;  %v3195_v30 = vld [vmem:[%s3464_s12 + $0x20] sm:$0xff]   ;;  %v3197_v34 = vld [vmem:[%s3464_s12 + $0x28] sm:$0xff]   ;;  %v3211_v36 = vld [vmem:[%s4245_s5 + $0x98] sm:$0xff]  }
  0x20   : > { %2950 = vmatpush3.bf16.msra.mxu1 %v3172_v5  ;;  %2903 = vmatprep.subr.bf16.mxu0 %v3173_v6  ;;  %v3196_v31 = vld [vmem:[%s3473_s22 + $0x20] sm:$0xff]   ;;  %v3198_v35 = vld [vmem:[%s3473_s22 + $0x28] sm:$0xff]   ;;  %v3212_v37 = vld [vmem:[%s4245_s5 + $0xd8] sm:$0xff]  }
  0x21   : > { %2951 = vmatprep.subr.bf16.mxu1 %v3174_v7  ;;  %v3205_v32 = vld [vmem:[%s4245_s5 + $0xa0] sm:$0xff]   ;;  %v3201_v38 = vld [vmem:[%s3464_s12 + $0x30] sm:$0xff]   ;;  %v3203_v42 = vld [vmem:[%s3464_s12 + $0x38] sm:$0xff]  }
  0x22   : > { %v3206_v33 = vld [vmem:[%s4245_s5 + $0xe0] sm:$0xff]   ;;  %v3202_v39 = vld [vmem:[%s3473_s22 + $0x30] sm:$0xff]   ;;  %v3204_v43 = vld [vmem:[%s3473_s22 + $0x38] sm:$0xff]  }
  0x23   : > { %2904 = vmatpush3.bf16.msra.mxu0 %v3173_v6  ;;  %v3217_v40 = vld [vmem:[%s4245_s5 + $0x90] sm:$0xff]   ;;  %v3207_v44 = vld [vmem:[%s3464_s12 + $0x40] sm:$0xff]   ;;  %v3223_v46 = vld [vmem:[%s4245_s5 + $0x88] sm:$0xff]  }
  0x24   : > { %2952 = vmatpush3.bf16.msra.mxu1 %v3174_v7  ;;  %2905 = vmatprep.subr.bf16.mxu0 %v3175_v8  ;;  %v3218_v41 = vld [vmem:[%s4245_s5 + $0xd0] sm:$0xff]   ;;  %v3208_v45 = vld [vmem:[%s3473_s22 + $0x40] sm:$0xff]   ;;  %v3224_v47 = vld [vmem:[%s4245_s5 + $0xc8] sm:$0xff]  }
  0x25   : > { %2953 = vmatprep.subr.bf16.mxu1 %v3176_v9  ;;  %v3209_v48 = vld [vmem:[%s3464_s12 + $0x48] sm:$0xff]   ;;  %v3213_v50 = vld [vmem:[%s3464_s12 + $0x50] sm:$0xff]   ;;  %v3229_v51 = vld [vmem:[%s4245_s5 + $0x80] sm:$0xff]  }
  0x26   : > { %v3210_v49 = vld [vmem:[%s3473_s22 + $0x48] sm:$0xff]   ;;  %v3230_v52 = vld [vmem:[%s4245_s5 + $0xc0] sm:$0xff]   ;;  %v3214_v53 = vld [vmem:[%s3473_s22 + $0x50] sm:$0xff]  }
  0x27   : > { %2906 = vmatpush3.bf16.msra.mxu0 %v3175_v8  ;;  %v3215_v54 = vld [vmem:[%s3464_s12 + $0x58] sm:$0xff]   ;;  %v3219_v56 = vld [vmem:[%s3464_s12 + $0x60] sm:$0xff]   ;;  %v3221_v58 = vld [vmem:[%s3464_s12 + $0x68] sm:$0xff]  }
  0x28   : > { %2954 = vmatpush3.bf16.msra.mxu1 %v3176_v9  ;;  %2907 = vmatprep.subr.bf16.mxu0 %v3177_v10  ;;  %v3216_v55 = vld [vmem:[%s3473_s22 + $0x58] sm:$0xff]   ;;  %v3220_v57 = vld [vmem:[%s3473_s22 + $0x60] sm:$0xff]   ;;  %v3222_v59 = vld [vmem:[%s3473_s22 + $0x68] sm:$0xff]  }
  0x29   : > { %2955 = vmatprep.subr.bf16.mxu1 %v3178_v11  ;;  %v3225_v60 = vld [vmem:[%s3464_s12 + $0x70] sm:$0xff]   ;;  %v3227_v62 = vld [vmem:[%s3464_s12 + $0x78] sm:$0xff]   ;;  %v3231_v0 = vld [vmem:[%s3563_s20] sm:$0xff]   ;;  %s2783_s12 = sshll.u32 %s3396_s9, 12  ;;  %s4200_s9 = scalar_lea.sflag [#allocation4], %s356_s13 }
  0x2a   : > { %v3226_v61 = vld [vmem:[%s3473_s22 + $0x70] sm:$0xff]   ;;  %v3228_v63 = vld [vmem:[%s3473_s22 + $0x78] sm:$0xff]   ;;  %v3232_v1 = vld [vmem:[%s3570_s0] sm:$0xff]   ;;  %s2552_s22 = sshll.u32 %s4125_s21, 4  ;;  %s4176_s26 = scalar_lea.hbm %s4248_s8, %s2783_s12  ;;  %s4180_s22 = int_to_ptr.vmem [resolvable:$true] %s2552_s22 }
  0x2b   : > { %2908 = vmatpush3.bf16.msra.mxu0 %v3177_v10  ;;  %v3233_v2 = vld [vmem:[%s3563_s20 + $0x8] sm:$0xff]   ;;  %v3235_v4 = vld [vmem:[%s3563_s20 + $0x10] sm:$0xff]   ;;  %v3237_v6 = vld [vmem:[%s3563_s20 + $0x18] sm:$0xff]   ;;  %s3263_s10 = scalar_lea.vmem %s4180_s22, 4096  ;;  %p3270_p0 = scmp.lt.s32.totalorder %s4180_s22, %s3268_s18 }
  0x2c   : > { %2956 = vmatpush3.bf16.msra.mxu1 %v3178_v11  ;;  %2909 = vmatprep.subr.bf16.mxu0 %v3179_v14  ;;  %v3234_v3 = vld [vmem:[%s3570_s0 + $0x8] sm:$0xff]   ;;  %v3236_v5 = vld [vmem:[%s3570_s0 + $0x10] sm:$0xff]   ;;  %v3238_v7 = vld [vmem:[%s3570_s0 + $0x18] sm:$0xff]   ;;  %p3264_p11 = scmp.ne.s32.totalorder %s4180_s22, %s3263_s10  ;;  %p3271_p1 = scmp.lt.s32.totalorder %s3269_s19, %s3263_s10 }
  0x2d   : > { %2957 = vmatprep.subr.bf16.mxu1 %v3180_v15  ;;  %v3239_v8 = vld [vmem:[%s3563_s20 + $0x20] sm:$0xff]   ;;  %v3241_v10 = vld [vmem:[%s3563_s20 + $0x28] sm:$0xff]   ;;  %v3243_v12 = vld [vmem:[%s3563_s20 + $0x30] sm:$0xff]  }
  0x2e   : > { %v3240_v9 = vld [vmem:[%s3570_s0 + $0x20] sm:$0xff]   ;;  %v3242_v11 = vld [vmem:[%s3570_s0 + $0x28] sm:$0xff]   ;;  %v3244_v13 = vld [vmem:[%s3570_s0 + $0x30] sm:$0xff]   ;;  %p3265_p12 = pnand %p3264_p11, %p3413_p5  ;;  %p3272_p2 = por %p3271_p1, %p3270_p0 }
  0x2f   : > { %2910 = vmatpush3.bf16.msra.mxu0 %v3179_v14  ;;  %v3245_v14 = vld [vmem:[%s3563_s20 + $0x38] sm:$0xff]  }
  0x30   : > { %2958 = vmatpush3.bf16.msra.mxu1 %v3180_v15  ;;  %2911 = vmatprep.subr.bf16.mxu0 %v3181_v16  ;;  %v3246_v15 = vld [vmem:[%s3570_s0 + $0x38] sm:$0xff]   ;;  %p3266_p13 = pneg %p3265_p12 }
  0x31   : > { %2959 = vmatprep.subr.bf16.mxu1 %v3182_v17 }
  0x32   : > { %p3273_p3 = pnand %p3272_p2, %p3266_p13 }
  0x33   : > { %2912 = vmatpush3.bf16.msra.mxu0 %v3181_v16  ;;  %v3247_v16 = vld [vmem:[%s3563_s20 + $0x40] sm:$0xff]  }
  0x34   : > { %2960 = vmatpush3.bf16.msra.mxu1 %v3182_v17  ;;  %2993 = vmatprep.subr.bf16.mxu0 %v3187_v19  ;;  %v3248_v17 = vld [vmem:[%s3570_s0 + $0x40] sm:$0xff]  }
  0x35   : > { %3041 = vmatprep.subr.bf16.mxu1 %v3188_v20 }
  0x36   : > { %2914 = vmatmul.mubr.bf16.vlgmr.msra.gmra.mxu0 %v3185_v18  ;;  %v3249_v18 = vld [vmem:[%s3563_s20 + $0x48] sm:$0xff]  }
  0x37   : > { %2962 = vmatmul.mubr.bf16.vlgmr.msra.gmra.mxu1 %v3186_v21  ;;  %2994 = vmatpush3.bf16.msra.mxu0 %v3187_v19  ;;  %v3250_v19 = vld [vmem:[%s3570_s0 + $0x48] sm:$0xff]   ;;  %v3252_v21 = vld [vmem:[%s3570_s0 + $0x50] sm:$0xff]  }
  0x38   : > { %3042 = vmatpush3.bf16.msra.mxu1 %v3188_v20  ;;  %2917 = vmatprep.mubr.bf16.mxu0 %v3189_v22  ;;  %v3251_v20 = vld [vmem:[%s3563_s20 + $0x50] sm:$0xff]   ;;  %v3253_v22 = vld [vmem:[%s3563_s20 + $0x58] sm:$0xff]  }
  0x39   : > { %2965 = vmatprep.mubr.bf16.mxu1 %v3190_v23  ;;  %2995 = vmatprep.subr.bf16.mxu0 %v3193_v24  ;;  %v3254_v23 = vld [vmem:[%s3570_s0 + $0x58] sm:$0xff]  }
  0x3a   : > { %3043 = vmatprep.subr.bf16.mxu1 %v3194_v25 }
  0x3b   : > { %2996 = vmatpush3.bf16.msra.mxu0 %v3193_v24  ;;  %v3255_v24 = vld [vmem:[%s3563_s20 + $0x60] sm:$0xff]  }
  0x3c   : > { %3044 = vmatpush3.bf16.msra.mxu1 %v3194_v25  ;;  %2997 = vmatprep.subr.bf16.mxu0 %v3199_v27  ;;  %v3256_v25 = vld [vmem:[%s3570_s0 + $0x60] sm:$0xff]  }
  0x3d   : > { %3045 = vmatprep.subr.bf16.mxu1 %v3200_v28 }
  0x3e   : > { %2918 = vmatmul.mubr.bf16.gmra.mxu0 %v3191_v26  ;;  %v3257_v26 = vld [vmem:[%s3563_s20 + $0x68] sm:$0xff]  }
  0x3f   : > { %2966 = vmatmul.mubr.bf16.gmra.mxu1 %v3192_v29  ;;  %2921 = vmatprep.mubr.bf16.mxu0 %v3195_v30  ;;  %v3260_v29 = vld [vmem:[%s3570_s0 + $0x70] sm:$0xff]   ;;  %v3261_v30 = vld [vmem:[%s3563_s20 + $0x78] sm:$0xff]  }
  0x40   : > { %2969 = vmatprep.mubr.bf16.mxu1 %v3196_v31  ;;  %2998 = vmatpush3.bf16.msra.mxu0 %v3199_v27  ;;  %v3258_v27 = vld [vmem:[%s3570_s0 + $0x68] sm:$0xff]   ;;  %v3262_v31 = vld [vmem:[%s3570_s0 + $0x78] sm:$0xff]  }
  0x41   : > { %3046 = vmatpush3.bf16.msra.mxu1 %v3200_v28  ;;  %2999 = vmatprep.subr.bf16.mxu0 %v3205_v32  ;;  %v3259_v28 = vld [vmem:[%s3563_s20 + $0x70] sm:$0xff]  }
  0x42   : > { %3047 = vmatprep.subr.bf16.mxu1 %v3206_v33 }
  0x44   : > { %3000 = vmatpush3.bf16.msra.mxu0 %v3205_v32  ;;  %v3325_v32 = vmov 0.0  }
  0x45   : > { %3048 = vmatpush3.bf16.msra.mxu1 %v3206_v33  ;;  %3001 = vmatprep.subr.bf16.mxu0 %v3211_v36  ;;  %v2330_v33 = vld [vmem:[%s4246_s6 + $0x78] sm:$0xff] }
  0x46   : > { %2922 = vmatmul.mubr.bf16.gmra.mxu0 %v3197_v34  ;;  %3049 = vmatprep.subr.bf16.mxu1 %v3212_v37  ;;  %v2329_v34 = vld [vmem:[%s4246_s6 + $0x70] sm:$0xff] }
  0x47   : > { %2970 = vmatmul.mubr.bf16.gmra.mxu1 %v3198_v35  ;;  %2925 = vmatprep.mubr.bf16.mxu0 %v3201_v38  ;;  %v2328_v35 = vld [vmem:[%s4246_s6 + $0x68] sm:$0xff]  ;;  %v2325_v38 = vld [vmem:[%s4246_s6 + $0x50] sm:$0xff] }
  0x48   : > { %2973 = vmatprep.mubr.bf16.mxu1 %v3202_v39  ;;  %3002 = vmatpush3.bf16.msra.mxu0 %v3211_v36  ;;  %v2327_v36 = vld [vmem:[%s4246_s6 + $0x60] sm:$0xff]  ;;  %v2324_v39 = vld [vmem:[%s4246_s6 + $0x48] sm:$0xff] }
  0x49   : > { %3050 = vmatpush3.bf16.msra.mxu1 %v3212_v37  ;;  %3003 = vmatprep.subr.bf16.mxu0 %v3217_v40  ;;  %v2326_v37 = vld [vmem:[%s4246_s6 + $0x58] sm:$0xff] }
  0x4a   : > { %3051 = vmatprep.subr.bf16.mxu1 %v3218_v41 }
  0x4c   : > { %3004 = vmatpush3.bf16.msra.mxu0 %v3217_v40  ;;  %v2323_v40 = vld [vmem:[%s4246_s6 + $0x40] sm:$0xff] }
  0x4d   : > { %3052 = vmatpush3.bf16.msra.mxu1 %v3218_v41  ;;  %3005 = vmatprep.subr.bf16.mxu0 %v3223_v46 }
  0x4e   : > { %2926 = vmatmul.mubr.bf16.gmra.mxu0 %v3203_v42  ;;  %3053 = vmatprep.subr.bf16.mxu1 %v3224_v47 }
  0x4f   : > { %2974 = vmatmul.mubr.bf16.gmra.mxu1 %v3204_v43  ;;  %2929 = vmatprep.mubr.bf16.mxu0 %v3207_v44 }
  0x50   : > { %2977 = vmatprep.mubr.bf16.mxu1 %v3208_v45  ;;  %3006 = vmatpush3.bf16.msra.mxu0 %v3223_v46  ;;  %v2322_v46 = vld [vmem:[%s4246_s6 + $0x38] sm:$0xff] }
  0x51   : > { %3054 = vmatpush3.bf16.msra.mxu1 %v3224_v47  ;;  %3007 = vmatprep.subr.bf16.mxu0 %v3229_v51 }
  0x52   : > { %3055 = vmatprep.subr.bf16.mxu1 %v3230_v52 }
  0x54   : > { %3008 = vmatpush3.bf16.msra.mxu0 %v3229_v51 }
  0x55   : > { %3056 = vmatpush3.bf16.msra.mxu1 %v3230_v52  ;;  %3089 = vmatprep.subr.mxu0 %v3325_v32 }
  0x56   : > { %2930 = vmatmul.mubr.bf16.gmra.mxu0 %v3209_v48 }
  0x57   : > { %2978 = vmatmul.mubr.bf16.gmra.mxu1 %v3210_v49  ;;  %2933 = vmatprep.mubr.bf16.mxu0 %v3213_v50 }
  0x58   : > { %2981 = vmatprep.mubr.bf16.mxu1 %v3214_v53 }
  0x5e   : > { %2934 = vmatmul.mubr.bf16.gmra.mxu0 %v3215_v54 }
  0x5f   : > { %2982 = vmatmul.mubr.bf16.gmra.mxu1 %v3216_v55  ;;  %2937 = vmatprep.mubr.bf16.mxu0 %v3219_v56 }
  0x60   : > { %2985 = vmatprep.mubr.bf16.mxu1 %v3220_v57 }
  0x66   : > { %2938 = vmatmul.mubr.bf16.gmra.mxu0 %v3221_v58 }
  0x67   : > { %2986 = vmatmul.mubr.bf16.gmra.mxu1 %v3222_v59  ;;  %2941 = vmatprep.mubr.bf16.mxu0 %v3225_v60  ;;  %v2321_v59 = vld [vmem:[%s4246_s6 + $0x30] sm:$0xff] }
  0x68   : > { %2989 = vmatprep.mubr.bf16.mxu1 %v3226_v61 }
  0x6e   : > { %2942 = vmatmul.mubr.bf16.gmra.mxu0 %v3227_v62 }
  0x6f   : > { %2990 = vmatmul.mubr.bf16.gmra.mxu1 %v3228_v63  ;;  %3009 = vmatprep.mubr.bf16.mxu0 %v3231_v0  ;;  %v2320_v63 = vld [vmem:[%s4246_s6 + $0x28] sm:$0xff] }
  0x70   : > { %3057 = vmatprep.mubr.bf16.mxu1 %v3232_v1 }
  0x76   : > { %3010 = vmatmul.mubr.bf16.vlgmr.msra.gmra.mxu0 %v3233_v2  ;;  %v2319_v2 = vld [vmem:[%s4246_s6 + $0x20] sm:$0xff] }
  0x77   : > { %3058 = vmatmul.mubr.bf16.vlgmr.msra.gmra.mxu1 %v3234_v3  ;;  %3013 = vmatprep.mubr.bf16.mxu0 %v3235_v4 }
  0x78   : > { %3061 = vmatprep.mubr.bf16.mxu1 %v3236_v5  ;;  %3090 = vmatpush3.msra.mxu0 %v2330_v33 }
  0x79   : > { %3091 = vmatprep.subr.mxu0 %v3325_v32 }
  0x7a   : > { %3092 = vmatpush3.msra.mxu0 %v2329_v34 }
  0x7b   : > { %3093 = vmatprep.subr.mxu0 %v3325_v32 }
  0x7c   : > { %3094 = vmatpush3.msra.mxu0 %v2328_v35 }
  0x7d   : > { %3095 = vmatprep.subr.mxu0 %v3325_v32 }
  0x7e   : > { %3014 = vmatmul.mubr.bf16.gmra.mxu0 %v3237_v6  ;;  %v2318_v6 = vld [vmem:[%s4246_s6 + $0x18] sm:$0xff] }
  0x7f   : > { %3062 = vmatmul.mubr.bf16.gmra.mxu1 %v3238_v7  ;;  %3017 = vmatprep.mubr.bf16.mxu0 %v3239_v8  ;;  %v2317_v8 = vld [vmem:[%s4246_s6 + $0x10] sm:$0xff] }
  0x80   : > { %3065 = vmatprep.mubr.bf16.mxu1 %v3240_v9  ;;  %3096 = vmatpush3.msra.mxu0 %v2327_v36 }
  0x81   : > { %3097 = vmatprep.subr.mxu0 %v3325_v32 }
  0x82   : > { %3098 = vmatpush3.msra.mxu0 %v2326_v37 }
  0x83   : > { %3099 = vmatprep.subr.mxu0 %v3325_v32 }
  0x84   : > { %3100 = vmatpush3.msra.mxu0 %v2325_v38 }
  0x85   : > { %3101 = vmatprep.subr.mxu0 %v3325_v32 }
  0x86   : > { %3018 = vmatmul.mubr.bf16.gmra.mxu0 %v3241_v10  ;;  %v2316_v10 = vld [vmem:[%s4246_s6 + $0x8] sm:$0xff] }
  0x87   : > { %3066 = vmatmul.mubr.bf16.gmra.mxu1 %v3242_v11  ;;  %3021 = vmatprep.mubr.bf16.mxu0 %v3243_v12 }
  0x88   : > { %3069 = vmatprep.mubr.bf16.mxu1 %v3244_v13  ;;  %3102 = vmatpush3.msra.mxu0 %v2324_v39 }
  0x89   : > { %3103 = vmatprep.subr.mxu0 %v3325_v32 }
  0x8a   : > { %3104 = vmatpush3.msra.mxu0 %v2323_v40 }
  0x8b   : > { %3105 = vmatprep.subr.mxu0 %v3325_v32 }
  0x8c   : > { %3106 = vmatpush3.msra.mxu0 %v2322_v46 }
  0x8d   : > { %3107 = vmatprep.subr.mxu0 %v3325_v32 }
  0x8e   : > { %3022 = vmatmul.mubr.bf16.gmra.mxu0 %v3245_v14  ;;  %v2315_v14 = vld [vmem:[%s4246_s6] sm:$0xff] }
  0x8f   : > { %3070 = vmatmul.mubr.bf16.gmra.mxu1 %v3246_v15  ;;  %3025 = vmatprep.mubr.bf16.mxu0 %v3247_v16 }
  0x90   : > { %3073 = vmatprep.mubr.bf16.mxu1 %v3248_v17  ;;  %3108 = vmatpush3.msra.mxu0 %v2321_v59 }
  0x91   : > { %3109 = vmatprep.subr.mxu0 %v3325_v32 }
  0x92   : > { %3110 = vmatpush3.msra.mxu0 %v2320_v63 }
  0x93   : > { %3111 = vmatprep.subr.mxu0 %v3325_v32 }
  0x94   : > { %3112 = vmatpush3.msra.mxu0 %v2319_v2 }
  0x95   : > { %3113 = vmatprep.subr.mxu0 %v3325_v32 }
  0x96   : > { %3026 = vmatmul.mubr.bf16.gmra.mxu0 %v3249_v18 }
  0x97   : > { %3074 = vmatmul.mubr.bf16.gmra.mxu1 %v3250_v19  ;;  %3029 = vmatprep.mubr.bf16.mxu0 %v3251_v20 }
  0x98   : > { %3077 = vmatprep.mubr.bf16.mxu1 %v3252_v21  ;;  %3114 = vmatpush3.msra.mxu0 %v2318_v6 }
  0x99   : > { %3115 = vmatprep.subr.mxu0 %v3325_v32 }
  0x9a   : > { %3116 = vmatpush3.msra.mxu0 %v2317_v8 }
  0x9b   : > { %3117 = vmatprep.subr.mxu0 %v3325_v32 }
  0x9c   : > { %3118 = vmatpush3.msra.mxu0 %v2316_v10 }
  0x9d   : > { %3119 = vmatprep.subr.mxu0 %v3325_v32 }
  0x9e   : > { %3030 = vmatmul.mubr.bf16.gmra.mxu0 %v3253_v22 }
  0x9f   : > { %3078 = vmatmul.mubr.bf16.gmra.mxu1 %v3254_v23  ;;  %3033 = vmatprep.mubr.bf16.mxu0 %v3255_v24 }
  0xa0   : > { %3081 = vmatprep.mubr.bf16.mxu1 %v3256_v25  ;;  %3120 = vmatpush3.msra.mxu0 %v2315_v14 }
  0xa6   : > { %3034 = vmatmul.mubr.bf16.gmra.mxu0 %v3257_v26 }
  0xa7   : > { %3082 = vmatmul.mubr.bf16.gmra.mxu1 %v3258_v27  ;;  %3037 = vmatprep.mubr.bf16.mxu0 %v3259_v28 }
  0xa8   : > { %3085 = vmatprep.mubr.bf16.mxu1 %v3260_v29 }
  0xae   : > { %3038 = vmatmul.mubr.bf16.gmra.mxu0 %v3261_v30 }
  0xaf   : > { %3086 = vmatmul.mubr.bf16.gmra.mxu1 %v3262_v31  ;;  %3121 = vmatprep.mubr.msk.f32.mxu0 %vm3326_vm0, %v3325_v32 }
  0xf6   : > { %v2915_v41 = vpop.f32.mrf.mxu0 }
  0xf7   : > { %v2963_v42 = vpop.f32.mrf.mxu1 }
  0xf8   : > { %v3647_v43 = vadd.f32 %v2963_v42, %v2915_v41  ;;  %v675_v44 = vpop.f32.mrf.mxu0 }
  0xf9   : > { %v1124_v45 = vpop.f32.mrf.mxu1 }
  0xfa   : > { %v3652_v47 = vadd.f32 %v1124_v45, %v675_v44  ;;  %v2916_v48 = vpop.f32.mrf.mxu0 }
  0xfb   : > { %v2964_v49 = vpop.f32.mrf.mxu1 }
  0xfc   : > { %v3655_v50 = vadd.f32 %v2964_v49, %v2916_v48  ;;  %v3657_v51 = vpop.f32.mrf.mxu0 }
  0xfd   : > { %v3659_v52 = vpop.f32.mrf.mxu1 }
  0xfe   : > { %v2919_v53 = vpop.f32.mrf.mxu0 }
  0xff   : > { %v2967_v54 = vpop.f32.mrf.mxu1 }
 0x100   : > { %v3661_v55 = vadd.f32 %v2967_v54, %v2919_v53  ;;  %v3663_v56 = vpop.f32.mrf.mxu0 }
 0x101   : > { %v3665_v57 = vpop.f32.mrf.mxu1 }
 0x102   : > { %v2920_v58 = vpop.f32.mrf.mxu0 }
 0x103   : > { %v2968_v60 = vpop.f32.mrf.mxu1 }
 0x104   : > { %v3670_v61 = vadd.f32 %v2968_v60, %v2920_v58  ;;  %v3672_v62 = vpop.f32.mrf.mxu0 }
 0x105   : > { %v3678_v0 = vpop.f32.mrf.mxu1 }
 0x106   : > { %v2923_v1 = vpop.f32.mrf.mxu0 }
 0x107   : > { %v2971_v3 = vpop.f32.mrf.mxu1 }
 0x108   : > { %v3684_v4 = vadd.f32 %v2971_v3, %v2923_v1  ;;  %v3686_v5 = vpop.f32.mrf.mxu0 }
 0x109   : > { %v3692_v7 = vpop.f32.mrf.mxu1 }
 0x10a   : > { %v2924_v9 = vpop.f32.mrf.mxu0 }
 0x10b   : > { %v2972_v11 = vpop.f32.mrf.mxu1 }
 0x10c   : > { %v3702_v12 = vadd.f32 %v2972_v11, %v2924_v9  ;;  %v3704_v13 = vpop.f32.mrf.mxu0 }
 0x10d   : > { %v3710_v15 = vpop.f32.mrf.mxu1 }
 0x10e   : > { %v2927_v16 = vpop.f32.mrf.mxu0 }
 0x10f   : > { %v2975_v17 = vpop.f32.mrf.mxu1 }
 0x110   : > { %v3713_v18 = vadd.f32 %v2975_v17, %v2927_v16  ;;  %v3715_v19 = vpop.f32.mrf.mxu0 }
 0x111   : > { %v3717_v20 = vpop.f32.mrf.mxu1 }
 0x112   : > { %v2928_v21 = vpop.f32.mrf.mxu0 }
 0x113   : > { %v2976_v22 = vpop.f32.mrf.mxu1 }
 0x114   : > { %v3719_v23 = vadd.f32 %v2976_v22, %v2928_v21  ;;  %v3721_v24 = vpop.f32.mrf.mxu0 }
 0x115   : > { %v3723_v25 = vpop.f32.mrf.mxu1 }
 0x116   : > { %v2931_v26 = vpop.f32.mrf.mxu0 }
 0x117   : > { %v2979_v27 = vpop.f32.mrf.mxu1 }
 0x118   : > { %v3725_v28 = vadd.f32 %v2979_v27, %v2931_v26  ;;  %v3727_v29 = vpop.f32.mrf.mxu0 }
 0x119   : > { %v3729_v30 = vpop.f32.mrf.mxu1 }
 0x11a   : > { %v2932_v31 = vpop.f32.mrf.mxu0 }
 0x11b   : > { %v2980_v32 = vpop.f32.mrf.mxu1 }
 0x11c   : > { %v3731_v33 = vadd.f32 %v2980_v32, %v2932_v31  ;;  %v3733_v34 = vpop.f32.mrf.mxu0 }
 0x11d   : > { %v3735_v35 = vpop.f32.mrf.mxu1 }
 0x11e   : > { %v2935_v36 = vpop.f32.mrf.mxu0 }
 0x11f   : > { %v2983_v37 = vpop.f32.mrf.mxu1 }
 0x120   : > { %v3737_v38 = vadd.f32 %v2983_v37, %v2935_v36  ;;  %v3739_v39 = vpop.f32.mrf.mxu0  ;;  %v1252_v37 = vadd.f32 %v3659_v52, %v3657_v51 }
 0x121   : > { %v3741_v40 = vpop.f32.mrf.mxu1 }
 0x122   : > { %v2936_v41 = vpop.f32.mrf.mxu0 }
 0x123   : > { %v2984_v42 = vpop.f32.mrf.mxu1 }
 0x124   : > { %v3743_v44 = vadd.f32 %v2984_v42, %v2936_v41  ;;  %v3745_v45 = vpop.f32.mrf.mxu0 }
 0x125   : > { %v3747_v46 = vpop.f32.mrf.mxu1 }
 0x126   : > { %v2939_v48 = vpop.f32.mrf.mxu0 }
 0x127   : > { %v2987_v49 = vpop.f32.mrf.mxu1 }
 0x128   : > { %v3749_v53 = vadd.f32 %v2987_v49, %v2939_v48  ;;  %v3751_v54 = vpop.f32.mrf.mxu0 }
 0x129   : > { %v3753_v58 = vpop.f32.mrf.mxu1 }
 0x12a   : > { %v2940_v59 = vpop.f32.mrf.mxu0 }
 0x12b   : > { %v2988_v60 = vpop.f32.mrf.mxu1 }
 0x12c   : > { %v3755_v63 = vadd.f32 %v2988_v60, %v2940_v59  ;;  %v3757_v1 = vpop.f32.mrf.mxu0 }
 0x12d   : > { %v3759_v2 = vpop.f32.mrf.mxu1 }
 0x12e   : > { %v2943_v3 = vpop.f32.mrf.mxu0 }
 0x12f   : > { %v2991_v6 = vpop.f32.mrf.mxu1 }
 0x130   : > { %v3761_v8 = vadd.f32 %v2991_v6, %v2943_v3  ;;  %v3763_v9 = vpop.f32.mrf.mxu0 }
 0x131   : > { %v3765_v10 = vpop.f32.mrf.mxu1 }
 0x132   : > { %v2944_v11 = vpop.f32.mrf.mxu0 }
 0x133   : > { %v2992_v14 = vpop.f32.mrf.mxu1 }
 0x134   : > { %v3767_v16 = vadd.f32 %v2992_v14, %v2944_v11  ;;  %v3769_v17 = vpop.f32.mrf.mxu0  ;;  %v1255_v11 = vadd.f32 %v3665_v57, %v3663_v56 }
 0x135   : > { %v3771_v21 = vpop.f32.mrf.mxu1 }
 0x136   : > { %v3011_v22 = vpop.f32.mrf.mxu0 }
 0x137   : > { %v3059_v26 = vpop.f32.mrf.mxu1  ;;  %v1702_v41 = vadd.f32 %v3011_v22, %v3647_v43 }
 0x138   : > { %v1573_v27 = vpop.f32.mrf.mxu0 }
 0x139   : > { %v1700_v31 = vadd.f32 %v1573_v27, %v3652_v47  ;;  %v2022_v32 = vpop.f32.mrf.mxu1  ;;  %v3782_v47 = vadd.f32 %v3059_v26, %v1702_v41 }
 0x13a   : > { %v3012_v36 = vpop.f32.mrf.mxu0 }
 0x13b   : > { %v3060_v42 = vpop.f32.mrf.mxu1  ;;  %v3777_v49 = vadd.f32 %v2022_v32, %v1700_v31  ;;  %v1703_v59 = vadd.f32 %v3012_v36, %v3655_v50  ;;  %v1256_v32 = vadd.f32 %v3678_v0, %v3672_v62  ;;  %v2247_v56 = vmax.f32 %v3782_v47, 0.0 }
 0x13c   : > { %v1576_v48 = vpop.f32.mrf.mxu0 }
 0x13d   : > { %v1701_v60 = vadd.f32 %v1576_v48, %v1252_v37  ;;  %v2025_v3 = vpop.f32.mrf.mxu1  ;;  %v2245_v43 = vmax.f32 %v3777_v49, 0.0  ;;  %v3787_v52 = vadd.f32 %v3060_v42, %v1703_v59 }
 0x13e   : > { %v3015_v6 = vpop.f32.mrf.mxu0 }
 0x13f   : > { %v3784_v14 = vadd.f32 %v2025_v3, %v1701_v60  ;;  %v3063_v27 = vpop.f32.mrf.mxu1  ;;  %v1706_v26 = vadd.f32 %v3015_v6, %v3661_v55  ;;  %v2248_v48 = vmax.f32 %v3787_v52, 0.0  ;;  %v1259_v3 = vadd.f32 %v3692_v7, %v3686_v5 }
 0x140   : > { %v1589_v51 = vpop.f32.mrf.mxu0 }
 0x141   : > { %v4249_v22 = vmax.f32 %v3784_v14, 0.0  ;;  %v1704_v31 = vadd.f32 %v1589_v51, %v1255_v11  ;;  %v2038_v50 = vpop.f32.mrf.mxu1  ;;  %v3806_v51 = vadd.f32 %v3063_v27, %v1706_v26  ;;  %v1260_v27 = vadd.f32 %v3710_v15, %v3704_v13 }
 0x142   : > { %v3016_v36 = vpop.f32.mrf.mxu0 }
 0x143   : > { %v2277_v57 = vadd.f32 %v4249_v22, %v2245_v43  ;;  %v3798_v37 = vadd.f32 %v2038_v50, %v1704_v31  ;;  %v3064_v41 = vpop.f32.mrf.mxu1  ;;  %v1707_v62 = vadd.f32 %v3016_v36, %v3670_v61  ;;  %v2251_v26 = vmax.f32 %v3806_v51, 0.0 }
 0x144   : > { %v1592_v42 = vpop.f32.mrf.mxu0 }
 0x145   : > { %v2278_v59 = vadd.f32 %v2277_v57, %v2247_v56  ;;  %v1705_v0 = vadd.f32 %v1592_v42, %v1256_v32  ;;  %v2041_v60 = vpop.f32.mrf.mxu1  ;;  %v4250_v55 = vmax.f32 %v3798_v37, 0.0  ;;  %v3815_v32 = vadd.f32 %v3064_v41, %v1707_v62 }
 0x146   : > { %v3019_v11 = vpop.f32.mrf.mxu0 }
 0x147   : > { %v2279_v6 = vadd.f32 %v2278_v59, %v2248_v48  ;;  %v3811_v31 = vadd.f32 %v2041_v60, %v1705_v0  ;;  %v3067_v50 = vpop.f32.mrf.mxu1  ;;  %v1710_v59 = vadd.f32 %v3019_v11, %v3684_v4  ;;  %v2252_v62 = vmax.f32 %v3815_v32, 0.0  ;;  %v2445_v32 = vld [vmem:[%s3987_s23 + $0x18] sm:$0xff] }
 0x148   : > { %v1605_v22 = vpop.f32.mrf.mxu0 }
 0x149   : > { %v2280_v61 = vadd.f32 %v2279_v6, %v4250_v55  ;;  %v4251_v36 = vmax.f32 %v3811_v31, 0.0  ;;  %v1708_v5 = vadd.f32 %v1605_v22, %v1259_v3  ;;  %v2054_v7 = vpop.f32.mrf.mxu1  ;;  %v1263_v6 = vadd.f32 %v3717_v20, %v3715_v19 }
 0x14a   : > { %v3020_v57 = vpop.f32.mrf.mxu0  ;;  %v4271_v49 = vmax.f32 %v3811_v31, 0.0  ;;  %v2444_v31 = vld [vmem:[%s3987_s23 + $0x10] sm:$0xff] }
 0x14b   : > { %v2281_v42 = vadd.f32 %v2280_v61, %v4251_v36  ;;  %v3824_v0 = vadd.f32 %v2054_v7, %v1708_v5  ;;  %v3068_v60 = vpop.f32.mrf.mxu1  ;;  %v1711_v3 = vadd.f32 %v3020_v57, %v3702_v12  ;;  %v3832_v61 = vadd.f32 %v3067_v50, %v1710_v59 }
 0x14c   : > { %v1608_v41 = vpop.f32.mrf.mxu0  ;;  %v1264_v50 = vadd.f32 %v3723_v25, %v3721_v24 }
 0x14d   : > { %v2282_v22 = vadd.f32 %v2281_v42, %v2251_v26  ;;  %v1709_v13 = vadd.f32 %v1608_v41, %v1260_v27  ;;  %v2057_v15 = vpop.f32.mrf.mxu1  ;;  %v4252_v4 = vmax.f32 %v3824_v0, 0.0  ;;  %v3841_v27 = vadd.f32 %v3068_v60, %v1711_v3 }
 0x14e   : > { %v3023_v55 = vpop.f32.mrf.mxu0  ;;  %v2255_v59 = vmax.f32 %v3832_v61, 0.0 }
 0x14f   : > { %v2283_v11 = vadd.f32 %v2282_v22, %v2252_v62  ;;  %v3837_v5 = vadd.f32 %v2057_v15, %v1709_v13  ;;  %v3071_v7 = vpop.f32.mrf.mxu1  ;;  %v1714_v22 = vadd.f32 %v3023_v55, %v3713_v18  ;;  %v2256_v3 = vmax.f32 %v3841_v27, 0.0 }
 0x150   : > { %v1621_v36 = vpop.f32.mrf.mxu0 }
 0x151   : > { %v2284_v12 = vadd.f32 %v2283_v11, %v4252_v4  ;;  %v4253_v57 = vmax.f32 %v3837_v5, 0.0  ;;  %v1712_v19 = vadd.f32 %v1621_v36, %v1263_v6  ;;  %v2070_v20 = vpop.f32.mrf.mxu1  ;;  %v1267_v11 = vadd.f32 %v3729_v30, %v3727_v29 }
 0x152   : > { %v3024_v42 = vpop.f32.mrf.mxu0 }
 0x153   : > { %v2285_v41 = vadd.f32 %v2284_v12, %v4253_v57  ;;  %v3850_v13 = vadd.f32 %v2070_v20, %v1712_v19  ;;  %v3072_v15 = vpop.f32.mrf.mxu1  ;;  %v1715_v6 = vadd.f32 %v3024_v42, %v3719_v23  ;;  %v3858_v12 = vadd.f32 %v3071_v7, %v1714_v22 }
 0x154   : > { %v1624_v60 = vpop.f32.mrf.mxu0  ;;  %v1268_v7 = vadd.f32 %v3735_v35, %v3733_v34 }
 0x155   : > { %v2286_v36 = vadd.f32 %v2285_v41, %v2255_v59  ;;  %v1713_v24 = vadd.f32 %v1624_v60, %v1264_v50  ;;  %v2073_v25 = vpop.f32.mrf.mxu1  ;;  %v4254_v18 = vmax.f32 %v3850_v13, 0.0  ;;  %v3867_v50 = vadd.f32 %v3072_v15, %v1715_v6 }
 0x156   : > { %v3027_v4 = vpop.f32.mrf.mxu0  ;;  %v2259_v22 = vmax.f32 %v3858_v12, 0.0 }
 0x157   : > { %v2287_v55 = vadd.f32 %v2286_v36, %v2256_v3  ;;  %v3863_v19 = vadd.f32 %v2073_v25, %v1713_v24  ;;  %v3075_v20 = vpop.f32.mrf.mxu1  ;;  %v1718_v36 = vadd.f32 %v3027_v4, %v3725_v28  ;;  %v2260_v6 = vmax.f32 %v3867_v50, 0.0 }
 0x158   : > { %v1637_v57 = vpop.f32.mrf.mxu0 }
 0x159   : > { %v2288_v23 = vadd.f32 %v2287_v55, %v4254_v18  ;;  %v4255_v42 = vmax.f32 %v3863_v19, 0.0  ;;  %v1716_v29 = vadd.f32 %v1637_v57, %v1267_v11  ;;  %v2086_v30 = vpop.f32.mrf.mxu1  ;;  %v1271_v55 = vadd.f32 %v3741_v40, %v3739_v39 }
 0x15a   : > { %v3028_v41 = vpop.f32.mrf.mxu0 }
 0x15b   : > { %v2289_v60 = vadd.f32 %v2288_v23, %v4255_v42  ;;  %v3876_v24 = vadd.f32 %v2086_v30, %v1716_v29  ;;  %v3076_v25 = vpop.f32.mrf.mxu1  ;;  %v1719_v11 = vadd.f32 %v3028_v41, %v3731_v33  ;;  %v3884_v23 = vadd.f32 %v3075_v20, %v1718_v36 }
 0x15c   : > { %v1640_v15 = vpop.f32.mrf.mxu0  ;;  %v1272_v20 = vadd.f32 %v3747_v46, %v3745_v45 }
 0x15d   : > { %v2290_v57 = vadd.f32 %v2289_v60, %v2259_v22  ;;  %v1717_v34 = vadd.f32 %v1640_v15, %v1268_v7  ;;  %v2089_v35 = vpop.f32.mrf.mxu1  ;;  %v4256_v28 = vmax.f32 %v3876_v24, 0.0  ;;  %v3893_v7 = vadd.f32 %v3076_v25, %v1719_v11 }
 0x15e   : > { %v3031_v18 = vpop.f32.mrf.mxu0  ;;  %v2263_v36 = vmax.f32 %v3884_v23, 0.0 }
 0x15f   : > { %v2291_v4 = vadd.f32 %v2290_v57, %v2260_v6  ;;  %v3889_v29 = vadd.f32 %v2089_v35, %v1717_v34  ;;  %v3079_v30 = vpop.f32.mrf.mxu1  ;;  %v1722_v57 = vadd.f32 %v3031_v18, %v3737_v38  ;;  %v2264_v11 = vmax.f32 %v3893_v7, 0.0 }
 0x160   : > { %v1653_v42 = vpop.f32.mrf.mxu0 }
 0x161   : > { %v2292_v33 = vadd.f32 %v2291_v4, %v4256_v28  ;;  %v4257_v41 = vmax.f32 %v3889_v29, 0.0  ;;  %v1720_v39 = vadd.f32 %v1653_v42, %v1271_v55  ;;  %v2102_v40 = vpop.f32.mrf.mxu1  ;;  %v1275_v4 = vadd.f32 %v3753_v58, %v3751_v54 }
 0x162   : > { %v3032_v60 = vpop.f32.mrf.mxu0  ;;  %v4277_v12 = vmax.f32 %v3889_v29, 0.0 }
 0x163   : > { %v2293_v15 = vadd.f32 %v2292_v33, %v4257_v41  ;;  %v3902_v34 = vadd.f32 %v2102_v40, %v1720_v39  ;;  %v3080_v35 = vpop.f32.mrf.mxu1  ;;  %v1723_v55 = vadd.f32 %v3032_v60, %v3743_v44  ;;  %v3910_v33 = vadd.f32 %v3079_v30, %v1722_v57 }
 0x164   : > { %v1656_v25 = vpop.f32.mrf.mxu0  ;;  %v1276_v30 = vadd.f32 %v3759_v2, %v3757_v1 }
 0x165   : > { %v2294_v42 = vadd.f32 %v2293_v15, %v2263_v36  ;;  %v1721_v45 = vadd.f32 %v1656_v25, %v1272_v20  ;;  %v2105_v46 = vpop.f32.mrf.mxu1  ;;  %v4258_v38 = vmax.f32 %v3902_v34, 0.0  ;;  %v3919_v20 = vadd.f32 %v3080_v35, %v1723_v55 }
 0x166   : > { %v3035_v28 = vpop.f32.mrf.mxu0  ;;  %v2267_v57 = vmax.f32 %v3910_v33, 0.0 }
 0x167   : > { %v2295_v18 = vadd.f32 %v2294_v42, %v2264_v11  ;;  %v3915_v39 = vadd.f32 %v2105_v46, %v1721_v45  ;;  %v3083_v40 = vpop.f32.mrf.mxu1  ;;  %v1726_v42 = vadd.f32 %v3035_v28, %v3749_v53  ;;  %v2268_v55 = vmax.f32 %v3919_v20, 0.0 }
 0x168   : > { %v1669_v41 = vpop.f32.mrf.mxu0 }
 0x169   : > { %v2296_v44 = vadd.f32 %v2295_v18, %v4258_v38  ;;  %v4259_v60 = vmax.f32 %v3915_v39, 0.0  ;;  %v1724_v54 = vadd.f32 %v1669_v41, %v1275_v4  ;;  %v2118_v58 = vpop.f32.mrf.mxu1  ;;  %v1279_v18 = vadd.f32 %v3765_v10, %v3763_v9 }
 0x16a   : > { %v3036_v15 = vpop.f32.mrf.mxu0  ;;  %v4279_v29 = vmax.f32 %v3915_v39, 0.0 }
 0x16b   : > { %v2297_v25 = vadd.f32 %v2296_v44, %v4259_v60  ;;  %v3928_v45 = vadd.f32 %v2118_v58, %v1724_v54  ;;  %v3084_v46 = vpop.f32.mrf.mxu1  ;;  %v1727_v4 = vadd.f32 %v3036_v15, %v3755_v63  ;;  %v3936_v44 = vadd.f32 %v3083_v40, %v1726_v42 }
 0x16c   : > { %v1672_v35 = vpop.f32.mrf.mxu0  ;;  %v1280_v40 = vadd.f32 %v3771_v21, %v3769_v17 }
 0x16d   : > { %v2298_v41 = vadd.f32 %v2297_v25, %v2267_v57  ;;  %v1725_v1 = vadd.f32 %v1672_v35, %v1276_v30  ;;  %v2121_v2 = vpop.f32.mrf.mxu1  ;;  %v4260_v53 = vmax.f32 %v3928_v45, 0.0  ;;  %v3945_v30 = vadd.f32 %v3084_v46, %v1727_v4 }
 0x16e   : > { %v3039_v38 = vpop.f32.mrf.mxu0  ;;  %v2271_v42 = vmax.f32 %v3936_v44, 0.0 }
 0x16f   : > { %v2299_v28 = vadd.f32 %v2298_v41, %v2268_v55  ;;  %v3941_v54 = vadd.f32 %v2121_v2, %v1725_v1  ;;  %v3087_v58 = vpop.f32.mrf.mxu1  ;;  %v1730_v41 = vadd.f32 %v3039_v38, %v3761_v8  ;;  %v2272_v4 = vmax.f32 %v3945_v30, 0.0 }
 0x170   : > { %v1685_v60 = vpop.f32.mrf.mxu0 }
 0x171   : > { %v2300_v63 = vadd.f32 %v2299_v28, %v4260_v53  ;;  %v2270_v15 = vmax.f32 %v3941_v54, 0.0  ;;  %v1728_v9 = vadd.f32 %v1685_v60, %v1279_v18  ;;  %v2134_v10 = vpop.f32.mrf.mxu1  ;;  %v3960_v28 = vadd.f32 %v3087_v58, %v1730_v41 }
 0x172   : > { %v3040_v25 = vpop.f32.mrf.mxu0 }
 0x173   : > { %v2301_v35 = vadd.f32 %v2300_v63, %v2270_v15  ;;  %v3954_v1 = vadd.f32 %v2134_v10, %v1728_v9  ;;  %v3088_v2 = vpop.f32.mrf.mxu1  ;;  %v1731_v18 = vadd.f32 %v3040_v25, %v3767_v16  ;;  %v4262_v16 = vmax.f32 %v3960_v28, 0.0 }
 0x174   : > { %v1688_v46 = vpop.f32.mrf.mxu0  ;;  %v4285_v44 = vmax.f32 %v3960_v28, 0.0  ;;  %v2465_v28 = vld [vmem:[%s3987_s23 + $0xb8] sm:$0xff] }
 0x175   : > { %v2302_v60 = vadd.f32 %v2301_v35, %v2271_v42  ;;  %v1729_v17 = vadd.f32 %v1688_v46, %v1280_v40  ;;  %v2137_v21 = vpop.f32.mrf.mxu1  ;;  %v4263_v53 = vmax.f32 %v3954_v1, 0.0  ;;  %v3969_v9 = vadd.f32 %v3088_v2, %v1731_v18 }
 0x177   : > { %v2303_v8 = vadd.f32 %v2302_v60, %v2272_v4  ;;  %v3965_v38 = vadd.f32 %v2137_v21, %v1729_v17  ;;  %v4264_v40 = vmax.f32 %v3969_v9, 0.0  ;;  %v4287_v30 = vmax.f32 %v3969_v9, 0.0 }
 0x179   : > { %v2304_v63 = vadd.f32 %v2303_v8, %v4263_v53  ;;  %v4261_v10 = vmax.f32 %v3965_v38, 0.0  ;;  %v2331_v8 = vld [vmem:[%s4247_s7] sm:$0x1]  ;;  %v4283_v54 = vmax.f32 %v3965_v38, 0.0 }
 0x17b   : > { %v2305_v58 = vadd.f32 %v2304_v63, %v4261_v10  ;;  %v2406_v63 = vlaneseq }
 0x17d   : > { %v2306_v25 = vadd.f32 %v2305_v58, %v4262_v16 }
 0x17f   : > { %v2307_v35 = vadd.f32 %v2306_v25, %v4264_v40  ;;  %v2407_v25 = vshrl.u32 %v2406_v63, 7 }
 0x181   : > { %v2308_v41 = vrot.slane %v2307_v35, 4 }
 0x183   : > { %v2309_v46 = vadd.f32 %v2308_v41, %v2307_v35  ;;  %v2408_v41 = vsub.s32 0, %v2407_v25 }
 0x185   : > { %v2310_v60 = vrot.slane %v2309_v46, 2 }
 0x187   : > { %v2311_v2 = vadd.f32 %v2310_v60, %v2309_v46 }
 0x189   : > { %v2312_v18 = vrot.slane %v2311_v2, 1 }
 0x18b   : > { %v2313_v17 = vadd.f32 %v2312_v18, %v2311_v2  ;;  %v4270_v18 = vmax.f32 %v3798_v37, 0.0 }
 0x18d   : > { %v2314_v21 = vmul.f32 0.00390625, %v2313_v17 }
 0x18f   : > { %3122 = vmatmul.mubr.f32.vlgmr.msra.gmra.mxu0 %v2314_v21 }
 0x24f   : > { %v2398_v10 = vpop.f32.mrf.mxu0 }
 0x250   : > { %v2399_v58 = vadd.f32 %v2398_v10, %v2331_v8 }
 0x251   : > { %v3123_v16 = vpop.f32.mrf.mxu0 }
 0x252   : > { %v2402_v53 = vadd.f32 3.0, %v2399_v58  ;;  %v4269_v16 = vmax.f32 %v3784_v14, 0.0  ;;  %v4276_v58 = vmax.f32 %v3876_v24, 0.0  ;;  %v2453_v24 = vld [vmem:[%s3987_s23 + $0x58] sm:$0xff] }
 0x254   : > { %v2403_v40 = vmax.f32 %v2402_v53, 0.0 }
 0x256   : > { %v2404_v35 = vmin.f32 %v2403_v40, 6.0 }
 0x258   : > { %v2405_v46 = vmul.f32 0.16666667, %v2404_v35  ;;  %v2452_v35 = vld [vmem:[%s3987_s23 + $0x50] sm:$0xff] }
 0x25a   : > { %v2409_v60 = vrot.slane %v2405_v46, %v2408_v41  ;;  %v2450_v41 = vld [vmem:[%s3987_s23 + $0x40] sm:$0xff]  ;;  %v4278_v46 = vmax.f32 %v3902_v34, 0.0 }
 0x25b   : > { %v2454_v34 = vld [vmem:[%s3987_s23 + $0x60] sm:$0xff] }
 0x25c   : > { %v2410_v10 = vmul.f32 %v2409_v60, %v2245_v43  ;;  %v2411_v53 = vmul.f32 %v2409_v60, %v4269_v16  ;;  %v2412_v40 = vmul.f32 %v2409_v60, %v2247_v56  ;;  %v2413_v2 = vmul.f32 %v2409_v60, %v2248_v48 }
 0x25d   : > { %v2414_v17 = vmul.f32 %v2409_v60, %v4270_v18  ;;  %v2415_v21 = vmul.f32 %v2409_v60, %v4271_v49  ;;  %v2416_v14 = vmul.f32 %v2409_v60, %v2251_v26  ;;  %v2417_v47 = vmul.f32 %v2409_v60, %v2252_v62  ;;  %v2442_v26 = vld [vmem:[%s3987_s23] sm:$0xff]  ;;  %v2443_v62 = vld [vmem:[%s3987_s23 + $0x8] sm:$0xff] }
 0x25e   : > { %v4272_v43 = vmax.f32 %v3824_v0, 0.0  ;;  %v4273_v56 = vmax.f32 %v3837_v5, 0.0  ;;  %v2420_v48 = vmul.f32 %v2409_v60, %v2255_v59  ;;  %v2421_v51 = vmul.f32 %v2409_v60, %v2256_v3  ;;  %v2448_v59 = vld [vmem:[%s3987_s23 + $0x30] sm:$0xff]  ;;  %v2449_v3 = vld [vmem:[%s3987_s23 + $0x38] sm:$0xff] }
 0x25f   : > { %v4274_v0 = vmax.f32 %v3850_v13, 0.0  ;;  %v4275_v5 = vmax.f32 %v3863_v19, 0.0  ;;  %v4028_v61 = vmul.f32 %v2409_v60, %v2259_v22  ;;  %v4032_v27 = vmul.f32 %v2409_v60, %v2260_v6  ;;  %v2446_v13 = vld [vmem:[%s3987_s23 + $0x20] sm:$0xff]  ;;  %v2447_v19 = vld [vmem:[%s3987_s23 + $0x28] sm:$0xff] }
 0x260   : > { %v2418_v52 = vmul.f32 %v2409_v60, %v4272_v43  ;;  %v2419_v37 = vmul.f32 %v2409_v60, %v4273_v56  ;;  %v4044_v25 = vmul.f32 %v2409_v60, %v4276_v58  ;;  %v4048_v22 = vmul.f32 %v2409_v60, %v4277_v12  ;;  %v2461_v58 = vld [vmem:[%s3987_s23 + $0x98] sm:$0xff] }
 0x261   : > { %v4020_v8 = vmul.f32 %v2409_v60, %v4274_v0  ;;  %v4024_v63 = vmul.f32 %v2409_v60, %v4275_v5  ;;  %v4052_v50 = vmul.f32 %v2409_v60, %v2263_v36  ;;  %v4056_v6 = vmul.f32 %v2409_v60, %v2264_v11  ;;  %v2451_v36 = vld [vmem:[%s3987_s23 + $0x48] sm:$0xff]  ;;  %v2456_v11 = vld [vmem:[%s3987_s23 + $0x70] sm:$0xff]  ;;  %v2458_v5 = vld [vmem:[%s3987_s23 + $0x80] sm:$0xff] }
 0x262   : > { %v4063_v16 = vmul.f32 %v2409_v60, %v4278_v46  ;;  %v4067_v18 = vmul.f32 %v2409_v60, %v4279_v29  ;;  %v4071_v23 = vmul.f32 %v2409_v60, %v2267_v57  ;;  %v4075_v7 = vmul.f32 %v2409_v60, %v2268_v55  ;;  %v2457_v57 = vld [vmem:[%s3987_s23 + $0x78] sm:$0xff]  ;;  %v2455_v55 = vld [vmem:[%s3987_s23 + $0x68] sm:$0xff] }
 0x263   : > { %v4280_v49 = vmax.f32 %v3928_v45, 0.0  ;;  %v4086_v39 = vmul.f32 %v2409_v60, %v2270_v15  ;;  %v4090_v33 = vmul.f32 %v2409_v60, %v2271_v42  ;;  %v4094_v20 = vmul.f32 %v2409_v60, %v2272_v4  ;;  %v2460_v45 = vld [vmem:[%s3987_s23 + $0x90] sm:$0xff] }
 0x264   : > { %v4281_v56 = vmax.f32 %v3954_v1, 0.0  ;;  %v4105_v15 = vmul.f32 %v2409_v60, %v4283_v54  ;;  %v4109_v42 = vmul.f32 %v2409_v60, %v4285_v44  ;;  %v4113_v4 = vmul.f32 %v2409_v60, %v4287_v30  ;;  %v2459_v1 = vld [vmem:[%s3987_s23 + $0x88] sm:$0xff] }
 0x265   : > { %v4082_v43 = vmul.f32 %v2409_v60, %v4280_v49  ;;  %v2474_v12 = vadd.f32 %v2442_v26, %v2410_v10  ;;  %v2475_v46 = vadd.f32 %v2443_v62, %v2411_v53  ;;  %v2476_v29 = vadd.f32 %v2444_v31, %v2412_v40  ;;  %v2464_v49 = vld [vmem:[%s3987_s23 + $0xb0] sm:$0xff]  ;;  %v2463_v30 = vld [vmem:[%s3987_s23 + $0xa8] sm:$0xff]  ;;  %v2469_v40 = vld [vmem:[%s3987_s23 + $0xd8] sm:$0xff] }
 0x266   : > { %v4101_v0 = vmul.f32 %v2409_v60, %v4281_v56  ;;  %4284 = vst [vmem:[#allocation7_spill] sm:$0xff] %v4105_v15  ;;  %4286 = vst [vmem:[#allocation8_spill] sm:$0xff] %v4109_v42  ;;  %v2477_v38 = vadd.f32 %v2445_v32, %v2413_v2  ;;  %v2462_v56 = vld [vmem:[%s3987_s23 + $0xa0] sm:$0xff]  ;;  %v2478_v54 = vadd.f32 %v2446_v13, %v2414_v17  ;;  %v2467_v2 = vld [vmem:[%s3987_s23 + $0xc8] sm:$0xff] }
 0x267   : > { %4288 = vst [vmem:[#allocation9_spill] sm:$0xff] %v4113_v4  ;;  %v2479_v44 = vadd.f32 %v2447_v19, %v2415_v21  ;;  %v2480_v9 = vadd.f32 %v2448_v59, %v2416_v14  ;;  %v2481_v60 = vadd.f32 %v2449_v3, %v2417_v47  ;;  %v2468_v4 = vld [vmem:[%s3987_s23 + $0xd0] sm:$0xff]  ;;  %v2466_v42 = vld [vmem:[%s3987_s23 + $0xc0] sm:$0xff]  ;;  %v2482_v15 = vadd.f32 %v2450_v41, %v2418_v52 }
 0x268   : > { %4282 = vst [vmem:[#allocation6_spill] sm:$0xff] %v4101_v0  ;;  %v2483_v0 = vadd.f32 %v2451_v36, %v2419_v37  ;;  %v2484_v10 = vadd.f32 %v2452_v35, %v2420_v48  ;;  %v2485_v53 = vadd.f32 %v2453_v24, %v2421_v51  ;;  %2506 = vst [vmem:[%s4125_s21] sm:$0xff] %v2474_v12  ;;  %v2472_v17 = vld [vmem:[%s3987_s23 + $0xf0] sm:$0xff]  ;;  %v2470_v37 = vld [vmem:[%s3987_s23 + $0xe0] sm:$0xff] }
 0x269   : > { %2507 = vst [vmem:[%s4125_s21 + $0x8] sm:$0xff] %v2475_v46  ;;  %2508 = vst [vmem:[%s4125_s21 + $0x10] sm:$0xff] %v2476_v29  ;;  %v2486_v21 = vadd.f32 %v2454_v34, %v4020_v8  ;;  %v2487_v14 = vadd.f32 %v2455_v55, %v4024_v63  ;;  %v2488_v47 = vadd.f32 %v2456_v11, %v4028_v61  ;;  %v2473_v48 = vld [vmem:[%s3987_s23 + $0xf8] sm:$0xff]  ;;  %v2471_v51 = vld [vmem:[%s3987_s23 + $0xe8] sm:$0xff] }
 0x26a   : > { %2509 = vst [vmem:[%s4125_s21 + $0x18] sm:$0xff] %v2477_v38  ;;  %v2489_v52 = vadd.f32 %v2457_v57, %v4032_v27  ;;  %2510 = vst [vmem:[%s4125_s21 + $0x20] sm:$0xff] %v2478_v54  ;;  %v2490_v31 = vadd.f32 %v2458_v5, %v4044_v25  ;;  %v2491_v26 = vadd.f32 %v2459_v1, %v4048_v22 }
 0x26b   : > { %2511 = vst [vmem:[%s4125_s21 + $0x28] sm:$0xff] %v2479_v44  ;;  %2512 = vst [vmem:[%s4125_s21 + $0x30] sm:$0xff] %v2480_v9  ;;  %v2492_v32 = vadd.f32 %v2460_v45, %v4052_v50  ;;  %v2493_v62 = vadd.f32 %v2461_v58, %v4056_v6  ;;  %v2494_v8 = vadd.f32 %v2462_v56, %v4063_v16 }
 0x26c   : > { %2513 = vst [vmem:[%s4125_s21 + $0x38] sm:$0xff] %v2481_v60  ;;  %2514 = vst [vmem:[%s4125_s21 + $0x40] sm:$0xff] %v2482_v15  ;;  %v2495_v63 = vadd.f32 %v2463_v30, %v4067_v18  ;;  %v2496_v61 = vadd.f32 %v2464_v49, %v4071_v23  ;;  %v2497_v27 = vadd.f32 %v2465_v28, %v4075_v7 }
 0x26d   : > { %2515 = vst [vmem:[%s4125_s21 + $0x48] sm:$0xff] %v2483_v0  ;;  %2516 = vst [vmem:[%s4125_s21 + $0x50] sm:$0xff] %v2484_v10  ;;  %v2498_v59 = vadd.f32 %v2466_v42, %v4082_v43  ;;  %v2499_v13 = vadd.f32 %v2467_v2, %v4086_v39  ;;  %v2500_v3 = vadd.f32 %v2468_v4, %v4090_v33  ;;  %v4290_v50 = vld [vmem:[#allocation7_spill] sm:$0xff]  ;;  %v4291_v35 = vld [vmem:[#allocation8_spill] sm:$0xff] }
 0x26e   : > { %2517 = vst [vmem:[%s4125_s21 + $0x58] sm:$0xff] %v2485_v53  ;;  %2518 = vst [vmem:[%s4125_s21 + $0x60] sm:$0xff] %v2486_v21  ;;  %v2501_v19 = vadd.f32 %v2469_v40, %v4094_v20  ;;  %v2503_v6 = vadd.f32 %v2471_v51, %v4290_v50  ;;  %v2504_v41 = vadd.f32 %v2472_v17, %v4291_v35  ;;  %v4292_v24 = vld [vmem:[#allocation9_spill] sm:$0xff] }
 0x26f   : > { %2519 = vst [vmem:[%s4125_s21 + $0x68] sm:$0xff] %v2487_v14  ;;  %2520 = vst [vmem:[%s4125_s21 + $0x70] sm:$0xff] %v2488_v47  ;;  %v4289_v25 = vld [vmem:[#allocation6_spill] sm:$0xff]  ;;  %v2505_v16 = vadd.f32 %v2473_v48, %v4292_v24 }
 0x270   : > { %2521 = vst [vmem:[%s4125_s21 + $0x78] sm:$0xff] %v2489_v52  ;;  %2522 = vst [vmem:[%s4125_s21 + $0x80] sm:$0xff] %v2490_v31  ;;  %v2502_v22 = vadd.f32 %v2470_v37, %v4289_v25 }
 0x271   : > { %2523 = vst [vmem:[%s4125_s21 + $0x88] sm:$0xff] %v2491_v26  ;;  %2524 = vst [vmem:[%s4125_s21 + $0x90] sm:$0xff] %v2492_v32 }
 0x272   : > { %2525 = vst [vmem:[%s4125_s21 + $0x98] sm:$0xff] %v2493_v62  ;;  %2526 = vst [vmem:[%s4125_s21 + $0xa0] sm:$0xff] %v2494_v8 }
 0x273   : > { %2527 = vst [vmem:[%s4125_s21 + $0xa8] sm:$0xff] %v2495_v63  ;;  %2528 = vst [vmem:[%s4125_s21 + $0xb0] sm:$0xff] %v2496_v61 }
 0x274   : > { %2529 = vst [vmem:[%s4125_s21 + $0xb8] sm:$0xff] %v2497_v27  ;;  %2530 = vst [vmem:[%s4125_s21 + $0xc0] sm:$0xff] %v2498_v59 }
 0x275   : > { %2531 = vst [vmem:[%s4125_s21 + $0xc8] sm:$0xff] %v2499_v13  ;;  %2532 = vst [vmem:[%s4125_s21 + $0xd0] sm:$0xff] %v2500_v3 }
 0x276   : > { %2533 = vst [vmem:[%s4125_s21 + $0xd8] sm:$0xff] %v2501_v19  ;;  %2534 = vst [vmem:[%s4125_s21 + $0xe0] sm:$0xff] %v2502_v22 }
 0x277   : > { %2535 = vst [vmem:[%s4125_s21 + $0xe8] sm:$0xff] %v2503_v6  ;;  %2536 = vst [vmem:[%s4125_s21 + $0xf0] sm:$0xff] %v2504_v41 }
 0x278   : > { %2537 = vst [vmem:[%s4125_s21 + $0xf8] sm:$0xff] %v2505_v16 }
 0x279   : > { %3276 = shalt.err (!%p3273_p3)
}
 0x27a   : > { %s3277_s20 = scalar_lea.hbm %s4176_s26, 4096  ;;  %s3281_s24 = scalar_lea.hbm %s4248_s8, 8192 }
 0x27b   : > { %p3278_p4 = scmp.ne.s32.totalorder %s4176_s26, %s3277_s20  ;;  %p3282_p9 = scmp.lt.s32.totalorder %s4176_s26, %s4248_s8 }
 0x27c   : > { %p3283_p10 = scmp.lt.s32.totalorder %s3281_s24, %s3277_s20 }
 0x27d   : > { %p3279_p7 = pnand %p3278_p4, %p3413_p5 }
 0x27e   : > { %p3284_p11 = por %p3283_p10, %p3282_p9 }
 0x27f   : > { %p3280_p8 = pneg %p3279_p7 }
 0x281   : > { %p3285_p12 = pnand %p3284_p11, %p3280_p8 }
 0x283   : > { %3288 = shalt.err (!%p3285_p12)
}
 0x284   : > { %s3328_s25 = smov 128   ;;  %s3329_s0 = smov 8  }
 0x285   : > { %3124 = dma.vmem_to_hbm [thread:$0]  (%p3413_p5), %s4180_s22, 4096, %s4176_s26, %s4200_s9, %s3328_s25, %s3328_s25, %s3329_s0  }
 0x286 PF: > { %p3130_p13 = scmp.ge.s32.totalorder %s3323_s30, 2  ;;  %s2567_s10 = sand.u32 1, %s3311_s27  }
 0x287   : > { %s2568_s17 = scalar_lea.sflag [#allocation4], %s2567_s10 }
 0x288   : > { %p3127_p0 = pnand %p3130_p13, %p3417_p6 }
 0x28a   : > { %p3128_p1 = pneg %p3127_p0 }
 0x28c   : > { %3306 = dma.done.wait (%p3128_p1), %s2568_s17, 4096  }
 0x28d   : > { %3308 = vsyncadd (%p3128_p1), %s2568_s17, 4294963200  ;;  %p18_p2 = scmp.ge.s32.totalorder %s3400_s11, 4   ;;  %s4293_s27 = smov %s3315_s28 }
 0x28e   : > { %s4294_s28 = smov %s3319_s29  ;;  %s4295_s29 = smov %s3411_s14 }
 0x28f   : > { %s4296_s30 = smov %s3400_s11  ;;  %20 = sbr.rel (!%p18_p2) target bundleno = 5 (0x5), region = 99 }
 0x294   :  { %2573 = vsyncpa [#allocation4], 1 }
 0x295   :  { %2575 = vsyncpa [#allocation4 + $0x1], 1 }

// kernel: osa_module_forward.4
= control target key start
LH: loop header
LB: loop body
LE: loop exit
PB: predicated region body
PF: predicated region fallthrough
CT: control target
= control target key end

     0   :  { %s5175_s9 = smov 0   ;;  %s6101_s0 = inlined_call_operand.vmem [shape: bf16[2,16,16,128], index: 0, kind: input, shape index: {}]   ;;  %s6102_s1 = inlined_call_operand.vmem [shape: bf16[9,128,128], index: 1, kind: input, shape index: {}]   ;;  %s6103_s2 = inlined_call_operand.vmem [shape: bf16[2,16,16,128], index: 2, kind: output, shape index: {}]  }
   0x1 LB: > { %s3937_s10 = sadd.s32 4294967295, %s5156_s9   ;;  %p3941_p0 = scmp.ge.s32.totalorder %s5156_s9, 1  ;;  %s5156_s9 = sphi %s5175_s9, %s12_s9  }
   0x2   : > { %p112_p1 = scmp.lt.s32.totalorder %s5156_s9, 3 }
   0x4   : > { %p113_p2 = pnand %p3941_p0, %p112_p1 }
   0x6   : > { %116 = sbr.rel (%p113_p2) target bundleno = 539 (0x21b), region = 28 }
   0xb   : > { %v5061_v0 = vld [vmem:[%s6102_s1 + $0x38] sm:$0xff]   ;;  %v5189_v1 = vld [vmem:[%s6102_s1 + $0x30] sm:$0xff]   ;;  %v5158_v2 = vmov 0.0   ;;  %p134_p3 = scmp.lt.s32.totalorder %s3937_s10, 1  ;;  %v5063_v3 = vld [vmem:[%s6102_s1 + $0x28] sm:$0xff]   ;;  %v5159_v4 = vmov 0.0|0.0  }
   0xc   : > { %145 = vst [vmem:[#allocation2] sm:$0xff] %v5158_v2  ;;  %146 = vst [vmem:[#allocation2 + $0x8] sm:$0xff] %v5158_v2  ;;  %4604 = vmatprep.subr.bf16.mxu0 %v5061_v0  ;;  %5036 = vmatprep.subr.bf16.mxu1 %v5061_v0  ;;  %v5064_v5 = vld [vmem:[%s6102_s1 + $0x20] sm:$0xff]   ;;  %v5065_v15 = vld [vmem:[%s6102_s1 + $0x18] sm:$0xff]  }
   0xd   : > { %147 = vst [vmem:[#allocation2 + $0x10] sm:$0x3] %v5158_v2  ;;  %148 = vst [vmem:[#allocation2 + $0x18] sm:$0xff] %v5158_v2  ;;  %4605 = vmatpush3.bf16.msra.mxu0 %v5061_v0  ;;  %5044 = vmatpush3.bf16.msra.mxu1 %v5061_v0  ;;  %s6137_s10 = smov (!%p134_p3, %s3937_s10), 1  ;;  %v5066_v28 = vld [vmem:[%s6102_s1 + $0x10] sm:$0xff]   ;;  %v5067_v32 = vld [vmem:[%s6102_s1 + $0x8] sm:$0xff]  }
   0xe   : > { %149 = vst [vmem:[#allocation2 + $0x20] sm:$0xff] %v5158_v2  ;;  %150 = vst [vmem:[#allocation2 + $0x28] sm:$0x3] %v5158_v2  ;;  %4606 = vmatprep.subr.bf16.mxu0 %v5189_v1  ;;  %5037 = vmatprep.subr.bf16.mxu1 %v5189_v1  ;;  %s4180_s17 = sshll.u32 %s6137_s10, 7  ;;  %v5068_v45 = vld [vmem:[%s6102_s1] sm:$0xff]   ;;  %v5069_v50 = vld [vmem:[%s6102_s1 + $0x78] sm:$0xff]  }
   0xf   : > { %151 = vst [vmem:[#allocation2 + $0x30] sm:$0xff] %v5158_v2  ;;  %152 = vst [vmem:[#allocation2 + $0x38] sm:$0xff] %v5158_v2  ;;  %4620 = vmatprep.mubr.bf16.mxu0 %v5159_v4  ;;  %s5208_s20 = scalar_lea.vmem %s6101_s0, %s4180_s17  ;;  %v5070_v51 = vld [vmem:[%s6102_s1 + $0xb8] sm:$0xff]   ;;  %s6030_s13 = scalar_lea.vmem %s6103_s2, %s4180_s17 }
  0x10   : > { %153 = vst [vmem:[#allocation2 + $0x40] sm:$0x3] %v5158_v2  ;;  %154 = vst [vmem:[#allocation2 + $0x48] sm:$0xff] %v5158_v2  ;;  %v4364_v6 = vld [vmem:[%s5208_s20 + $0x38] sm:$0xff]   ;;  %v4215_v7 = vld [vmem:[%s5208_s20] sm:$0xff]  }
  0x11   : > { %155 = vst [vmem:[#allocation2 + $0x50] sm:$0xff] %v5158_v2  ;;  %156 = vst [vmem:[#allocation2 + $0x58] sm:$0x3] %v5158_v2  ;;  %4607 = vmatpush3.bf16.msra.mxu0 %v5189_v1  ;;  %5045 = vmatpush3.bf16.msra.mxu1 %v5189_v1  ;;  %v4365_v8 = vld [vmem:[%s5208_s20 + $0x40] sm:$0xff]   ;;  %v4244_v9 = vunpack.c.l.bf16 %v4364_v6  ;;  %v4245_v10 = vunpack.c.h.bf16 %v4364_v6  ;;  %v4216_v11 = vunpack.c.l.bf16 %v4215_v7  ;;  %v4217_v12 = vunpack.c.h.bf16 %v4215_v7  ;;  %v4358_v16 = vld [vmem:[%s5208_s20 + $0x8] sm:$0xff]  }
  0x12   : > { %157 = vst [vmem:[#allocation2 + $0x60] sm:$0xff] %v5158_v2  ;;  %158 = vst [vmem:[#allocation2 + $0x68] sm:$0xff] %v5158_v2  ;;  %4608 = vmatprep.subr.bf16.mxu0 %v5063_v3  ;;  %5038 = vmatprep.subr.bf16.mxu1 %v5063_v3  ;;  %v4248_v13 = vunpack.c.l.bf16 %v4365_v8  ;;  %v4249_v14 = vunpack.c.h.bf16 %v4365_v8  ;;  %v4366_v17 = vld [vmem:[%s5208_s20 + $0x48] sm:$0xff]   ;;  %v4359_v18 = vld [vmem:[%s5208_s20 + $0x10] sm:$0xff]   ;;  %v4220_v19 = vunpack.c.l.bf16 %v4358_v16  ;;  %v4221_v20 = vunpack.c.h.bf16 %v4358_v16 }
  0x13   : > { %159 = vst [vmem:[#allocation2 + $0x70] sm:$0x3] %v5158_v2  ;;  %160 = vst [vmem:[#allocation2 + $0x78] sm:$0xff] %v5158_v2  ;;  %v4252_v21 = vunpack.c.l.bf16 %v4366_v17  ;;  %v4253_v22 = vunpack.c.h.bf16 %v4366_v17  ;;  %v4367_v23 = vld [vmem:[%s5208_s20 + $0x50] sm:$0xff]   ;;  %v4224_v24 = vunpack.c.l.bf16 %v4359_v18  ;;  %v4225_v25 = vunpack.c.h.bf16 %v4359_v18  ;;  %v4360_v33 = vld [vmem:[%s5208_s20 + $0x18] sm:$0xff]  }
  0x14   : > { %161 = vst [vmem:[#allocation2 + $0x80] sm:$0xff] %v5158_v2  ;;  %162 = vst [vmem:[#allocation2 + $0x88] sm:$0x3] %v5158_v2  ;;  %v4256_v26 = vunpack.c.l.bf16 %v4367_v23  ;;  %v4257_v27 = vunpack.c.h.bf16 %v4367_v23  ;;  %v4368_v34 = vld [vmem:[%s5208_s20 + $0x58] sm:$0xff]   ;;  %v4228_v35 = vunpack.c.l.bf16 %v4360_v33  ;;  %v4229_v36 = vunpack.c.h.bf16 %v4360_v33  ;;  %v4361_v39 = vld [vmem:[%s5208_s20 + $0x20] sm:$0xff]  }
  0x15   : > { %163 = vst [vmem:[#allocation2 + $0x90] sm:$0xff] %v5158_v2  ;;  %164 = vst [vmem:[#allocation2 + $0x98] sm:$0xff] %v5158_v2  ;;  %4609 = vmatpush3.bf16.msra.mxu0 %v5063_v3  ;;  %5046 = vmatpush3.bf16.msra.mxu1 %v5063_v3  ;;  %v4260_v37 = vunpack.c.l.bf16 %v4368_v34  ;;  %v4261_v38 = vunpack.c.h.bf16 %v4368_v34  ;;  %v4369_v40 = vld [vmem:[%s5208_s20 + $0x60] sm:$0xff]   ;;  %v4232_v41 = vunpack.c.l.bf16 %v4361_v39  ;;  %v4233_v42 = vunpack.c.h.bf16 %v4361_v39  ;;  %v4362_v55 = vld [vmem:[%s5208_s20 + $0x28] sm:$0xff]  }
  0x16   : > { %165 = vst [vmem:[#allocation2 + $0xa0] sm:$0x3] %v5158_v2  ;;  %166 = vst [vmem:[#allocation2 + $0xa8] sm:$0xff] %v5158_v2  ;;  %4610 = vmatprep.subr.bf16.mxu0 %v5064_v5  ;;  %5039 = vmatprep.subr.bf16.mxu1 %v5064_v5  ;;  %v4264_v43 = vunpack.c.l.bf16 %v4369_v40  ;;  %v4265_v44 = vunpack.c.h.bf16 %v4369_v40  ;;  %v4370_v56 = vld [vmem:[%s5208_s20 + $0x68] sm:$0xff]   ;;  %v4236_v57 = vunpack.c.l.bf16 %v4362_v55  ;;  %v4237_v58 = vunpack.c.h.bf16 %v4362_v55  ;;  %v4363_v61 = vld [vmem:[%s5208_s20 + $0x30] sm:$0xff]  }
  0x17   : > { %167 = vst [vmem:[#allocation2 + $0xb0] sm:$0xff] %v5158_v2  ;;  %168 = vst [vmem:[#allocation2 + $0xb8] sm:$0x3] %v5158_v2  ;;  %v4268_v59 = vunpack.c.l.bf16 %v4370_v56  ;;  %v4269_v60 = vunpack.c.h.bf16 %v4370_v56  ;;  %v4371_v62 = vld [vmem:[%s5208_s20 + $0x70] sm:$0xff]   ;;  %v4241_v3 = vunpack.c.h.bf16 %v4363_v61  ;;  %v5076_v23 = vld [vmem:[%s6102_s1 + $0xa0] sm:$0xff]  }
  0x18   : > { %169 = vst [vmem:[#allocation2 + $0xc0] sm:$0xff] %v5158_v2  ;;  %170 = vst [vmem:[#allocation2 + $0xc8] sm:$0xff] %v5158_v2  ;;  %v4272_v4 = vunpack.c.l.bf16 %v4371_v62  ;;  %v5071_v6 = vld [vmem:[%s6102_s1 + $0x70] sm:$0xff]  }
  0x19   : > { %171 = vst [vmem:[#allocation2 + $0xd0] sm:$0x3] %v5158_v2  ;;  %172 = vst [vmem:[#allocation2 + $0xd8] sm:$0xff] %v5158_v2  ;;  %4611 = vmatpush3.bf16.msra.mxu0 %v5064_v5  ;;  %5047 = vmatpush3.bf16.msra.mxu1 %v5064_v5  ;;  %v4273_v5 = vunpack.c.h.bf16 %v4371_v62  ;;  %v5072_v7 = vld [vmem:[%s6102_s1 + $0xb0] sm:$0xff]  }
  0x1a   : > { %173 = vst [vmem:[#allocation2 + $0xe0] sm:$0xff] %v5158_v2  ;;  %174 = vst [vmem:[#allocation2 + $0xe8] sm:$0x3] %v5158_v2  ;;  %4612 = vmatprep.subr.bf16.mxu0 %v5065_v15  ;;  %5040 = vmatprep.subr.bf16.mxu1 %v5065_v15  ;;  %v5079_v39 = vld [vmem:[%s6102_s1 + $0x50] sm:$0xff]  }
  0x1b   : > { %175 = vst [vmem:[#allocation2 + $0xf0] sm:$0xff] %v5158_v2  ;;  %176 = vst [vmem:[#allocation2 + $0xf8] sm:$0xff] %v5158_v2  ;;  %v5080_v40 = vld [vmem:[%s6102_s1 + $0x90] sm:$0xff]  }
  0x1c   : > { %177 = vst [vmem:[#allocation2 + $0x100] sm:$0x3] %v5158_v2  ;;  %178 = vst [vmem:[#allocation2 + $0x108] sm:$0xff] %v5158_v2  ;;  %v1068_v56 = vld [vmem:[#allocation2 + $0xa] sm:$0xff] }
  0x1d   : > { %179 = vst [vmem:[#allocation2 + $0x110] sm:$0xff] %v5158_v2  ;;  %180 = vst [vmem:[#allocation2 + $0x118] sm:$0x3] %v5158_v2  ;;  %4613 = vmatpush3.bf16.msra.mxu0 %v5065_v15  ;;  %5048 = vmatpush3.bf16.msra.mxu1 %v5065_v15  ;;  %v5074_v15 = vld [vmem:[%s6102_s1 + $0xa8] sm:$0xff]  }
  0x1e   : > { %181 = vst [vmem:[#allocation2 + $0x120] sm:$0xff] %v5158_v2  ;;  %182 = vst [vmem:[#allocation2 + $0x128] sm:$0xff] %v5158_v2  ;;  %4614 = vmatprep.subr.bf16.mxu0 %v5066_v28  ;;  %5041 = vmatprep.subr.bf16.mxu1 %v5066_v28 }
  0x1f   : > { %183 = vst [vmem:[#allocation2 + $0x130] sm:$0x3] %v5158_v2  ;;  %184 = vst [vmem:[#allocation2 + $0x138] sm:$0xff] %v5158_v2 }
  0x20   : > { %185 = vst [vmem:[#allocation2 + $0x140] sm:$0xff] %v5158_v2  ;;  %186 = vst [vmem:[#allocation2 + $0x148] sm:$0x3] %v5158_v2 }
  0x21   : > { %187 = vst [vmem:[#allocation2 + $0x150] sm:$0xff] %v5158_v2  ;;  %188 = vst [vmem:[#allocation2 + $0x158] sm:$0xff] %v5158_v2  ;;  %4615 = vmatpush3.bf16.msra.mxu0 %v5066_v28  ;;  %5049 = vmatpush3.bf16.msra.mxu1 %v5066_v28 }
  0x22   : > { %189 = vst [vmem:[#allocation2 + $0x160] sm:$0x3] %v5158_v2  ;;  %190 = vst [vmem:[#allocation2 + $0x168] sm:$0xff] %v5158_v2  ;;  %4616 = vmatprep.subr.bf16.mxu0 %v5067_v32  ;;  %5042 = vmatprep.subr.bf16.mxu1 %v5067_v32 }
  0x23   : > { %191 = vst [vmem:[#allocation2 + $0x170] sm:$0xff] %v5158_v2  ;;  %192 = vst [vmem:[#allocation2 + $0x178] sm:$0x3] %v5158_v2 }
  0x24   : > { %193 = vst [vmem:[#allocation2 + $0x180] sm:$0xff] %v5158_v2  ;;  %194 = vst [vmem:[#allocation2 + $0x188] sm:$0xff] %v5158_v2 }
  0x25   : > { %195 = vst [vmem:[#allocation2 + $0x190] sm:$0x3] %v5158_v2  ;;  %196 = vst [vmem:[#allocation2 + $0x198] sm:$0xff] %v5158_v2  ;;  %4617 = vmatpush3.bf16.msra.mxu0 %v5067_v32  ;;  %5050 = vmatpush3.bf16.msra.mxu1 %v5067_v32  ;;  %v5078_v32 = vld [vmem:[%s6102_s1 + $0x98] sm:$0xff]  }
  0x26   : > { %197 = vst [vmem:[#allocation2 + $0x1a0] sm:$0xff] %v5158_v2  ;;  %198 = vst [vmem:[#allocation2 + $0x1a8] sm:$0x3] %v5158_v2  ;;  %4618 = vmatprep.subr.bf16.mxu0 %v5068_v45  ;;  %5043 = vmatprep.subr.bf16.mxu1 %v5068_v45  ;;  %v4240_v2 = vunpack.c.l.bf16 %v4363_v61 }
  0x27   : > { %278 = vst [vmem:[#allocation2 + $0xc1] sm:$0xff] %v4244_v9  ;;  %279 = vst [vmem:[#allocation2 + $0xc9] sm:$0xff] %v4245_v10 }
  0x28   : > { %264 = vst [vmem:[#allocation2 + $0x19] sm:$0xff] %v4216_v11  ;;  %265 = vst [vmem:[#allocation2 + $0x21] sm:$0xff] %v4217_v12 }
  0x29   : > { %280 = vst [vmem:[#allocation2 + $0xd9] sm:$0xff] %v4248_v13  ;;  %281 = vst [vmem:[#allocation2 + $0xe1] sm:$0xff] %v4249_v14  ;;  %4619 = vmatpush3.bf16.msra.mxu0 %v5068_v45  ;;  %5051 = vmatpush3.bf16.msra.mxu1 %v5068_v45  ;;  %v5073_v14 = vld [vmem:[%s6102_s1 + $0x68] sm:$0xff]  }
  0x2a   : > { %266 = vst [vmem:[#allocation2 + $0x31] sm:$0xff] %v4220_v19  ;;  %267 = vst [vmem:[#allocation2 + $0x39] sm:$0xff] %v4221_v20  ;;  %4652 = vmatprep.subr.bf16.mxu1 %v5069_v50  ;;  %4700 = vmatprep.subr.bf16.mxu0 %v5070_v51 }
  0x2b   : > { %282 = vst [vmem:[#allocation2 + $0xf1] sm:$0xff] %v4252_v21  ;;  %283 = vst [vmem:[#allocation2 + $0xf9] sm:$0xff] %v4253_v22  ;;  %v5075_v22 = vld [vmem:[%s6102_s1 + $0x60] sm:$0xff]  }
  0x2c   : > { %268 = vst [vmem:[#allocation2 + $0x49] sm:$0xff] %v4224_v24  ;;  %269 = vst [vmem:[#allocation2 + $0x51] sm:$0xff] %v4225_v25 }
  0x2d   : > { %284 = vst [vmem:[#allocation2 + $0x109] sm:$0xff] %v4256_v26  ;;  %285 = vst [vmem:[#allocation2 + $0x111] sm:$0xff] %v4257_v27  ;;  %v5077_v27 = vld [vmem:[%s6102_s1 + $0x58] sm:$0xff]  }
  0x2e   : > { %v344_v29 = vld [vmem:[#allocation2 + $0xc0] sm:$0xff]  ;;  %v345_v30 = vld [vmem:[#allocation2 + $0xc8] sm:$0xff]  ;;  %270 = vst [vmem:[#allocation2 + $0x61] sm:$0xff] %v4228_v35  ;;  %271 = vst [vmem:[#allocation2 + $0x69] sm:$0xff] %v4229_v36 }
  0x2f   : > { %v5228_v31 = vpack.c.bf16 %v345_v30, %v344_v29  ;;  %286 = vst [vmem:[#allocation2 + $0x121] sm:$0xff] %v4260_v37  ;;  %287 = vst [vmem:[#allocation2 + $0x129] sm:$0xff] %v4261_v38  ;;  %v330_v46 = vld [vmem:[#allocation2 + $0x18] sm:$0xff]  ;;  %v331_v47 = vld [vmem:[#allocation2 + $0x20] sm:$0xff] }
  0x30   : > { %272 = vst [vmem:[#allocation2 + $0x79] sm:$0xff] %v4232_v41  ;;  %273 = vst [vmem:[#allocation2 + $0x81] sm:$0xff] %v4233_v42  ;;  %v346_v48 = vld [vmem:[#allocation2 + $0xd8] sm:$0xff]  ;;  %v347_v49 = vld [vmem:[#allocation2 + $0xe0] sm:$0xff]  ;;  %v5247_v52 = vpack.c.bf16 %v331_v47, %v330_v46 }
  0x31   : > { %4636 = vmatprep.mubr.bf16.mxu1 %v5228_v31  ;;  %288 = vst [vmem:[#allocation2 + $0x139] sm:$0xff] %v4264_v43  ;;  %289 = vst [vmem:[#allocation2 + $0x141] sm:$0xff] %v4265_v44  ;;  %v5249_v53 = vpack.c.bf16 %v347_v49, %v346_v48  ;;  %v332_v54 = vld [vmem:[#allocation2 + $0x30] sm:$0xff]  ;;  %v333_v63 = vld [vmem:[#allocation2 + $0x38] sm:$0xff] }
  0x32   : > { %v348_v0 = vld [vmem:[#allocation2 + $0xf0] sm:$0xff]  ;;  %v349_v1 = vld [vmem:[#allocation2 + $0xf8] sm:$0xff]  ;;  %274 = vst [vmem:[#allocation2 + $0x91] sm:$0xff] %v4236_v57  ;;  %275 = vst [vmem:[#allocation2 + $0x99] sm:$0xff] %v4237_v58  ;;  %v5261_v8 = vpack.c.bf16 %v333_v63, %v332_v54  ;;  %4621 = vmatmul.mubr.bf16.vlgmr.msra.gmra.mxu0 %v5247_v52 }
  0x33   : > { %290 = vst [vmem:[#allocation2 + $0x151] sm:$0xff] %v4268_v59  ;;  %291 = vst [vmem:[#allocation2 + $0x159] sm:$0xff] %v4269_v60  ;;  %v5263_v9 = vpack.c.bf16 %v349_v1, %v348_v0  ;;  %v334_v10 = vld [vmem:[#allocation2 + $0x48] sm:$0xff]  ;;  %v335_v11 = vld [vmem:[#allocation2 + $0x50] sm:$0xff]  ;;  %4637 = vmatmul.mubr.bf16.vlgmr.msra.gmra.mxu1 %v5249_v53  ;;  %4701 = vmatpush3.bf16.msra.mxu0 %v5070_v51 }
  0x34   : > { %276 = vst [vmem:[#allocation2 + $0xa9] sm:$0xff] %v4240_v2  ;;  %277 = vst [vmem:[#allocation2 + $0xb1] sm:$0xff] %v4241_v3  ;;  %v350_v12 = vld [vmem:[#allocation2 + $0x108] sm:$0xff]  ;;  %4653 = vmatpush3.bf16.msra.mxu1 %v5069_v50  ;;  %v351_v13 = vld [vmem:[#allocation2 + $0x110] sm:$0xff]  ;;  %4702 = vmatprep.subr.bf16.mxu0 %v5072_v7  ;;  %v5275_v17 = vpack.c.bf16 %v335_v11, %v334_v10 }
  0x35   : > { %292 = vst [vmem:[#allocation2 + $0x169] sm:$0xff] %v4272_v4  ;;  %293 = vst [vmem:[#allocation2 + $0x171] sm:$0xff] %v4273_v5  ;;  %4654 = vmatprep.subr.bf16.mxu1 %v5071_v6  ;;  %4624 = vmatprep.mubr.bf16.mxu0 %v5261_v8  ;;  %v336_v16 = vld [vmem:[#allocation2 + $0x60] sm:$0xff]  ;;  %v5277_v18 = vpack.c.bf16 %v351_v13, %v350_v12  ;;  %v337_v19 = vld [vmem:[#allocation2 + $0x68] sm:$0xff] }
  0x36   : > { %4640 = vmatprep.mubr.bf16.mxu1 %v5263_v9  ;;  %v352_v20 = vld [vmem:[#allocation2 + $0x120] sm:$0xff]  ;;  %v353_v21 = vld [vmem:[#allocation2 + $0x128] sm:$0xff]  ;;  %v5285_v24 = vpack.c.bf16 %v337_v19, %v336_v16  ;;  %v5086_v63 = vld [vmem:[%s6102_s1 + $0xf8] sm:$0xff]  }
  0x37   : > { %4703 = vmatpush3.bf16.msra.mxu0 %v5072_v7  ;;  %v5287_v25 = vpack.c.bf16 %v353_v21, %v352_v20  ;;  %v338_v26 = vld [vmem:[#allocation2 + $0x78] sm:$0xff]  ;;  %v339_v28 = vld [vmem:[#allocation2 + $0x80] sm:$0xff]  ;;  %v5081_v44 = vld [vmem:[%s6102_s1 + $0x48] sm:$0xff]  }
  0x38   : > { %4655 = vmatpush3.bf16.msra.mxu1 %v5071_v6  ;;  %4704 = vmatprep.subr.bf16.mxu0 %v5074_v15  ;;  %v354_v29 = vld [vmem:[#allocation2 + $0x138] sm:$0xff]  ;;  %v355_v30 = vld [vmem:[#allocation2 + $0x140] sm:$0xff]  ;;  %v5299_v36 = vpack.c.bf16 %v339_v28, %v338_v26  ;;  %v5082_v48 = vld [vmem:[%s6102_s1 + $0x88] sm:$0xff]  }
  0x39   : > { %4656 = vmatprep.subr.bf16.mxu1 %v5073_v14  ;;  %v340_v33 = vld [vmem:[#allocation2 + $0x90] sm:$0xff]  ;;  %v341_v34 = vld [vmem:[#allocation2 + $0x98] sm:$0xff]  ;;  %v5301_v37 = vpack.c.bf16 %v355_v30, %v354_v29  ;;  %v697_v49 = vld [vmem:[#allocation2 + $0x1] sm:$0xff] }
  0x3a   : > { %4625 = vmatmul.mubr.bf16.gmra.mxu0 %v5275_v17  ;;  %v356_v35 = vld [vmem:[#allocation2 + $0x150] sm:$0xff]  ;;  %v357_v38 = vld [vmem:[#allocation2 + $0x158] sm:$0xff]  ;;  %v5309_v41 = vpack.c.bf16 %v341_v34, %v340_v33  ;;  %v1067_v51 = vld [vmem:[#allocation2 + $0x2] sm:$0xff] }
  0x3b   : > { %4641 = vmatmul.mubr.bf16.gmra.mxu1 %v5277_v18  ;;  %4705 = vmatpush3.bf16.msra.mxu0 %v5074_v15  ;;  %v5311_v42 = vpack.c.bf16 %v357_v38, %v356_v35  ;;  %v342_v43 = vld [vmem:[#allocation2 + $0xa8] sm:$0xff]  ;;  %v343_v45 = vld [vmem:[#allocation2 + $0xb0] sm:$0xff]  ;;  %v5083_v57 = vld [vmem:[%s6102_s1 + $0x40] sm:$0xff]   ;;  %v1131_v60 = vpack.c.bf16 %v1068_v56, %v1067_v51 }
  0x3c   : > { %4657 = vmatpush3.bf16.msra.mxu1 %v5073_v14  ;;  %4706 = vmatprep.subr.bf16.mxu0 %v5076_v23  ;;  %v358_v46 = vld [vmem:[#allocation2 + $0x168] sm:$0xff]  ;;  %v359_v47 = vld [vmem:[#allocation2 + $0x170] sm:$0xff]  ;;  %v5323_v54 = vpack.c.bf16 %v343_v45, %v342_v43  ;;  %v5084_v58 = vld [vmem:[%s6102_s1 + $0x80] sm:$0xff]  }
  0x3d   : > { %4658 = vmatprep.subr.bf16.mxu1 %v5075_v22  ;;  %4628 = vmatprep.mubr.bf16.mxu0 %v5285_v24  ;;  %v698_v50 = vld [vmem:[#allocation2 + $0x9] sm:$0xff]  ;;  %v5325_v55 = vpack.c.bf16 %v359_v47, %v358_v46  ;;  %v1069_v61 = vld [vmem:[#allocation2 + $0x1a] sm:$0xff]  ;;  %v1071_v1 = vld [vmem:[#allocation2 + $0x32] sm:$0xff] }
  0x3e   : > { %4644 = vmatprep.mubr.bf16.mxu1 %v5287_v25  ;;  %v761_v59 = vpack.c.bf16 %v698_v50, %v697_v49  ;;  %v1070_v62 = vld [vmem:[#allocation2 + $0x22] sm:$0xff]  ;;  %v5087_v0 = vld [vmem:[%s6102_s1 + $0x138] sm:$0xff]   ;;  %v5090_v7 = vld [vmem:[%s6102_s1 + $0xf0] sm:$0xff]  }
  0x3f   : > { %4707 = vmatpush3.bf16.msra.mxu0 %v5076_v23  ;;  %v1072_v2 = vld [vmem:[#allocation2 + $0x3a] sm:$0xff]  ;;  %v5344_v4 = vpack.c.bf16 %v1070_v62, %v1069_v61  ;;  %v5347_v5 = vld [vmem:[%s5208_s20 + $0x8] sm:$0xff]  ;;  %v5091_v10 = vld [vmem:[%s6102_s1 + $0x130] sm:$0xff]  }
  0x40   : > { %4659 = vmatpush3.bf16.msra.mxu1 %v5075_v22  ;;  %4708 = vmatprep.subr.bf16.mxu0 %v5078_v32  ;;  %v5342_v3 = vld [vmem:[%s5208_s20] sm:$0xff]  ;;  %v5349_v6 = vpack.c.bf16 %v1072_v2, %v1071_v1  ;;  %v1073_v11 = vld [vmem:[#allocation2 + $0x4a] sm:$0xff]  ;;  %v1074_v12 = vld [vmem:[#allocation2 + $0x52] sm:$0xff] }
  0x41   : > { %4660 = vmatprep.subr.bf16.mxu1 %v5077_v27  ;;  %v1075_v13 = vld [vmem:[#allocation2 + $0x62] sm:$0xff]  ;;  %v1076_v14 = vld [vmem:[#allocation2 + $0x6a] sm:$0xff]  ;;  %v5370_v20 = vpack.c.bf16 %v1074_v12, %v1073_v11  ;;  %v5373_v21 = vld [vmem:[%s5208_s20 + $0x18] sm:$0xff] }
  0x42   : > { %4629 = vmatmul.mubr.bf16.gmra.mxu0 %v5299_v36  ;;  %v5094_v15 = vld [vmem:[%s6102_s1 + $0xe8] sm:$0xff]   ;;  %v5368_v19 = vld [vmem:[%s5208_s20 + $0x10] sm:$0xff]  ;;  %v5375_v22 = vpack.c.bf16 %v1076_v14, %v1075_v13  ;;  %v5098_v23 = vld [vmem:[%s6102_s1 + $0xe0] sm:$0xff]  }
  0x43   : > { %4645 = vmatmul.mubr.bf16.gmra.mxu1 %v5301_v37  ;;  %4709 = vmatpush3.bf16.msra.mxu0 %v5078_v32  ;;  %v5095_v16 = vld [vmem:[%s6102_s1 + $0x128] sm:$0xff]   ;;  %v1077_v26 = vld [vmem:[#allocation2 + $0x7a] sm:$0xff]  ;;  %v1079_v29 = vld [vmem:[#allocation2 + $0x92] sm:$0xff] }
  0x44   : > { %4661 = vmatpush3.bf16.msra.mxu1 %v5077_v27  ;;  %4710 = vmatprep.subr.bf16.mxu0 %v5080_v40  ;;  %v1078_v27 = vld [vmem:[#allocation2 + $0x82] sm:$0xff]  ;;  %v1080_v30 = vld [vmem:[#allocation2 + $0x9a] sm:$0xff]  ;;  %v1081_v43 = vld [vmem:[#allocation2 + $0xaa] sm:$0xff] }
  0x45   : > { %4662 = vmatprep.subr.bf16.mxu1 %v5079_v39  ;;  %4632 = vmatprep.mubr.bf16.mxu0 %v5309_v41  ;;  %v5099_v28 = vld [vmem:[%s6102_s1 + $0x120] sm:$0xff]   ;;  %v5102_v32 = vld [vmem:[%s6102_s1 + $0xd8] sm:$0xff]   ;;  %v5396_v35 = vpack.c.bf16 %v1078_v27, %v1077_v26  ;;  %v5399_v38 = vld [vmem:[%s5208_s20 + $0x28] sm:$0xff] }
  0x46   : > { %4648 = vmatprep.mubr.bf16.mxu1 %v5311_v42  ;;  %v5103_v33 = vld [vmem:[%s6102_s1 + $0x118] sm:$0xff]   ;;  %v5394_v34 = vld [vmem:[%s5208_s20 + $0x20] sm:$0xff]  ;;  %v1084_v47 = vld [vmem:[#allocation2 + $0xca] sm:$0xff] }
  0x47   : > { %4711 = vmatpush3.bf16.msra.mxu0 %v5080_v40  ;;  %v5106_v40 = vld [vmem:[%s6102_s1 + $0xd0] sm:$0xff]   ;;  %v1083_v46 = vld [vmem:[#allocation2 + $0xc2] sm:$0xff]  ;;  %v4372_v50 = vld [vmem:[%s5208_s20 + $0x78] sm:$0xff]  }
  0x48   : > { %4663 = vmatpush3.bf16.msra.mxu1 %v5079_v39  ;;  %4712 = vmatprep.subr.bf16.mxu0 %v5082_v48  ;;  %v5401_v39 = vpack.c.bf16 %v1080_v30, %v1079_v29  ;;  %v1082_v45 = vld [vmem:[#allocation2 + $0xb2] sm:$0xff]  ;;  %v5111_v49 = vld [vmem:[%s6102_s1 + $0x108] sm:$0xff]   ;;  %v5114_v61 = vld [vmem:[%s6102_s1 + $0xc0] sm:$0xff]  }
  0x49   : > { %4664 = vmatprep.subr.bf16.mxu1 %v5081_v44  ;;  %v5421_v51 = vld [vmem:[%s5208_s20 + $0x30] sm:$0xff]  ;;  %v5423_v56 = vpack.c.bf16 %v1082_v45, %v1081_v43  ;;  %v5115_v62 = vld [vmem:[%s6102_s1 + $0x100] sm:$0xff]   ;;  %v5452_v13 = vld [vmem:[%s5208_s20 + $0x48] sm:$0xff] }
  0x4a   : > { %4633 = vmatmul.mubr.bf16.gmra.mxu0 %v5323_v54  ;;  %v1087_v1 = vld [vmem:[#allocation2 + $0xf2] sm:$0xff]  ;;  %v1088_v2 = vld [vmem:[#allocation2 + $0xfa] sm:$0xff]  ;;  %v1092_v26 = vld [vmem:[#allocation2 + $0x12a] sm:$0xff] }
  0x4b   : > { %4649 = vmatmul.mubr.bf16.gmra.mxu1 %v5325_v55  ;;  %4713 = vmatpush3.bf16.msra.mxu0 %v5082_v48  ;;  %v5110_v48 = vld [vmem:[%s6102_s1 + $0xc8] sm:$0xff]   ;;  %v5447_v11 = vld [vmem:[%s5208_s20 + $0x40] sm:$0xff]  ;;  %v5454_v14 = vpack.c.bf16 %v1088_v2, %v1087_v1  ;;  %v5461_v27 = vld [vmem:[%s5208_s20 + $0x50] sm:$0xff] }
  0x4c   : > { %4665 = vmatpush3.bf16.msra.mxu1 %v5081_v44  ;;  %4714 = vmatprep.subr.bf16.mxu0 %v5084_v58  ;;  %v5107_v44 = vld [vmem:[%s6102_s1 + $0x110] sm:$0xff]   ;;  %v5466_v29 = vld [vmem:[%s5208_s20 + $0x58] sm:$0xff] }
  0x4d   : > { %4666 = vmatprep.subr.bf16.mxu1 %v5083_v57  ;;  %4668 = vmatprep.mubr.bf16.mxu1 %v761_v59  ;;  %v5426_v59 = vld [vmem:[%s5208_s20 + $0x38] sm:$0xff]  ;;  %v5135_v2 = vld [vmem:[%s6102_s1 + $0x1f0] sm:$0xff]  }
  0x4e   : > { %4716 = vmatprep.mubr.bf16.mxu0 %v1131_v60  ;;  %v5428_v60 = vpack.c.bf16 %v1084_v47, %v1083_v46  ;;  %v1096_v43 = vld [vmem:[#allocation2 + $0x15a] sm:$0xff]  ;;  %v5480_v46 = vld [vmem:[%s5208_s20 + $0x68] sm:$0xff] }
  0x4f   : > { %4715 = vmatpush3.bf16.msra.mxu0 %v5084_v58  ;;  %v4277_v58 = vunpack.c.h.bf16 %v4372_v50 }
  0x50   : > { %4667 = vmatpush3.bf16.msra.mxu1 %v5083_v57  ;;  %4796 = vmatprep.subr.bf16.mxu0 %v5087_v0  ;;  %v4276_v57 = vunpack.c.l.bf16 %v4372_v50  ;;  %v5489_v50 = vld [vmem:[%s5208_s20 + $0x70] sm:$0xff] }
  0x51   : > { %4748 = vmatprep.subr.bf16.mxu1 %v5086_v63  ;;  %295 = vst [vmem:[#allocation2 + $0x189] sm:$0xff] %v4277_v58  ;;  %v5118_v58 = vld [vmem:[%s6102_s1 + $0x170] sm:$0xff]  }
  0x52   : > { %4717 = vmatmul.mubr.bf16.vlgmr.msra.gmra.mxu0 %v5344_v4  ;;  %294 = vst [vmem:[#allocation2 + $0x181] sm:$0xff] %v4276_v57 }
  0x53   : > { %4669 = vmatmul.mubr.bf16.vlgmr.msra.gmra.mxu1 %v5342_v3  ;;  %4797 = vmatpush3.bf16.msra.mxu0 %v5087_v0  ;;  %v1086_v0 = vld [vmem:[#allocation2 + $0xe2] sm:$0xff] }
  0x54   : > { %4749 = vmatpush3.bf16.msra.mxu1 %v5086_v63  ;;  %4672 = vmatprep.mubr.bf16.mxu1 %v5347_v5  ;;  %v1085_v63 = vld [vmem:[#allocation2 + $0xda] sm:$0xff] }
  0x55   : > { %4720 = vmatprep.mubr.bf16.mxu0 %v5349_v6  ;;  %4750 = vmatprep.subr.bf16.mxu1 %v5090_v7  ;;  %v5449_v12 = vpack.c.bf16 %v1086_v0, %v1085_v63  ;;  %v2553_v63 = vld [vmem:[#allocation2 + $0x68] sm:$0xff] }
  0x56   : > { %4798 = vmatprep.subr.bf16.mxu0 %v5091_v10 }
  0x57   : > { %4799 = vmatpush3.bf16.msra.mxu0 %v5091_v10  ;;  %v5117_v10 = vld [vmem:[%s6102_s1 + $0x1b8] sm:$0xff]  }
  0x58   : > { %4751 = vmatpush3.bf16.msra.mxu1 %v5090_v7  ;;  %4800 = vmatprep.subr.bf16.mxu0 %v5095_v16  ;;  %v5116_v7 = vld [vmem:[%s6102_s1 + $0x178] sm:$0xff]  }
  0x59   : > { %4752 = vmatprep.subr.bf16.mxu1 %v5094_v15 }
  0x5a   : > { %4721 = vmatmul.mubr.bf16.gmra.mxu0 %v5370_v20 }
  0x5b   : > { %4673 = vmatmul.mubr.bf16.gmra.mxu1 %v5368_v19  ;;  %4724 = vmatprep.mubr.bf16.mxu0 %v5375_v22 }
  0x5c   : > { %4676 = vmatprep.mubr.bf16.mxu1 %v5373_v21  ;;  %4753 = vmatpush3.bf16.msra.mxu1 %v5094_v15  ;;  %v1089_v15 = vld [vmem:[#allocation2 + $0x10a] sm:$0xff] }
  0x5d   : > { %4801 = vmatpush3.bf16.msra.mxu0 %v5095_v16  ;;  %4754 = vmatprep.subr.bf16.mxu1 %v5098_v23  ;;  %v1090_v16 = vld [vmem:[#allocation2 + $0x112] sm:$0xff] }
  0x5e   : > { %4802 = vmatprep.subr.bf16.mxu0 %v5099_v28 }
  0x60   : > { %4755 = vmatpush3.bf16.msra.mxu1 %v5098_v23  ;;  %v1091_v23 = vld [vmem:[#allocation2 + $0x122] sm:$0xff] }
  0x61   : > { %4803 = vmatpush3.bf16.msra.mxu0 %v5099_v28  ;;  %4756 = vmatprep.subr.bf16.mxu1 %v5102_v32  ;;  %v5463_v28 = vpack.c.bf16 %v1090_v16, %v1089_v15  ;;  %v5468_v30 = vpack.c.bf16 %v1092_v26, %v1091_v23  ;;  %v5137_v15 = vld [vmem:[%s6102_s1 + $0x1e8] sm:$0xff]   ;;  %v5140_v26 = vld [vmem:[%s6102_s1 + $0x220] sm:$0xff]  }
  0x62   : > { %4804 = vmatprep.subr.bf16.mxu0 %v5103_v33  ;;  %4725 = vmatmul.mubr.bf16.gmra.mxu0 %v5396_v35  ;;  %v5138_v16 = vld [vmem:[%s6102_s1 + $0x228] sm:$0xff]  }
  0x63   : > { %4677 = vmatmul.mubr.bf16.gmra.mxu1 %v5394_v34  ;;  %4728 = vmatprep.mubr.bf16.mxu0 %v5401_v39 }
  0x64   : > { %4680 = vmatprep.mubr.bf16.mxu1 %v5399_v38  ;;  %4757 = vmatpush3.bf16.msra.mxu1 %v5102_v32  ;;  %v1093_v32 = vld [vmem:[#allocation2 + $0x13a] sm:$0xff] }
  0x65   : > { %4805 = vmatpush3.bf16.msra.mxu0 %v5103_v33  ;;  %4758 = vmatprep.subr.bf16.mxu1 %v5106_v40  ;;  %v1094_v33 = vld [vmem:[#allocation2 + $0x142] sm:$0xff] }
  0x66   : > { %4806 = vmatprep.subr.bf16.mxu0 %v5107_v44  ;;  %v5477_v45 = vpack.c.bf16 %v1094_v33, %v1093_v32  ;;  %v2560_v32 = vld [vmem:[#allocation2 + $0xc0] sm:$0xff]  ;;  %v2561_v33 = vld [vmem:[#allocation2 + $0xc8] sm:$0xff] }
  0x68   : > { %4759 = vmatpush3.bf16.msra.mxu1 %v5106_v40  ;;  %v1095_v40 = vld [vmem:[#allocation2 + $0x152] sm:$0xff] }
  0x69   : > { %4807 = vmatpush3.bf16.msra.mxu0 %v5107_v44  ;;  %4760 = vmatprep.subr.bf16.mxu1 %v5110_v48  ;;  %v5475_v44 = vld [vmem:[%s5208_s20 + $0x60] sm:$0xff]  ;;  %v5482_v47 = vpack.c.bf16 %v1096_v43, %v1095_v40  ;;  %v5141_v40 = vld [vmem:[%s6102_s1 + $0x1d8] sm:$0xff]  }
  0x6a   : > { %4808 = vmatprep.subr.bf16.mxu0 %v5111_v49  ;;  %4729 = vmatmul.mubr.bf16.gmra.mxu0 %v5423_v56 }
  0x6b   : > { %4681 = vmatmul.mubr.bf16.gmra.mxu1 %v5421_v51  ;;  %4732 = vmatprep.mubr.bf16.mxu0 %v5428_v60 }
  0x6c   : > { %4684 = vmatprep.mubr.bf16.mxu1 %v5426_v59  ;;  %4761 = vmatpush3.bf16.msra.mxu1 %v5110_v48  ;;  %v1097_v48 = vld [vmem:[#allocation2 + $0x16a] sm:$0xff] }
  0x6d   : > { %4809 = vmatpush3.bf16.msra.mxu0 %v5111_v49  ;;  %4762 = vmatprep.subr.bf16.mxu1 %v5114_v61  ;;  %v1098_v49 = vld [vmem:[#allocation2 + $0x172] sm:$0xff] }
  0x6e   : > { %4810 = vmatprep.subr.bf16.mxu0 %v5115_v62  ;;  %v5491_v57 = vpack.c.bf16 %v1098_v49, %v1097_v48  ;;  %v2562_v48 = vld [vmem:[#allocation2 + $0xd8] sm:$0xff]  ;;  %v2563_v49 = vld [vmem:[#allocation2 + $0xe0] sm:$0xff] }
  0x70   : > { %4763 = vmatpush3.bf16.msra.mxu1 %v5114_v61  ;;  %v5119_v61 = vld [vmem:[%s6102_s1 + $0x1b0] sm:$0xff]  }
  0x71   : > { %4811 = vmatpush3.bf16.msra.mxu0 %v5115_v62  ;;  %4844 = vmatprep.subr.bf16.mxu1 %v5116_v7 }
  0x72   : > { %4892 = vmatprep.subr.bf16.mxu0 %v5117_v10  ;;  %4733 = vmatmul.mubr.bf16.gmra.mxu0 %v5449_v12 }
  0x73   : > { %4685 = vmatmul.mubr.bf16.gmra.mxu1 %v5447_v11  ;;  %4736 = vmatprep.mubr.bf16.mxu0 %v5454_v14 }
  0x74   : > { %4688 = vmatprep.mubr.bf16.mxu1 %v5452_v13 }
  0x7a   : > { %4737 = vmatmul.mubr.bf16.gmra.mxu0 %v5463_v28 }
  0x7b   : > { %4689 = vmatmul.mubr.bf16.gmra.mxu1 %v5461_v27  ;;  %4740 = vmatprep.mubr.bf16.mxu0 %v5468_v30 }
  0x7c   : > { %4692 = vmatprep.mubr.bf16.mxu1 %v5466_v29 }
  0x82   : > { %4741 = vmatmul.mubr.bf16.gmra.mxu0 %v5477_v45 }
  0x83   : > { %4693 = vmatmul.mubr.bf16.gmra.mxu1 %v5475_v44  ;;  %4744 = vmatprep.mubr.bf16.mxu0 %v5482_v47 }
  0x84   : > { %4696 = vmatprep.mubr.bf16.mxu1 %v5480_v46 }
  0x8a   : > { %4745 = vmatmul.mubr.bf16.gmra.mxu0 %v5491_v57 }
  0x8b   : > { %4697 = vmatmul.mubr.bf16.gmra.mxu1 %v5489_v50  ;;  %4812 = vmatprep.mubr.bf16.mxu0 %v5342_v3  ;;  %v5121_v3 = vld [vmem:[%s6102_s1 + $0x1a8] sm:$0xff]  }
  0x8c   : > { %4764 = vmatprep.mubr.bf16.mxu1 %v5247_v52  ;;  %v5120_v52 = vld [vmem:[%s6102_s1 + $0x168] sm:$0xff]  }
  0x92   : > { %4813 = vmatmul.mubr.bf16.vlgmr.msra.gmra.mxu0 %v5347_v5  ;;  %v5124_v5 = vld [vmem:[%s6102_s1 + $0x158] sm:$0xff]  }
  0x93   : > { %4765 = vmatmul.mubr.bf16.vlgmr.msra.gmra.mxu1 %v5261_v8  ;;  %4893 = vmatpush3.bf16.msra.mxu0 %v5117_v10  ;;  %v5122_v8 = vld [vmem:[%s6102_s1 + $0x160] sm:$0xff]  }
  0x94   : > { %4845 = vmatpush3.bf16.msra.mxu1 %v5116_v7  ;;  %4768 = vmatprep.mubr.bf16.mxu1 %v5275_v17  ;;  %v5123_v17 = vld [vmem:[%s6102_s1 + $0x1a0] sm:$0xff]   ;;  %v5136_v7 = vld [vmem:[%s6102_s1 + $0x230] sm:$0xff]  }
  0x95   : > { %4816 = vmatprep.mubr.bf16.mxu0 %v5368_v19  ;;  %4846 = vmatprep.subr.bf16.mxu1 %v5118_v58  ;;  %v5125_v19 = vld [vmem:[%s6102_s1 + $0x198] sm:$0xff]   ;;  %v2555_v10 = vld [vmem:[#allocation2 + $0x80] sm:$0xff] }
  0x96   : > { %4894 = vmatprep.subr.bf16.mxu0 %v5119_v61 }
  0x97   : > { %4895 = vmatpush3.bf16.msra.mxu0 %v5119_v61  ;;  %v5145_v61 = vld [vmem:[%s6102_s1 + $0x1c8] sm:$0xff]  }
  0x98   : > { %4847 = vmatpush3.bf16.msra.mxu1 %v5118_v58  ;;  %4896 = vmatprep.subr.bf16.mxu0 %v5121_v3  ;;  %v2565_v58 = vld [vmem:[#allocation2 + $0xf8] sm:$0xff] }
  0x99   : > { %4848 = vmatprep.subr.bf16.mxu1 %v5120_v52 }
  0x9a   : > { %4817 = vmatmul.mubr.bf16.gmra.mxu0 %v5373_v21  ;;  %v5128_v21 = vld [vmem:[%s6102_s1 + $0x148] sm:$0xff]  }
  0x9b   : > { %4769 = vmatmul.mubr.bf16.gmra.mxu1 %v5285_v24  ;;  %4820 = vmatprep.mubr.bf16.mxu0 %v5394_v34  ;;  %v5126_v24 = vld [vmem:[%s6102_s1 + $0x150] sm:$0xff]   ;;  %v5129_v34 = vld [vmem:[%s6102_s1 + $0x188] sm:$0xff]  }
  0x9c   : > { %4772 = vmatprep.mubr.bf16.mxu1 %v5299_v36  ;;  %4849 = vmatpush3.bf16.msra.mxu1 %v5120_v52  ;;  %v5127_v36 = vld [vmem:[%s6102_s1 + $0x190] sm:$0xff]   ;;  %v2619_v52 = vpack.c.bf16 %v2563_v49, %v2562_v48 }
  0x9d   : > { %4897 = vmatpush3.bf16.msra.mxu0 %v5121_v3  ;;  %4850 = vmatprep.subr.bf16.mxu1 %v5122_v8  ;;  %v2921_v48 = vld [vmem:[#allocation2 + $0x51] sm:$0xff] }
  0x9e   : > { %4898 = vmatprep.subr.bf16.mxu0 %v5123_v17  ;;  %v3290_v49 = vld [vmem:[#allocation2 + $0x4a] sm:$0xff] }
  0xa0   : > { %4851 = vmatpush3.bf16.msra.mxu1 %v5122_v8  ;;  %v5148_v8 = vld [vmem:[%s6102_s1 + $0x200] sm:$0xff]  }
  0xa1   : > { %4899 = vmatpush3.bf16.msra.mxu0 %v5123_v17  ;;  %4852 = vmatprep.subr.bf16.mxu1 %v5124_v5  ;;  %v2566_v17 = vld [vmem:[#allocation2 + $0x108] sm:$0xff] }
  0xa2   : > { %4900 = vmatprep.subr.bf16.mxu0 %v5125_v19  ;;  %4821 = vmatmul.mubr.bf16.gmra.mxu0 %v5399_v38  ;;  %v5133_v38 = vld [vmem:[%s6102_s1 + $0x1f8] sm:$0xff]  }
  0xa3   : > { %4773 = vmatmul.mubr.bf16.gmra.mxu1 %v5309_v41  ;;  %4824 = vmatprep.mubr.bf16.mxu0 %v5421_v51  ;;  %v5131_v41 = vld [vmem:[%s6102_s1 + $0x140] sm:$0xff]   ;;  %v5134_v51 = vld [vmem:[%s6102_s1 + $0x238] sm:$0xff]  }
  0xa4   : > { %4776 = vmatprep.mubr.bf16.mxu1 %v5323_v54  ;;  %4853 = vmatpush3.bf16.msra.mxu1 %v5124_v5  ;;  %v5132_v54 = vld [vmem:[%s6102_s1 + $0x180] sm:$0xff]   ;;  %v2567_v5 = vld [vmem:[#allocation2 + $0x110] sm:$0xff] }
  0xa5   : > { %4901 = vmatpush3.bf16.msra.mxu0 %v5125_v19  ;;  %4854 = vmatprep.subr.bf16.mxu1 %v5126_v24  ;;  %v2568_v19 = vld [vmem:[#allocation2 + $0x120] sm:$0xff] }
  0xa6   : > { %4902 = vmatprep.subr.bf16.mxu0 %v5127_v36 }
  0xa8   : > { %4855 = vmatpush3.bf16.msra.mxu1 %v5126_v24  ;;  %v2569_v24 = vld [vmem:[#allocation2 + $0x128] sm:$0xff] }
  0xa9   : > { %4903 = vmatpush3.bf16.msra.mxu0 %v5127_v36  ;;  %4856 = vmatprep.subr.bf16.mxu1 %v5128_v21  ;;  %v2621_v36 = vpack.c.bf16 %v2567_v5, %v2566_v17 }
  0xaa   : > { %4904 = vmatprep.subr.bf16.mxu0 %v5129_v34  ;;  %4825 = vmatmul.mubr.bf16.gmra.mxu0 %v5426_v59 }
  0xab   : > { %4777 = vmatmul.mubr.bf16.gmra.mxu1 %v5228_v31  ;;  %4828 = vmatprep.mubr.bf16.mxu0 %v5447_v11  ;;  %v1467_v31 = vld [vmem:[#allocation2 + $0x180] sm:$0xff]  ;;  %v2556_v11 = vld [vmem:[#allocation2 + $0x90] sm:$0xff] }
  0xac   : > { %4780 = vmatprep.mubr.bf16.mxu1 %v5249_v53  ;;  %4857 = vmatpush3.bf16.msra.mxu1 %v5128_v21  ;;  %v1468_v53 = vld [vmem:[#allocation2 + $0x188] sm:$0xff]  ;;  %v2622_v21 = vpack.c.bf16 %v2569_v24, %v2568_v19 }
  0xad   : > { %4905 = vmatpush3.bf16.msra.mxu0 %v5129_v34  ;;  %4858 = vmatprep.subr.bf16.mxu1 %v5131_v41  ;;  %v5573_v59 = vpack.c.bf16 %v1468_v53, %v1467_v31  ;;  %v2573_v31 = vld [vmem:[#allocation2 + $0x158] sm:$0xff] }
  0xae   : > { %4906 = vmatprep.subr.bf16.mxu0 %v5132_v54 }
  0xb0   : > { %4859 = vmatpush3.bf16.msra.mxu1 %v5131_v41 }
  0xb1   : > { %4907 = vmatpush3.bf16.msra.mxu0 %v5132_v54  ;;  %4940 = vmatprep.subr.bf16.mxu1 %v5133_v38 }
  0xb2   : > { %4988 = vmatprep.subr.bf16.mxu0 %v5134_v51  ;;  %4829 = vmatmul.mubr.bf16.gmra.mxu0 %v5452_v13  ;;  %v2557_v13 = vld [vmem:[#allocation2 + $0x98] sm:$0xff] }
  0xb3   : > { %4781 = vmatmul.mubr.bf16.gmra.mxu1 %v5263_v9  ;;  %4832 = vmatprep.mubr.bf16.mxu0 %v5461_v27  ;;  %v2548_v9 = vld [vmem:[#allocation2 + $0x30] sm:$0xff]  ;;  %v2616_v23 = vpack.c.bf16 %v2557_v13, %v2556_v11  ;;  %v2558_v27 = vld [vmem:[#allocation2 + $0xa8] sm:$0xff] }
  0xb4   : > { %4784 = vmatprep.mubr.bf16.mxu1 %v5277_v18  ;;  %v2549_v18 = vld [vmem:[#allocation2 + $0x38] sm:$0xff] }
  0xb5   : > { %v2612_v62 = vpack.c.bf16 %v2549_v18, %v2548_v9 }
  0xba   : > { %4833 = vmatmul.mubr.bf16.gmra.mxu0 %v5466_v29  ;;  %v2559_v29 = vld [vmem:[#allocation2 + $0xb0] sm:$0xff] }
  0xbb   : > { %4785 = vmatmul.mubr.bf16.gmra.mxu1 %v5287_v25  ;;  %4836 = vmatprep.mubr.bf16.mxu0 %v5475_v44  ;;  %v5576_v25 = vld [vmem:[%s5208_s20 + $0x78] sm:$0xff]  ;;  %v2617_v43 = vpack.c.bf16 %v2559_v29, %v2558_v27  ;;  %v2618_v44 = vpack.c.bf16 %v2561_v33, %v2560_v32  ;;  %v5149_v33 = vld [vmem:[#allocation2] sm:$0xff] }
  0xbc   : > { %4788 = vmatprep.mubr.bf16.mxu1 %v5301_v37  ;;  %v2550_v37 = vld [vmem:[#allocation2 + $0x48] sm:$0xff]  ;;  %v3289_v27 = vld [vmem:[#allocation2 + $0x3a] sm:$0xff] }
  0xc2   : > { %4837 = vmatmul.mubr.bf16.gmra.mxu0 %v5480_v46  ;;  %v5144_v46 = vld [vmem:[%s6102_s1 + $0x210] sm:$0xff]  }
  0xc3   : > { %4789 = vmatmul.mubr.bf16.gmra.mxu1 %v5311_v42  ;;  %4840 = vmatprep.mubr.bf16.mxu0 %v5489_v50  ;;  %v2551_v42 = vld [vmem:[#allocation2 + $0x50] sm:$0xff] }
  0xc4   : > { %4792 = vmatprep.mubr.bf16.mxu1 %v5325_v55  ;;  %v2552_v55 = vld [vmem:[#allocation2 + $0x60] sm:$0xff]  ;;  %v2613_v0 = vpack.c.bf16 %v2551_v42, %v2550_v37  ;;  %v2564_v50 = vld [vmem:[#allocation2 + $0xf0] sm:$0xff] }
  0xc5   : > { %v2614_v1 = vpack.c.bf16 %v2553_v63, %v2552_v55  ;;  %v2620_v3 = vpack.c.bf16 %v2565_v58, %v2564_v50  ;;  %v2574_v55 = vld [vmem:[#allocation2 + $0x168] sm:$0xff]  ;;  %v2575_v63 = vld [vmem:[#allocation2 + $0x170] sm:$0xff] }
  0xc6   : > { %v3291_v50 = vld [vmem:[#allocation2 + $0x52] sm:$0xff]  ;;  %v2922_v58 = vld [vmem:[#allocation2 + $0x61] sm:$0xff] }
  0xc7   : > { %v3353_v19 = vpack.c.bf16 %v3291_v50, %v3290_v49 }
  0xca   : > { %4841 = vmatmul.mubr.bf16.gmra.mxu0 %v5576_v25 }
  0xcb   : > { %4793 = vmatmul.mubr.bf16.gmra.mxu1 %v5573_v59  ;;  %4908 = vmatprep.mubr.bf16.mxu0 %v2612_v62 }
  0xcc   : > { %4860 = vmatprep.mubr.bf16.mxu1 %v5344_v4  ;;  %v2554_v4 = vld [vmem:[#allocation2 + $0x78] sm:$0xff] }
  0xd2   : > { %4909 = vmatmul.mubr.bf16.vlgmr.msra.gmra.mxu0 %v2613_v0 }
  0xd3   : > { %4861 = vmatmul.mubr.bf16.vlgmr.msra.gmra.mxu1 %v5349_v6  ;;  %4989 = vmatpush3.bf16.msra.mxu0 %v5134_v51  ;;  %v2615_v6 = vpack.c.bf16 %v2555_v10, %v2554_v4  ;;  %v2572_v51 = vld [vmem:[#allocation2 + $0x150] sm:$0xff]  ;;  %v2625_v4 = vpack.c.bf16 %v2575_v63, %v2574_v55  ;;  %v3294_v55 = vld [vmem:[#allocation2 + $0x7a] sm:$0xff]  ;;  %v3295_v63 = vld [vmem:[#allocation2 + $0x82] sm:$0xff] }
  0xd4   : > { %4941 = vmatpush3.bf16.msra.mxu1 %v5133_v38  ;;  %4864 = vmatprep.mubr.bf16.mxu1 %v5370_v20  ;;  %v5139_v20 = vld [vmem:[%s6102_s1 + $0x1e0] sm:$0xff]   ;;  %v2624_v62 = vpack.c.bf16 %v2573_v31, %v2572_v51 }
  0xd5   : > { %4912 = vmatprep.mubr.bf16.mxu0 %v2614_v1  ;;  %4942 = vmatprep.subr.bf16.mxu1 %v5135_v2  ;;  %v2924_v31 = vld [vmem:[#allocation2 + $0x79] sm:$0xff] }
  0xd6   : > { %4990 = vmatprep.subr.bf16.mxu0 %v5136_v7 }
  0xd7   : > { %4991 = vmatpush3.bf16.msra.mxu0 %v5136_v7 }
  0xd8   : > { %4943 = vmatpush3.bf16.msra.mxu1 %v5135_v2  ;;  %4992 = vmatprep.subr.bf16.mxu0 %v5138_v16 }
  0xd9   : > { %4944 = vmatprep.subr.bf16.mxu1 %v5137_v15 }
  0xda   : > { %4913 = vmatmul.mubr.bf16.gmra.mxu0 %v2615_v6 }
  0xdb   : > { %4865 = vmatmul.mubr.bf16.gmra.mxu1 %v5375_v22  ;;  %4916 = vmatprep.mubr.bf16.mxu0 %v2616_v23  ;;  %v5142_v22 = vld [vmem:[%s6102_s1 + $0x218] sm:$0xff]  }
  0xdc   : > { %4868 = vmatprep.mubr.bf16.mxu1 %v5396_v35  ;;  %4945 = vmatpush3.bf16.msra.mxu1 %v5137_v15  ;;  %v5143_v35 = vld [vmem:[%s6102_s1 + $0x1d0] sm:$0xff]  }
  0xdd   : > { %4993 = vmatpush3.bf16.msra.mxu0 %v5138_v16  ;;  %4946 = vmatprep.subr.bf16.mxu1 %v5139_v20  ;;  %v2208_v15 = vld [vmem:[#allocation2 + $0x18a] sm:$0xff] }
  0xde   : > { %4994 = vmatprep.subr.bf16.mxu0 %v5140_v26  ;;  %v2918_v16 = vld [vmem:[#allocation2 + $0x31] sm:$0xff] }
  0xe0   : > { %4947 = vmatpush3.bf16.msra.mxu1 %v5139_v20  ;;  %v2919_v20 = vld [vmem:[#allocation2 + $0x39] sm:$0xff] }
  0xe1   : > { %4995 = vmatpush3.bf16.msra.mxu0 %v5140_v26  ;;  %4948 = vmatprep.subr.bf16.mxu1 %v5141_v40  ;;  %v3288_v26 = vld [vmem:[#allocation2 + $0x32] sm:$0xff] }
  0xe2   : > { %4996 = vmatprep.subr.bf16.mxu0 %v5142_v22  ;;  %4917 = vmatmul.mubr.bf16.gmra.mxu0 %v2617_v43 }
  0xe3   : > { %4869 = vmatmul.mubr.bf16.gmra.mxu1 %v5401_v39  ;;  %4920 = vmatprep.mubr.bf16.mxu0 %v2618_v44  ;;  %v5146_v39 = vld [vmem:[%s6102_s1 + $0x208] sm:$0xff]  }
  0xe4   : > { %4872 = vmatprep.mubr.bf16.mxu1 %v5423_v56  ;;  %4949 = vmatpush3.bf16.msra.mxu1 %v5141_v40  ;;  %v5147_v56 = vld [vmem:[%s6102_s1 + $0x1c0] sm:$0xff]   ;;  %v2982_v40 = vpack.c.bf16 %v2919_v20, %v2918_v16  ;;  %v3296_v20 = vld [vmem:[#allocation2 + $0x92] sm:$0xff] }
  0xe5   : > { %4997 = vmatpush3.bf16.msra.mxu0 %v5142_v22  ;;  %4950 = vmatprep.subr.bf16.mxu1 %v5143_v35  ;;  %v2927_v16 = vld [vmem:[#allocation2 + $0x99] sm:$0xff] }
  0xe6   : > { %4998 = vmatprep.subr.bf16.mxu0 %v5144_v46 }
  0xe8   : > { %4951 = vmatpush3.bf16.msra.mxu1 %v5143_v35 }
  0xe9   : > { %4999 = vmatpush3.bf16.msra.mxu0 %v5144_v46  ;;  %4952 = vmatprep.subr.bf16.mxu1 %v5145_v61  ;;  %v2920_v46 = vld [vmem:[#allocation2 + $0x49] sm:$0xff] }
  0xea   : > { %5000 = vmatprep.subr.bf16.mxu0 %v5146_v39  ;;  %4921 = vmatmul.mubr.bf16.gmra.mxu0 %v2619_v52  ;;  %v2923_v52 = vld [vmem:[#allocation2 + $0x69] sm:$0xff]  ;;  %v2983_v5 = vpack.c.bf16 %v2921_v48, %v2920_v46  ;;  %v3355_v46 = vpack.c.bf16 %v3295_v63, %v3294_v55 }
  0xeb   : > { %4873 = vmatmul.mubr.bf16.gmra.mxu1 %v5428_v60  ;;  %4924 = vmatprep.mubr.bf16.mxu0 %v2620_v3  ;;  %v2570_v60 = vld [vmem:[#allocation2 + $0x138] sm:$0xff]  ;;  %v3292_v3 = vld [vmem:[#allocation2 + $0x62] sm:$0xff]  ;;  %v2984_v24 = vpack.c.bf16 %v2923_v52, %v2922_v58 }
  0xec   : > { %4876 = vmatprep.mubr.bf16.mxu1 %v5449_v12  ;;  %4953 = vmatpush3.bf16.msra.mxu1 %v5145_v61  ;;  %v2571_v12 = vld [vmem:[#allocation2 + $0x140] sm:$0xff]  ;;  %v2931_v55 = vld [vmem:[#allocation2 + $0xc9] sm:$0xff] }
  0xed   : > { %5001 = vmatpush3.bf16.msra.mxu0 %v5146_v39  ;;  %4954 = vmatprep.subr.bf16.mxu1 %v5147_v56  ;;  %v2623_v18 = vpack.c.bf16 %v2571_v12, %v2570_v60  ;;  %v3300_v63 = vld [vmem:[#allocation2 + $0xc2] sm:$0xff] }
  0xee   : > { %5002 = vmatprep.subr.bf16.mxu0 %v5148_v8 }
  0xf0   : > { %4955 = vmatpush3.bf16.msra.mxu1 %v5147_v56  ;;  %v3293_v56 = vld [vmem:[#allocation2 + $0x6a] sm:$0xff] }
  0xf1   : > { %5003 = vmatpush3.bf16.msra.mxu0 %v5148_v8 }
  0xf2   : > { %v5631_v34 = vpop.f32.mrf.mxu0  ;;  %4925 = vmatmul.mubr.bf16.gmra.mxu0 %v2621_v36  ;;  %v3354_v36 = vpack.c.bf16 %v3293_v56, %v3292_v3 }
  0xf3   : > { %v5633_v41 = vpop.f32.mrf.mxu1  ;;  %4877 = vmatmul.mubr.bf16.gmra.mxu1 %v5454_v14  ;;  %4928 = vmatprep.mubr.bf16.mxu0 %v2622_v21 }
  0xf4   : > { %4880 = vmatprep.mubr.bf16.mxu1 %v5463_v28  ;;  %v5637_v54 = vpop.f32.mrf.mxu0 }
  0xf5   : > { %v5639_v38 = vpop.f32.mrf.mxu1 }
  0xf6   : > { %v5641_v53 = vpop.f32.mrf.mxu0 }
  0xf7   : > { %v5643_v9 = vpop.f32.mrf.mxu1 }
  0xf8   : > { %v5645_v37 = vpop.f32.mrf.mxu0 }
  0xf9   : > { %v5647_v14 = vpop.f32.mrf.mxu1 }
  0xfa   : > { %v5649_v28 = vpop.f32.mrf.mxu0  ;;  %4929 = vmatmul.mubr.bf16.gmra.mxu0 %v2623_v18  ;;  %v2925_v18 = vld [vmem:[#allocation2 + $0x81] sm:$0xff] }
  0xfb   : > { %v5651_v42 = vpop.f32.mrf.mxu1  ;;  %4881 = vmatmul.mubr.bf16.gmra.mxu1 %v5468_v30  ;;  %4932 = vmatprep.mubr.bf16.mxu0 %v2624_v62 }
  0xfc   : > { %4884 = vmatprep.mubr.bf16.mxu1 %v5477_v45  ;;  %v5655_v0 = vpop.f32.mrf.mxu0  ;;  %v2207_v45 = vld [vmem:[#allocation2 + $0x182] sm:$0xff] }
  0xfd   : > { %v5657_v1 = vpop.f32.mrf.mxu1 }
  0xfe   : > { %v5659_v2 = vpop.f32.mrf.mxu0 }
  0xff   : > { %v5661_v7 = vpop.f32.mrf.mxu1 }
 0x100   : > { %v5663_v10 = vpop.f32.mrf.mxu0 }
 0x101   : > { %v5665_v11 = vpop.f32.mrf.mxu1 }
 0x102   : > { %v5667_v30 = vpop.f32.mrf.mxu0  ;;  %4933 = vmatmul.mubr.bf16.gmra.mxu0 %v2625_v4  ;;  %v2926_v4 = vld [vmem:[#allocation2 + $0x91] sm:$0xff] }
 0x103   : > { %v5669_v13 = vpop.f32.mrf.mxu1  ;;  %4885 = vmatmul.mubr.bf16.gmra.mxu1 %v5482_v47  ;;  %4936 = vmatprep.mubr.bf16.mxu0 %v5573_v59  ;;  %v5682_v47 = vpack.c.bf16 %v2208_v15, %v2207_v45  ;;  %v3352_v59 = vpack.c.bf16 %v3289_v27, %v3288_v26  ;;  %v3297_v26 = vld [vmem:[#allocation2 + $0x9a] sm:$0xff]  ;;  %v2986_v49 = vpack.c.bf16 %v2927_v16, %v2926_v4 }
 0x104   : > { %4888 = vmatprep.mubr.bf16.mxu1 %v5491_v57  ;;  %v5674_v6 = vpop.f32.mrf.mxu0  ;;  %v2627_v57 = vpack.c.bf16 %v5149_v33, %v5149_v33  ;;  %v3356_v50 = vpack.c.bf16 %v3297_v26, %v3296_v20 }
 0x105   : > { %v5676_v23 = vpop.f32.mrf.mxu1 }
 0x106   : > { %v5678_v29 = vpop.f32.mrf.mxu0 }
 0x107   : > { %v5680_v32 = vpop.f32.mrf.mxu1 }
 0x108   : > { %v5684_v22 = vpop.f32.mrf.mxu0 }
 0x109   : > { %v5686_v43 = vpop.f32.mrf.mxu1 }
 0x10a   : > { %v5688_v44 = vpop.f32.mrf.mxu0  ;;  %4937 = vmatmul.mubr.bf16.gmra.mxu0 %v2627_v57 }
 0x10b   : > { %v5690_v35 = vpop.f32.mrf.mxu1  ;;  %4889 = vmatmul.mubr.bf16.gmra.mxu1 %v5682_v47  ;;  %5004 = vmatprep.mubr.bf16.mxu0 %v3352_v59  ;;  %v2985_v59 = vpack.c.bf16 %v2925_v18, %v2924_v31  ;;  %v2930_v31 = vld [vmem:[#allocation2 + $0xc1] sm:$0xff] }
 0x10c   : > { %4956 = vmatprep.mubr.bf16.mxu1 %v2982_v40  ;;  %v5693_v61 = vpop.f32.mrf.mxu0 }
 0x10d   : > { %v5695_v39 = vpop.f32.mrf.mxu1 }
 0x10e   : > { %v5697_v8 = vpop.f32.mrf.mxu0 }
 0x10f   : > { %v5699_v17 = vpop.f32.mrf.mxu1 }
 0x110   : > { %v5701_v21 = vpop.f32.mrf.mxu0 }
 0x111   : > { %v5703_v60 = vpop.f32.mrf.mxu1 }
 0x112   : > { %v4718_v51 = vpop.f32.mrf.mxu0  ;;  %5005 = vmatmul.mubr.bf16.vlgmr.msra.gmra.mxu0 %v3353_v19 }
 0x113   : > { %v4670_v12 = vpop.f32.mrf.mxu1  ;;  %4957 = vmatmul.mubr.bf16.vlgmr.msra.gmra.mxu1 %v2983_v5  ;;  %5008 = vmatprep.mubr.bf16.mxu0 %v3354_v36 }
 0x114   : > { %v1005_v62 = vadd.f32 %v4670_v12, %v5631_v34  ;;  %4960 = vmatprep.mubr.bf16.mxu1 %v2984_v24  ;;  %v1246_v15 = vpop.f32.mrf.mxu0  ;;  %v2929_v24 = vld [vmem:[#allocation2 + $0xb1] sm:$0xff] }
 0x115   : > { %v876_v45 = vpop.f32.mrf.mxu1 }
 0x116   : > { %v5706_v27 = vadd.f32 %v4718_v51, %v1005_v62  ;;  %v1003_v33 = vadd.f32 %v876_v45, %v5637_v54  ;;  %v4719_v40 = vpop.f32.mrf.mxu0  ;;  %v2928_v54 = vld [vmem:[#allocation2 + $0xa9] sm:$0xff]  ;;  %v3299_v51 = vld [vmem:[#allocation2 + $0xb2] sm:$0xff] }
 0x117   : > { %v4671_v57 = vpop.f32.mrf.mxu1  ;;  %v2987_v20 = vpack.c.bf16 %v2929_v24, %v2928_v54  ;;  %v2934_v54 = vld [vmem:[#allocation2 + $0xf1] sm:$0xff] }
 0x118   : > { %v5709_v48 = vadd.f32 %v1246_v15, %v1003_v33  ;;  %v1006_v34 = vadd.f32 %v4671_v57, %v5641_v53  ;;  %v1249_v52 = vpop.f32.mrf.mxu0  ;;  %v3298_v53 = vld [vmem:[#allocation2 + $0xaa] sm:$0xff]  ;;  %v2988_v57 = vpack.c.bf16 %v2931_v55, %v2930_v31 }
 0x119   : > { %v879_v58 = vpop.f32.mrf.mxu1  ;;  %v3357_v26 = vpack.c.bf16 %v3299_v51, %v3298_v53  ;;  %v2935_v53 = vld [vmem:[#allocation2 + $0xf9] sm:$0xff] }
 0x11a   : > { %v5712_v3 = vadd.f32 %v4719_v40, %v1006_v34  ;;  %v1004_v56 = vadd.f32 %v879_v58, %v5645_v37  ;;  %v4722_v19 = vpop.f32.mrf.mxu0  ;;  %5009 = vmatmul.mubr.bf16.gmra.mxu0 %v3355_v46  ;;  %v3301_v37 = vld [vmem:[#allocation2 + $0xca] sm:$0xff]  ;;  %v3304_v51 = vld [vmem:[#allocation2 + $0xf2] sm:$0xff] }
 0x11b   : > { %v4674_v5 = vpop.f32.mrf.mxu1  ;;  %4961 = vmatmul.mubr.bf16.gmra.mxu1 %v2985_v59  ;;  %5012 = vmatprep.mubr.bf16.mxu0 %v3356_v50  ;;  %v3358_v40 = vpack.c.bf16 %v3301_v37, %v3300_v63 }
 0x11c   : > { %v5715_v36 = vadd.f32 %v1249_v52, %v1004_v56  ;;  %v1009_v12 = vadd.f32 %v4674_v5, %v5649_v28  ;;  %4964 = vmatprep.mubr.bf16.mxu1 %v2986_v49  ;;  %v1262_v62 = vpop.f32.mrf.mxu0  ;;  %v2933_v52 = vld [vmem:[#allocation2 + $0xe1] sm:$0xff] }
 0x11d   : > { %v892_v18 = vpop.f32.mrf.mxu1 }
 0x11e   : > { %v5718_v4 = vadd.f32 %v4722_v19, %v1009_v12  ;;  %v1007_v45 = vadd.f32 %v892_v18, %v5655_v0  ;;  %v4723_v16 = vpop.f32.mrf.mxu0  ;;  %v2932_v0 = vld [vmem:[#allocation2 + $0xd9] sm:$0xff]  ;;  %v3303_v19 = vld [vmem:[#allocation2 + $0xe2] sm:$0xff] }
 0x11f   : > { %v4675_v15 = vpop.f32.mrf.mxu1  ;;  %v2989_v63 = vpack.c.bf16 %v2933_v52, %v2932_v0  ;;  %v2938_v0 = vld [vmem:[#allocation2 + $0x121] sm:$0xff] }
 0x120   : > { %v5721_v33 = vadd.f32 %v1262_v62, %v1007_v45  ;;  %v1010_v28 = vadd.f32 %v4675_v15, %v5659_v2  ;;  %v1265_v46 = vpop.f32.mrf.mxu0  ;;  %v3302_v2 = vld [vmem:[#allocation2 + $0xda] sm:$0xff]  ;;  %v2990_v15 = vpack.c.bf16 %v2935_v53, %v2934_v54 }
 0x121   : > { %v895_v59 = vpop.f32.mrf.mxu1  ;;  %v3359_v37 = vpack.c.bf16 %v3303_v19, %v3302_v2  ;;  %v2939_v2 = vld [vmem:[#allocation2 + $0x129] sm:$0xff] }
 0x122   : > { %v5724_v34 = vadd.f32 %v4723_v16, %v1010_v28  ;;  %v1008_v49 = vadd.f32 %v895_v59, %v5663_v10  ;;  %v4726_v58 = vpop.f32.mrf.mxu0  ;;  %5013 = vmatmul.mubr.bf16.gmra.mxu0 %v3357_v26  ;;  %v3305_v10 = vld [vmem:[#allocation2 + $0xfa] sm:$0xff]  ;;  %v3308_v19 = vld [vmem:[#allocation2 + $0x122] sm:$0xff] }
 0x123   : > { %v4678_v50 = vpop.f32.mrf.mxu1  ;;  %4965 = vmatmul.mubr.bf16.gmra.mxu1 %v2987_v20  ;;  %5016 = vmatprep.mubr.bf16.mxu0 %v3358_v40  ;;  %v3360_v16 = vpack.c.bf16 %v3305_v10, %v3304_v51 }
 0x124   : > { %v5727_v56 = vadd.f32 %v1265_v46, %v1008_v49  ;;  %v1013_v5 = vadd.f32 %v4678_v50, %v5667_v30  ;;  %4968 = vmatprep.mubr.bf16.mxu1 %v2988_v57  ;;  %v1278_v12 = vpop.f32.mrf.mxu0  ;;  %v2937_v46 = vld [vmem:[#allocation2 + $0x111] sm:$0xff] }
 0x125   : > { %v908_v24 = vpop.f32.mrf.mxu1 }
 0x126   : > { %v5730_v31 = vadd.f32 %v4726_v58, %v1013_v5  ;;  %v1011_v18 = vadd.f32 %v908_v24, %v5674_v6  ;;  %v4727_v55 = vpop.f32.mrf.mxu0  ;;  %v2936_v6 = vld [vmem:[#allocation2 + $0x109] sm:$0xff]  ;;  %v3307_v58 = vld [vmem:[#allocation2 + $0x112] sm:$0xff] }
 0x127   : > { %v4679_v62 = vpop.f32.mrf.mxu1  ;;  %v2991_v51 = vpack.c.bf16 %v2937_v46, %v2936_v6  ;;  %v2942_v6 = vld [vmem:[#allocation2 + $0x151] sm:$0xff] }
 0x128   : > { %v5733_v45 = vadd.f32 %v1278_v12, %v1011_v18  ;;  %v1014_v30 = vadd.f32 %v4679_v62, %v5678_v29  ;;  %v1281_v26 = vpop.f32.mrf.mxu0  ;;  %v3306_v29 = vld [vmem:[#allocation2 + $0x10a] sm:$0xff]  ;;  %v2992_v62 = vpack.c.bf16 %v2939_v2, %v2938_v0 }
 0x129   : > { %v911_v20 = vpop.f32.mrf.mxu1  ;;  %v3361_v10 = vpack.c.bf16 %v3307_v58, %v3306_v29  ;;  %v2943_v29 = vld [vmem:[#allocation2 + $0x159] sm:$0xff] }
 0x12a   : > { %v5736_v28 = vadd.f32 %v4727_v55, %v1014_v30  ;;  %v1012_v57 = vadd.f32 %v911_v20, %v5684_v22  ;;  %v4730_v59 = vpop.f32.mrf.mxu0  ;;  %5017 = vmatmul.mubr.bf16.gmra.mxu0 %v3359_v37  ;;  %v3309_v22 = vld [vmem:[#allocation2 + $0x12a] sm:$0xff]  ;;  %v3312_v58 = vld [vmem:[#allocation2 + $0x152] sm:$0xff] }
 0x12b   : > { %v4682_v40 = vpop.f32.mrf.mxu1  ;;  %4969 = vmatmul.mubr.bf16.gmra.mxu1 %v2989_v63  ;;  %5020 = vmatprep.mubr.bf16.mxu0 %v3360_v16  ;;  %v3362_v55 = vpack.c.bf16 %v3309_v22, %v3308_v19 }
 0x12c   : > { %v5739_v49 = vadd.f32 %v1281_v26, %v1012_v57  ;;  %v1017_v50 = vadd.f32 %v4682_v40, %v5688_v44  ;;  %4972 = vmatprep.mubr.bf16.mxu1 %v2990_v15  ;;  %v1294_v5 = vpop.f32.mrf.mxu0  ;;  %v2941_v26 = vld [vmem:[#allocation2 + $0x141] sm:$0xff] }
 0x12d   : > { %v924_v52 = vpop.f32.mrf.mxu1 }
 0x12e   : > { %v5742_v54 = vadd.f32 %v4730_v59, %v1017_v50  ;;  %v1015_v24 = vadd.f32 %v924_v52, %v5693_v61  ;;  %v4731_v53 = vpop.f32.mrf.mxu0  ;;  %v2940_v61 = vld [vmem:[#allocation2 + $0x139] sm:$0xff]  ;;  %v3311_v59 = vld [vmem:[#allocation2 + $0x142] sm:$0xff] }
 0x12f   : > { %v4683_v12 = vpop.f32.mrf.mxu1  ;;  %v2993_v19 = vpack.c.bf16 %v2941_v26, %v2940_v61 }
 0x130   : > { %v5745_v18 = vadd.f32 %v1294_v5, %v1015_v24  ;;  %v1018_v44 = vadd.f32 %v4683_v12, %v5697_v8  ;;  %v1297_v37 = vpop.f32.mrf.mxu0  ;;  %v3310_v8 = vld [vmem:[#allocation2 + $0x13a] sm:$0xff]  ;;  %v2994_v12 = vpack.c.bf16 %v2943_v29, %v2942_v6 }
 0x131   : > { %v927_v63 = vpop.f32.mrf.mxu1  ;;  %v3363_v22 = vpack.c.bf16 %v3311_v59, %v3310_v8 }
 0x132   : > { %v5748_v30 = vadd.f32 %v4731_v53, %v1018_v44  ;;  %v1016_v15 = vadd.f32 %v927_v63, %v5701_v21  ;;  %v4734_v20 = vpop.f32.mrf.mxu0  ;;  %5021 = vmatmul.mubr.bf16.gmra.mxu0 %v3361_v10  ;;  %v3313_v21 = vld [vmem:[#allocation2 + $0x15a] sm:$0xff] }
 0x133   : > { %v4686_v16 = vpop.f32.mrf.mxu1  ;;  %4973 = vmatmul.mubr.bf16.gmra.mxu1 %v2991_v51  ;;  %5024 = vmatprep.mubr.bf16.mxu0 %v3362_v55  ;;  %v3364_v53 = vpack.c.bf16 %v3313_v21, %v3312_v58 }
 0x134   : > { %v5751_v57 = vadd.f32 %v1297_v37, %v1016_v15  ;;  %v1021_v40 = vadd.f32 %v4686_v16, %v5633_v41  ;;  %4976 = vmatprep.mubr.bf16.mxu1 %v2992_v62  ;;  %v1310_v50 = vpop.f32.mrf.mxu0  ;;  %v3314_v16 = vld [vmem:[#allocation2 + $0x16a] sm:$0xff] }
 0x135   : > { %v940_v46 = vpop.f32.mrf.mxu1 }
 0x136   : > { %v5754_v0 = vadd.f32 %v4734_v20, %v1021_v40  ;;  %v1019_v52 = vadd.f32 %v940_v46, %v5639_v38  ;;  %v4735_v2 = vpop.f32.mrf.mxu0  ;;  %v2944_v38 = vld [vmem:[#allocation2 + $0x169] sm:$0xff]  ;;  %v3315_v20 = vld [vmem:[#allocation2 + $0x172] sm:$0xff] }
 0x137   : > { %v4687_v5 = vpop.f32.mrf.mxu1  ;;  %v3365_v46 = vpack.c.bf16 %v3315_v20, %v3314_v16 }
 0x138   : > { %v5757_v24 = vadd.f32 %v1310_v50, %v1019_v52  ;;  %v1022_v41 = vadd.f32 %v4687_v5, %v5643_v9  ;;  %v1313_v10 = vpop.f32.mrf.mxu0  ;;  %v2945_v9 = vld [vmem:[#allocation2 + $0x171] sm:$0xff] }
 0x139   : > { %v943_v51 = vpop.f32.mrf.mxu1  ;;  %v2995_v6 = vpack.c.bf16 %v2945_v9, %v2944_v38 }
 0x13a   : > { %v5760_v44 = vadd.f32 %v4735_v2, %v1022_v41  ;;  %v1020_v62 = vadd.f32 %v943_v51, %v5647_v14  ;;  %v4738_v63 = vpop.f32.mrf.mxu0  ;;  %5025 = vmatmul.mubr.bf16.gmra.mxu0 %v3363_v22  ;;  %v3318_v41 = vld [vmem:[#allocation2 + $0x19a] sm:$0xff] }
 0x13b   : > { %v4690_v55 = vpop.f32.mrf.mxu1  ;;  %4977 = vmatmul.mubr.bf16.gmra.mxu1 %v2993_v19  ;;  %5028 = vmatprep.mubr.bf16.mxu0 %v3364_v53  ;;  %v2948_v19 = vld [vmem:[#allocation2 + $0x199] sm:$0xff] }
 0x13c   : > { %v5763_v37 = vadd.f32 %v1313_v10, %v1020_v62  ;;  %v1025_v15 = vadd.f32 %v4690_v55, %v5651_v42  ;;  %4980 = vmatprep.mubr.bf16.mxu1 %v2994_v12  ;;  %v1326_v26 = vpop.f32.mrf.mxu0  ;;  %v3319_v12 = vld [vmem:[#allocation2 + $0x1a2] sm:$0xff] }
 0x13d   : > { %v956_v61 = vpop.f32.mrf.mxu1  ;;  %v3367_v38 = vpack.c.bf16 %v3319_v12, %v3318_v41 }
 0x13e   : > { %v5766_v40 = vadd.f32 %v4738_v63, %v1025_v15  ;;  %v1023_v14 = vadd.f32 %v956_v61, %v5657_v1  ;;  %v4739_v59 = vpop.f32.mrf.mxu0 }
 0x13f   : > { %v4691_v8 = vpop.f32.mrf.mxu1 }
 0x140   : > { %v5769_v50 = vadd.f32 %v1326_v26, %v1023_v14  ;;  %v1026_v29 = vadd.f32 %v4691_v8, %v5661_v7  ;;  %v1329_v58 = vpop.f32.mrf.mxu0  ;;  %v2949_v7 = vld [vmem:[#allocation2 + $0x1a1] sm:$0xff] }
 0x141   : > { %v959_v42 = vpop.f32.mrf.mxu1  ;;  %v2997_v63 = vpack.c.bf16 %v2949_v7, %v2948_v19 }
 0x142   : > { %v5772_v21 = vadd.f32 %v4739_v59, %v1026_v29  ;;  %v1024_v52 = vadd.f32 %v959_v42, %v5665_v11  ;;  %v4742_v2 = vpop.f32.mrf.mxu0  ;;  %5029 = vmatmul.mubr.bf16.gmra.mxu0 %v3365_v46 }
 0x143   : > { %v4694_v5 = vpop.f32.mrf.mxu1  ;;  %4981 = vmatmul.mubr.bf16.gmra.mxu1 %v2995_v6  ;;  %5032 = vmatprep.mubr.bf16.mxu0 %v5682_v47 }
 0x144   : > { %v5775_v1 = vadd.f32 %v1329_v58, %v1024_v52  ;;  %v1029_v22 = vadd.f32 %v4694_v5, %v5669_v13  ;;  %4984 = vmatprep.mubr.bf16.mxu1 %v5576_v25  ;;  %v1342_v51 = vpop.f32.mrf.mxu0 }
 0x145   : > { %v972_v53 = vpop.f32.mrf.mxu1 }
 0x146   : > { %v5780_v10 = vadd.f32 %v4742_v2, %v1029_v22  ;;  %v1027_v11 = vadd.f32 %v972_v53, %v5676_v23  ;;  %v4743_v55 = vpop.f32.mrf.mxu0 }
 0x147   : > { %v4695_v62 = vpop.f32.mrf.mxu1 }
 0x148   : > { %v5783_v15 = vadd.f32 %v1342_v51, %v1027_v11  ;;  %v1030_v13 = vadd.f32 %v4695_v62, %v5680_v32  ;;  %v1345_v9 = vpop.f32.mrf.mxu0 }
 0x149   : > { %v975_v25 = vpop.f32.mrf.mxu1 }
 0x14a   : > { %v5786_v47 = vadd.f32 %v4743_v55, %v1030_v13  ;;  %v1028_v16 = vadd.f32 %v975_v25, %v5686_v43  ;;  %v4746_v61 = vpop.f32.mrf.mxu0  ;;  %5033 = vmatmul.mubr.bf16.gmra.mxu0 %v3367_v38 }
 0x14b   : > { %v4698_v20 = vpop.f32.mrf.mxu1  ;;  %4985 = vmatmul.mubr.bf16.gmra.mxu1 %v2997_v63 }
 0x14c   : > { %v5789_v26 = vadd.f32 %v1345_v9, %v1028_v16  ;;  %v1033_v23 = vadd.f32 %v4698_v20, %v5690_v35  ;;  %v1358_v8 = vpop.f32.mrf.mxu0 }
 0x14d   : > { %v988_v14 = vpop.f32.mrf.mxu1 }
 0x14e   : > { %v5792_v59 = vadd.f32 %v4746_v61, %v1033_v23  ;;  %v1031_v32 = vadd.f32 %v988_v14, %v5695_v39  ;;  %v4747_v46 = vpop.f32.mrf.mxu0 }
 0x14f   : > { %v4699_v6 = vpop.f32.mrf.mxu1 }
 0x150   : > { %v5795_v29 = vadd.f32 %v1358_v8, %v1031_v32  ;;  %v1034_v43 = vadd.f32 %v4699_v6, %v5699_v17  ;;  %v1361_v58 = vpop.f32.mrf.mxu0 }
 0x151   : > { %v991_v42 = vpop.f32.mrf.mxu1 }
 0x152   : > { %v5798_v52 = vadd.f32 %v4747_v46, %v1034_v43  ;;  %v1032_v5 = vadd.f32 %v991_v42, %v5703_v60  ;;  %v4814_v35 = vpop.f32.mrf.mxu0 }
 0x153   : > { %v4766_v2 = vpop.f32.mrf.mxu1 }
 0x154   : > { %v5801_v19 = vadd.f32 %v1361_v58, %v1032_v5  ;;  %v1745_v22 = vadd.f32 %v4766_v2, %v5706_v27  ;;  %v1986_v39 = vpop.f32.mrf.mxu0 }
 0x155   : > { %v1616_v7 = vpop.f32.mrf.mxu1 }
 0x156   : > { %v5804_v41 = vadd.f32 %v4814_v35, %v1745_v22  ;;  %v1743_v12 = vadd.f32 %v1616_v7, %v5709_v48  ;;  %v4815_v17 = vpop.f32.mrf.mxu0 }
 0x157   : > { %v4767_v53 = vpop.f32.mrf.mxu1 }
 0x158   : > { %v5807_v51 = vadd.f32 %v1986_v39, %v1743_v12  ;;  %v1746_v11 = vadd.f32 %v4767_v53, %v5712_v3  ;;  %v1989_v60 = vpop.f32.mrf.mxu0 }
 0x159   : > { %v1619_v62 = vpop.f32.mrf.mxu1 }
 0x15a   : > { %v5810_v55 = vadd.f32 %v4815_v17, %v1746_v11  ;;  %v1744_v63 = vadd.f32 %v1619_v62, %v5715_v36  ;;  %v4818_v27 = vpop.f32.mrf.mxu0 }
 0x15b   : > { %v4770_v38 = vpop.f32.mrf.mxu1 }
 0x15c   : > { %v5813_v13 = vadd.f32 %v1989_v60, %v1744_v63  ;;  %v1749_v25 = vadd.f32 %v4770_v38, %v5718_v4  ;;  %v2002_v48 = vpop.f32.mrf.mxu0 }
 0x15d   : > { %v1632_v9 = vpop.f32.mrf.mxu1 }
 0x15e   : > { %v5816_v16 = vadd.f32 %v4818_v27, %v1749_v25  ;;  %v1747_v20 = vadd.f32 %v1632_v9, %v5721_v33  ;;  %v4819_v3 = vpop.f32.mrf.mxu0 }
 0x15f   : > { %v4771_v61 = vpop.f32.mrf.mxu1 }
 0x160   : > { %v5819_v23 = vadd.f32 %v2002_v48, %v1747_v20  ;;  %v1750_v14 = vadd.f32 %v4771_v61, %v5724_v34  ;;  %v2005_v36 = vpop.f32.mrf.mxu0 }
 0x161   : > { %v1635_v8 = vpop.f32.mrf.mxu1 }
 0x162   : > { %v5822_v32 = vadd.f32 %v4819_v3, %v1750_v14  ;;  %v1748_v6 = vadd.f32 %v1635_v8, %v5727_v56  ;;  %v4822_v4 = vpop.f32.mrf.mxu0 }
 0x163   : > { %v4774_v46 = vpop.f32.mrf.mxu1 }
 0x164   : > { %v5825_v43 = vadd.f32 %v2005_v36, %v1748_v6  ;;  %v1753_v42 = vadd.f32 %v4774_v46, %v5730_v31  ;;  %v2018_v33 = vpop.f32.mrf.mxu0 }
 0x165   : > { %v1648_v58 = vpop.f32.mrf.mxu1 }
 0x166   : > { %v5828_v5 = vadd.f32 %v4822_v4, %v1753_v42  ;;  %v1751_v2 = vadd.f32 %v1648_v58, %v5733_v45  ;;  %v4823_v34 = vpop.f32.mrf.mxu0 }
 0x167   : > { %v4775_v35 = vpop.f32.mrf.mxu1 }
 0x168   : > { %v5831_v22 = vadd.f32 %v2018_v33, %v1751_v2  ;;  %v1754_v7 = vadd.f32 %v4775_v35, %v5736_v28  ;;  %v2021_v56 = vpop.f32.mrf.mxu0 }
 0x169   : > { %v1651_v39 = vpop.f32.mrf.mxu1 }
 0x16a   : > { %v5834_v12 = vadd.f32 %v4823_v34, %v1754_v7  ;;  %v1752_v53 = vadd.f32 %v1651_v39, %v5739_v49  ;;  %v4826_v31 = vpop.f32.mrf.mxu0 }
 0x16b   : > { %v4778_v17 = vpop.f32.mrf.mxu1 }
 0x16c   : > { %v5837_v11 = vadd.f32 %v2021_v56, %v1752_v53  ;;  %v1757_v62 = vadd.f32 %v4778_v17, %v5742_v54  ;;  %v2034_v45 = vpop.f32.mrf.mxu0 }
 0x16d   : > { %v1664_v60 = vpop.f32.mrf.mxu1 }
 0x16e   : > { %v5840_v63 = vadd.f32 %v4826_v31, %v1757_v62  ;;  %v1755_v38 = vadd.f32 %v1664_v60, %v5745_v18  ;;  %v4827_v28 = vpop.f32.mrf.mxu0 }
 0x16f   : > { %v4779_v27 = vpop.f32.mrf.mxu1 }
 0x170   : > { %v5843_v25 = vadd.f32 %v2034_v45, %v1755_v38  ;;  %v1758_v9 = vadd.f32 %v4779_v27, %v5748_v30  ;;  %v2037_v49 = vpop.f32.mrf.mxu0 }
 0x171   : > { %v1667_v48 = vpop.f32.mrf.mxu1 }
 0x172   : > { %v5846_v20 = vadd.f32 %v4827_v28, %v1758_v9  ;;  %v1756_v61 = vadd.f32 %v1667_v48, %v5751_v57  ;;  %v4830_v54 = vpop.f32.mrf.mxu0 }
 0x173   : > { %v4782_v3 = vpop.f32.mrf.mxu1 }
 0x174   : > { %v5849_v14 = vadd.f32 %v2037_v49, %v1756_v61  ;;  %v1761_v8 = vadd.f32 %v4782_v3, %v5754_v0  ;;  %v2050_v18 = vpop.f32.mrf.mxu0 }
 0x175   : > { %v1680_v36 = vpop.f32.mrf.mxu1 }
 0x176   : > { %v5852_v6 = vadd.f32 %v4830_v54, %v1761_v8  ;;  %v1759_v46 = vadd.f32 %v1680_v36, %v5757_v24  ;;  %v4831_v30 = vpop.f32.mrf.mxu0 }
 0x177   : > { %v4783_v4 = vpop.f32.mrf.mxu1 }
 0x178   : > { %v5855_v42 = vadd.f32 %v2050_v18, %v1759_v46  ;;  %v1762_v58 = vadd.f32 %v4783_v4, %v5760_v44  ;;  %v2053_v57 = vpop.f32.mrf.mxu0 }
 0x179   : > { %v1683_v33 = vpop.f32.mrf.mxu1 }
 0x17a   : > { %v5858_v2 = vadd.f32 %v4831_v30, %v1762_v58  ;;  %v1760_v35 = vadd.f32 %v1683_v33, %v5763_v37  ;;  %v4834_v0 = vpop.f32.mrf.mxu0 }
 0x17b   : > { %v4786_v34 = vpop.f32.mrf.mxu1 }
 0x17c   : > { %v5861_v7 = vadd.f32 %v2053_v57, %v1760_v35  ;;  %v1765_v39 = vadd.f32 %v4786_v34, %v5766_v40  ;;  %v2066_v24 = vpop.f32.mrf.mxu0 }
 0x17d   : > { %v1696_v56 = vpop.f32.mrf.mxu1 }
 0x17e   : > { %v5864_v53 = vadd.f32 %v4834_v0, %v1765_v39  ;;  %v1763_v17 = vadd.f32 %v1696_v56, %v5769_v50  ;;  %v4835_v44 = vpop.f32.mrf.mxu0 }
 0x17f   : > { %v4787_v31 = vpop.f32.mrf.mxu1 }
 0x180   : > { %v5867_v62 = vadd.f32 %v2066_v24, %v1763_v17  ;;  %v1766_v60 = vadd.f32 %v4787_v31, %v5772_v21  ;;  %v2069_v37 = vpop.f32.mrf.mxu0 }
 0x181   : > { %v1699_v45 = vpop.f32.mrf.mxu1 }
 0x182   : > { %v5870_v38 = vadd.f32 %v4835_v44, %v1766_v60  ;;  %v1764_v27 = vadd.f32 %v1699_v45, %v5775_v1  ;;  %v4838_v40 = vpop.f32.mrf.mxu0 }
 0x183   : > { %v4790_v28 = vpop.f32.mrf.mxu1 }
 0x184   : > { %v5873_v9 = vadd.f32 %v2069_v37, %v1764_v27  ;;  %v1769_v48 = vadd.f32 %v4790_v28, %v5780_v10  ;;  %v2082_v50 = vpop.f32.mrf.mxu0 }
 0x185   : > { %v1712_v49 = vpop.f32.mrf.mxu1 }
 0x186   : > { %v5876_v61 = vadd.f32 %v4838_v40, %v1769_v48  ;;  %v1767_v3 = vadd.f32 %v1712_v49, %v5783_v15  ;;  %v4839_v21 = vpop.f32.mrf.mxu0 }
 0x187   : > { %v4791_v54 = vpop.f32.mrf.mxu1 }
 0x188   : > { %v5879_v8 = vadd.f32 %v2082_v50, %v1767_v3  ;;  %v1770_v36 = vadd.f32 %v4791_v54, %v5786_v47  ;;  %v2085_v1 = vpop.f32.mrf.mxu0 }
 0x189   : > { %v1715_v18 = vpop.f32.mrf.mxu1 }
 0x18a   : > { %v5882_v46 = vadd.f32 %v4839_v21, %v1770_v36  ;;  %v1768_v4 = vadd.f32 %v1715_v18, %v5789_v26  ;;  %v4842_v10 = vpop.f32.mrf.mxu0 }
 0x18b   : > { %v4794_v30 = vpop.f32.mrf.mxu1 }
 0x18c   : > { %6104 = vst [vmem:[#allocation4_spill] sm:$0xff] %v5882_v46  ;;  %v5885_v58 = vadd.f32 %v2085_v1, %v1768_v4  ;;  %v1773_v33 = vadd.f32 %v4794_v30, %v5792_v59  ;;  %v2098_v15 = vpop.f32.mrf.mxu0 }
 0x18d   : > { %v1728_v57 = vpop.f32.mrf.mxu1 }
 0x18e   : > { %6105 = vst [vmem:[#allocation5_spill] sm:$0xff] %v5885_v58  ;;  %v5888_v35 = vadd.f32 %v4842_v10, %v1773_v33  ;;  %v1771_v34 = vadd.f32 %v1728_v57, %v5795_v29  ;;  %v4843_v47 = vpop.f32.mrf.mxu0 }
 0x18f   : > { %v4795_v0 = vpop.f32.mrf.mxu1 }
 0x190   : > { %v5891_v39 = vadd.f32 %v2098_v15, %v1771_v34  ;;  %v1774_v56 = vadd.f32 %v4795_v0, %v5798_v52  ;;  %v2101_v26 = vpop.f32.mrf.mxu0 }
 0x191   : > { %v1731_v24 = vpop.f32.mrf.mxu1 }
 0x192   : > { %v5894_v17 = vadd.f32 %v4843_v47, %v1774_v56  ;;  %v1772_v31 = vadd.f32 %v1731_v24, %v5801_v19  ;;  %v4910_v59 = vpop.f32.mrf.mxu0 }
 0x193   : > { %v4862_v44 = vpop.f32.mrf.mxu1 }
 0x194   : > { %6106 = vst [vmem:[#allocation6_spill] sm:$0xff] %v5894_v17  ;;  %v5897_v60 = vadd.f32 %v2101_v26, %v1772_v31  ;;  %v2485_v45 = vadd.f32 %v4862_v44, %v5804_v41  ;;  %v2727_v29 = vpop.f32.mrf.mxu0 }
 0x195   : > { %v2356_v37 = vpop.f32.mrf.mxu1 }
 0x196   : > { %6107 = vst [vmem:[#allocation7_spill] sm:$0xff] %v5897_v60  ;;  %v5900_v27 = vadd.f32 %v4910_v59, %v2485_v45  ;;  %v2483_v28 = vadd.f32 %v2356_v37, %v5807_v51  ;;  %v5905_v52 = vpop.f32.mrf.mxu0 }
 0x197   : > { %v5903_v40 = vpop.f32.mrf.mxu1 }
 0x198   : > { %v5907_v48 = vadd.f32 %v2727_v29, %v2483_v28  ;;  %v5911_v19 = vpop.f32.mrf.mxu0 }
 0x199   : > { %v5909_v49 = vpop.f32.mrf.mxu1 }
 0x19a   : > { %v4914_v3 = vpop.f32.mrf.mxu0 }
 0x19b   : > { %v4866_v50 = vpop.f32.mrf.mxu1 }
 0x19c   : > { %v2489_v41 = vadd.f32 %v4866_v50, %v5816_v16  ;;  %v2743_v21 = vpop.f32.mrf.mxu0 }
 0x19d   : > { %v2372_v54 = vpop.f32.mrf.mxu1 }
 0x19e   : > { %v5914_v36 = vadd.f32 %v4914_v3, %v2489_v41  ;;  %v2487_v51 = vadd.f32 %v2372_v54, %v5819_v23  ;;  %v5919_v1 = vpop.f32.mrf.mxu0 }
 0x19f   : > { %v5917_v18 = vpop.f32.mrf.mxu1 }
 0x1a0   : > { %v5921_v4 = vadd.f32 %v2743_v21, %v2487_v51  ;;  %v5925_v10 = vpop.f32.mrf.mxu0 }
 0x1a1   : > { %v5923_v30 = vpop.f32.mrf.mxu1 }
 0x1a2   : > { %v4918_v57 = vpop.f32.mrf.mxu0 }
 0x1a3   : > { %v4870_v33 = vpop.f32.mrf.mxu1 }
 0x1a4   : > { %v2493_v16 = vadd.f32 %v4870_v33, %v5828_v5  ;;  %v2759_v34 = vpop.f32.mrf.mxu0 }
 0x1a5   : > { %v2388_v15 = vpop.f32.mrf.mxu1 }
 0x1a6   : > { %v5928_v0 = vadd.f32 %v4918_v57, %v2493_v16  ;;  %v2491_v23 = vadd.f32 %v2388_v15, %v5831_v22  ;;  %v5933_v56 = vpop.f32.mrf.mxu0 }
 0x1a7   : > { %v5931_v47 = vpop.f32.mrf.mxu1 }
 0x1a8   : > { %v5935_v24 = vadd.f32 %v2759_v34, %v2491_v23  ;;  %v5939_v31 = vpop.f32.mrf.mxu0 }
 0x1a9   : > { %v5937_v26 = vpop.f32.mrf.mxu1 }
 0x1aa   : > { %v4922_v59 = vpop.f32.mrf.mxu0 }
 0x1ab   : > { %v4874_v44 = vpop.f32.mrf.mxu1 }
 0x1ac   : > { %v2497_v5 = vadd.f32 %v4874_v44, %v5840_v63  ;;  %v2775_v37 = vpop.f32.mrf.mxu0 }
 0x1ad   : > { %v2404_v45 = vpop.f32.mrf.mxu1 }
 0x1ae   : > { %v5942_v29 = vadd.f32 %v4922_v59, %v2497_v5  ;;  %v2495_v22 = vadd.f32 %v2404_v45, %v5843_v25  ;;  %v5947_v50 = vpop.f32.mrf.mxu0 }
 0x1af   : > { %v5945_v28 = vpop.f32.mrf.mxu1 }
 0x1b0   : > { %v5949_v3 = vadd.f32 %v2775_v37, %v2495_v22  ;;  %v5953_v54 = vpop.f32.mrf.mxu0 }
 0x1b1   : > { %v5951_v41 = vpop.f32.mrf.mxu1 }
 0x1b2   : > { %v4926_v51 = vpop.f32.mrf.mxu0 }
 0x1b3   : > { %v4878_v21 = vpop.f32.mrf.mxu1 }
 0x1b4   : > { %v2501_v63 = vadd.f32 %v4878_v21, %v5852_v6  ;;  %v2791_v57 = vpop.f32.mrf.mxu0 }
 0x1b5   : > { %v2420_v33 = vpop.f32.mrf.mxu1 }
 0x1b6   : > { %v5956_v16 = vadd.f32 %v4926_v51, %v2501_v63  ;;  %v2499_v25 = vadd.f32 %v2420_v33, %v5855_v42  ;;  %v5961_v34 = vpop.f32.mrf.mxu0 }
 0x1b7   : > { %v5959_v15 = vpop.f32.mrf.mxu1 }
 0x1b8   : > { %v5963_v23 = vadd.f32 %v2791_v57, %v2499_v25  ;;  %v5967_v59 = vpop.f32.mrf.mxu0 }
 0x1b9   : > { %v5965_v44 = vpop.f32.mrf.mxu1 }
 0x1ba   : > { %v4930_v45 = vpop.f32.mrf.mxu0 }
 0x1bb   : > { %v4882_v5 = vpop.f32.mrf.mxu1 }
 0x1bc   : > { %v2505_v6 = vadd.f32 %v4882_v5, %v5864_v53  ;;  %v2807_v22 = vpop.f32.mrf.mxu0 }
 0x1bd   : > { %v2436_v37 = vpop.f32.mrf.mxu1 }
 0x1be   : > { %v5970_v21 = vadd.f32 %v4930_v45, %v2505_v6  ;;  %v2503_v42 = vadd.f32 %v2436_v37, %v5867_v62  ;;  %v5975_v63 = vpop.f32.mrf.mxu0 }
 0x1bf   : > { %v5973_v51 = vpop.f32.mrf.mxu1  ;;  %6108 = vst [vmem:[#allocation8_spill] sm:$0xff] %v5975_v63 }
 0x1c0   : > { %v5977_v33 = vadd.f32 %v2807_v22, %v2503_v42  ;;  %v5981_v25 = vpop.f32.mrf.mxu0 }
 0x1c1   : > { %v5979_v57 = vpop.f32.mrf.mxu1  ;;  %6110 = vst [vmem:[#allocation10_spill] sm:$0xff] %v5981_v25 }
 0x1c2   : > { %6109 = vst [vmem:[#allocation9_spill] sm:$0xff] %v5977_v33  ;;  %v4934_v17 = vpop.f32.mrf.mxu0 }
 0x1c3   : > { %v4886_v60 = vpop.f32.mrf.mxu1 }
 0x1c4   : > { %v2509_v53 = vadd.f32 %v4886_v60, %v5876_v61  ;;  %v2823_v58 = vpop.f32.mrf.mxu0 }
 0x1c5   : > { %v2452_v5 = vpop.f32.mrf.mxu1 }
 0x1c6   : > { %v5984_v45 = vadd.f32 %v4934_v17, %v2509_v53  ;;  %v2507_v62 = vadd.f32 %v2452_v5, %v5879_v8  ;;  %v5989_v37 = vpop.f32.mrf.mxu0 }
 0x1c7   : > { %v5987_v6 = vpop.f32.mrf.mxu1  ;;  %6111 = vst [vmem:[#allocation11_spill] sm:$0xff] %v5989_v37 }
 0x1c8   : > { %v5991_v22 = vadd.f32 %v2823_v58, %v2507_v62  ;;  %v5995_v46 = vpop.f32.mrf.mxu0 }
 0x1c9   : > { %v5993_v42 = vpop.f32.mrf.mxu1  ;;  %6113 = vst [vmem:[#allocation13_spill] sm:$0xff] %v5995_v46  ;;  %v2486_v46 = vadd.f32 %v5903_v40, %v5810_v55  ;;  %v2490_v40 = vadd.f32 %v5917_v18, %v5822_v32 }
 0x1ca   : > { %6112 = vst [vmem:[#allocation12_spill] sm:$0xff] %v5991_v22  ;;  %v4938_v33 = vpop.f32.mrf.mxu0 }
 0x1cb   : > { %v4890_v25 = vpop.f32.mrf.mxu1 }
 0x1cc   : > { %v2513_v61 = vadd.f32 %v4890_v25, %v5888_v35  ;;  %v2839_v63 = vpop.f32.mrf.mxu0 }
 0x1cd   : > { %v2468_v60 = vpop.f32.mrf.mxu1 }
 0x1ce   : > { %v5998_v17 = vadd.f32 %v4938_v33, %v2513_v61  ;;  %v2511_v8 = vadd.f32 %v2468_v60, %v5891_v39  ;;  %v6003_v5 = vpop.f32.mrf.mxu0  ;;  %v2484_v33 = vadd.f32 %v5909_v49, %v5813_v13 }
 0x1cf   : > { %v6001_v53 = vpop.f32.mrf.mxu1  ;;  %6116 = vst [vmem:[#allocation16_spill] sm:$0xff] %v6003_v5  ;;  %v2857_v5 = vadd.f32 %v5905_v52, %v2486_v46  ;;  %v2488_v46 = vadd.f32 %v5923_v30, %v5825_v43 }
 0x1d0   : > { %6114 = vst [vmem:[#allocation14_spill] sm:$0xff] %v5998_v17  ;;  %6115 = vst [vmem:[#allocation15_spill] sm:$0xff] %v6001_v53  ;;  %v6005_v58 = vadd.f32 %v2839_v63, %v2511_v8  ;;  %v6009_v22 = vpop.f32.mrf.mxu0 }
 0x1d1   : > { %v6007_v62 = vpop.f32.mrf.mxu1  ;;  %6119 = vst [vmem:[#allocation19_spill] sm:$0xff] %v6009_v22  ;;  %v2855_v22 = vadd.f32 %v5911_v19, %v2484_v33 }
 0x1d2   : > { %6117 = vst [vmem:[#allocation17_spill] sm:$0xff] %v6005_v58  ;;  %6118 = vst [vmem:[#allocation18_spill] sm:$0xff] %v6007_v62  ;;  %v5006_v25 = vpop.f32.mrf.mxu0 }
 0x1d3   : > { %v4958_v35 = vpop.f32.mrf.mxu1 }
 0x1d4   : > { %v3226_v39 = vadd.f32 %v4958_v35, %v5900_v27  ;;  %v3467_v60 = vpop.f32.mrf.mxu0 }
 0x1d5   : > { %v3097_v61 = vpop.f32.mrf.mxu1 }
 0x1d6   : > { %v3224_v63 = vadd.f32 %v3097_v61, %v5907_v48  ;;  %v5007_v58 = vpop.f32.mrf.mxu0  ;;  %v3596_v17 = vadd.f32 %v5006_v25, %v3226_v39  ;;  %v2494_v39 = vadd.f32 %v5931_v47, %v5834_v12 }
 0x1d7   : > { %v4959_v8 = vpop.f32.mrf.mxu1 }
 0x1d8   : > { %v3227_v55 = vadd.f32 %v4959_v8, %v2857_v5  ;;  %v3470_v13 = vpop.f32.mrf.mxu0  ;;  %v3594_v49 = vadd.f32 %v3467_v60, %v3224_v63  ;;  %v3692_v61 = vmax.f32 %v3596_v17, 0.0  ;;  %v2861_v5 = vadd.f32 %v5919_v1, %v2490_v40 }
 0x1d9   : > { %v3100_v62 = vpop.f32.mrf.mxu1 }
 0x1da   : > { %v3597_v27 = vadd.f32 %v5007_v58, %v3227_v55  ;;  %v3225_v35 = vadd.f32 %v3100_v62, %v2855_v22  ;;  %v5010_v48 = vpop.f32.mrf.mxu0  ;;  %v3690_v43 = vmax.f32 %v3594_v49, 0.0 }
 0x1db   : > { %v4962_v52 = vpop.f32.mrf.mxu1 }
 0x1dc   : > { %v3693_v53 = vmax.f32 %v3597_v27, 0.0  ;;  %v3595_v37 = vadd.f32 %v3470_v13, %v3225_v35  ;;  %v3230_v19 = vadd.f32 %v4962_v52, %v5914_v36  ;;  %v3483_v18 = vpop.f32.mrf.mxu0  ;;  %v2859_v36 = vadd.f32 %v5925_v10, %v2488_v46 }
 0x1dd   : > { %v3113_v32 = vpop.f32.mrf.mxu1  ;;  %v2865_v35 = vadd.f32 %v5933_v56, %v2494_v39 }
 0x1de   : > { %v4286_v30 = vpack.c.bf16 %v3693_v53, %v3692_v61  ;;  %v3691_v22 = vmax.f32 %v3595_v37, 0.0  ;;  %v3228_v17 = vadd.f32 %v3113_v32, %v5921_v4  ;;  %v5011_v62 = vpop.f32.mrf.mxu0  ;;  %v3600_v25 = vadd.f32 %v5010_v48, %v3230_v19 }
 0x1df   : > { %v4963_v58 = vpop.f32.mrf.mxu1  ;;  %v2492_v4 = vadd.f32 %v5937_v26, %v5837_v11 }
 0x1e0   : > { %4373 = vst [vmem:[%s6030_s13 + $0x8] sm:$0xff] %v4286_v30   ;;  %v4281_v1 = vpack.c.bf16 %v3691_v22, %v3690_v43  ;;  %v3231_v33 = vadd.f32 %v4963_v58, %v2861_v5  ;;  %v3486_v63 = vpop.f32.mrf.mxu0  ;;  %v3598_v8 = vadd.f32 %v3483_v18, %v3228_v17  ;;  %v3696_v10 = vmax.f32 %v3600_v25, 0.0 }
 0x1e1   : > { %v3116_v60 = vpop.f32.mrf.mxu1  ;;  %v2863_v26 = vadd.f32 %v5939_v31, %v2492_v4 }
 0x1e2   : > { %4282 = vst [vmem:[%s6030_s13] sm:$0xff] %v4281_v1   ;;  %v3601_v55 = vadd.f32 %v5011_v62, %v3231_v33  ;;  %v3229_v53 = vadd.f32 %v3116_v60, %v2859_v36  ;;  %v5014_v40 = vpop.f32.mrf.mxu0  ;;  %v3694_v46 = vmax.f32 %v3598_v8, 0.0 }
 0x1e3   : > { %v4966_v37 = vpop.f32.mrf.mxu1 }
 0x1e4   : > { %v3697_v13 = vmax.f32 %v3601_v55, 0.0  ;;  %v3599_v49 = vadd.f32 %v3486_v63, %v3229_v53  ;;  %v3234_v27 = vadd.f32 %v4966_v37, %v5928_v0  ;;  %v3499_v47 = vpop.f32.mrf.mxu0  ;;  %v2498_v0 = vadd.f32 %v5945_v28, %v5846_v20 }
 0x1e5   : > { %v3129_v12 = vpop.f32.mrf.mxu1 }
 0x1e6   : > { %v4296_v52 = vpack.c.bf16 %v3697_v13, %v3696_v10  ;;  %v3695_v48 = vmax.f32 %v3599_v49, 0.0  ;;  %v3232_v61 = vadd.f32 %v3129_v12, %v5935_v24  ;;  %v5015_v11 = vpop.f32.mrf.mxu0  ;;  %v3604_v32 = vadd.f32 %v5014_v40, %v3234_v27 }
 0x1e7   : > { %v4967_v19 = vpop.f32.mrf.mxu1  ;;  %v2496_v24 = vadd.f32 %v5951_v41, %v5849_v14  ;;  %v2869_v33 = vadd.f32 %v5947_v50, %v2498_v0 }
 0x1e8   : > { %4375 = vst [vmem:[%s6030_s13 + $0x18] sm:$0xff] %v4296_v52   ;;  %v4291_v5 = vpack.c.bf16 %v3695_v48, %v3694_v46  ;;  %v3235_v18 = vadd.f32 %v4967_v19, %v2865_v35  ;;  %v3502_v43 = vpop.f32.mrf.mxu0  ;;  %v3602_v30 = vadd.f32 %v3499_v47, %v3232_v61  ;;  %v3700_v31 = vmax.f32 %v3604_v32, 0.0 }
 0x1e9   : > { %v3132_v56 = vpop.f32.mrf.mxu1  ;;  %v2867_v41 = vadd.f32 %v5953_v54, %v2496_v24 }
 0x1ea   : > { %4374 = vst [vmem:[%s6030_s13 + $0x10] sm:$0xff] %v4291_v5   ;;  %v3605_v22 = vadd.f32 %v5015_v11, %v3235_v18  ;;  %v3233_v17 = vadd.f32 %v3132_v56, %v2863_v26  ;;  %v5018_v62 = vpop.f32.mrf.mxu0  ;;  %v3698_v39 = vmax.f32 %v3602_v30, 0.0 }
 0x1eb   : > { %v4970_v58 = vpop.f32.mrf.mxu1 }
 0x1ec   : > { %v3701_v36 = vmax.f32 %v3605_v22, 0.0  ;;  %v3603_v1 = vadd.f32 %v3502_v43, %v3233_v17  ;;  %v3238_v25 = vadd.f32 %v4970_v58, %v5942_v29  ;;  %v3515_v28 = vpop.f32.mrf.mxu0  ;;  %v2502_v29 = vadd.f32 %v5959_v15, %v5858_v2 }
 0x1ed   : > { %v3145_v20 = vpop.f32.mrf.mxu1 }
 0x1ee   : > { %v4306_v60 = vpack.c.bf16 %v3701_v36, %v3700_v31  ;;  %v3699_v63 = vmax.f32 %v3603_v1, 0.0  ;;  %v3236_v8 = vadd.f32 %v3145_v20, %v5949_v3  ;;  %v5019_v14 = vpop.f32.mrf.mxu0  ;;  %v3608_v4 = vadd.f32 %v5018_v62, %v3238_v25  ;;  %v6120_v31 = vld [vmem:[#allocation8_spill] sm:$0xff]  ;;  %v6121_v20 = vld [vmem:[#allocation9_spill] sm:$0xff] }
 0x1ef   : > { %v4971_v55 = vpop.f32.mrf.mxu1  ;;  %v2500_v3 = vadd.f32 %v5965_v44, %v5861_v7  ;;  %v2873_v52 = vadd.f32 %v5961_v34, %v2502_v29 }
 0x1f0   : > { %4377 = vst [vmem:[%s6030_s13 + $0x28] sm:$0xff] %v4306_v60   ;;  %v4301_v53 = vpack.c.bf16 %v3699_v63, %v3698_v39  ;;  %v3239_v37 = vadd.f32 %v4971_v55, %v2869_v33  ;;  %v3518_v40 = vpop.f32.mrf.mxu0  ;;  %v3606_v10 = vadd.f32 %v3515_v28, %v3236_v8  ;;  %v3704_v54 = vmax.f32 %v3608_v4, 0.0 }
 0x1f1   : > { %v3148_v50 = vpop.f32.mrf.mxu1  ;;  %v2871_v44 = vadd.f32 %v5967_v59, %v2500_v3 }
 0x1f2   : > { %4376 = vst [vmem:[%s6030_s13 + $0x20] sm:$0xff] %v4301_v53   ;;  %v3609_v13 = vadd.f32 %v5019_v14, %v3239_v37  ;;  %v3237_v49 = vadd.f32 %v3148_v50, %v2867_v41  ;;  %v5022_v35 = vpop.f32.mrf.mxu0  ;;  %v3702_v48 = vmax.f32 %v3606_v10, 0.0  ;;  %v6123_v14 = vld [vmem:[#allocation4_spill] sm:$0xff]  ;;  %v6124_v50 = vld [vmem:[#allocation5_spill] sm:$0xff] }
 0x1f3   : > { %v4974_v27 = vpop.f32.mrf.mxu1 }
 0x1f4   : > { %v3705_v12 = vmax.f32 %v3609_v13, 0.0  ;;  %v3607_v47 = vadd.f32 %v3518_v40, %v3237_v49  ;;  %v3242_v46 = vadd.f32 %v4974_v27, %v5956_v16  ;;  %v3531_v15 = vpop.f32.mrf.mxu0  ;;  %v2506_v16 = vadd.f32 %v5973_v51, %v5870_v38 }
 0x1f5   : > { %v3161_v2 = vpop.f32.mrf.mxu1  ;;  %v2508_v40 = vadd.f32 %v5993_v42, %v6124_v50 }
 0x1f6   : > { %v4316_v61 = vpack.c.bf16 %v3705_v12, %v3704_v54  ;;  %v3703_v19 = vmax.f32 %v3607_v47, 0.0  ;;  %v3240_v11 = vadd.f32 %v3161_v2, %v5963_v23  ;;  %v5023_v7 = vpop.f32.mrf.mxu0  ;;  %v3612_v32 = vadd.f32 %v5022_v35, %v3242_v46  ;;  %v6125_v54 = vld [vmem:[#allocation11_spill] sm:$0xff] }
 0x1f7   : > { %v4975_v26 = vpop.f32.mrf.mxu1  ;;  %v2504_v23 = vadd.f32 %v5979_v57, %v5873_v9  ;;  %v2877_v36 = vadd.f32 %v6120_v31, %v2506_v16  ;;  %v6122_v57 = vld [vmem:[#allocation10_spill] sm:$0xff] }
 0x1f8   : > { %4379 = vst [vmem:[%s6030_s13 + $0x38] sm:$0xff] %v4316_v61   ;;  %v4311_v5 = vpack.c.bf16 %v3703_v19, %v3702_v48  ;;  %v3243_v18 = vadd.f32 %v4975_v26, %v2873_v52  ;;  %v3534_v0 = vpop.f32.mrf.mxu0  ;;  %v3610_v56 = vadd.f32 %v3531_v15, %v3240_v11  ;;  %v3708_v59 = vmax.f32 %v3612_v32, 0.0  ;;  %v6126_v15 = vld [vmem:[#allocation12_spill] sm:$0xff]  ;;  %v6127_v19 = vld [vmem:[#allocation13_spill] sm:$0xff] }
 0x1f9   : > { %v3164_v34 = vpop.f32.mrf.mxu1  ;;  %v2875_v60 = vadd.f32 %v6122_v57, %v2504_v23  ;;  %v2879_v11 = vadd.f32 %v6127_v19, %v2508_v40 }
 0x1fa   : > { %4378 = vst [vmem:[%s6030_s13 + $0x30] sm:$0xff] %v4311_v5   ;;  %v3613_v43 = vadd.f32 %v5023_v7, %v3243_v18  ;;  %v3241_v30 = vadd.f32 %v3164_v34, %v2871_v44  ;;  %v5026_v17 = vpop.f32.mrf.mxu0  ;;  %v3706_v1 = vmax.f32 %v3610_v56, 0.0  ;;  %v6128_v5 = vld [vmem:[#allocation6_spill] sm:$0xff] }
 0x1fb   : > { %v4978_v22 = vpop.f32.mrf.mxu1 }
 0x1fc   : > { %v3709_v24 = vmax.f32 %v3613_v43, 0.0  ;;  %v3611_v58 = vadd.f32 %v3534_v0, %v3241_v30  ;;  %v3246_v62 = vadd.f32 %v4978_v22, %v5970_v21  ;;  %v3547_v51 = vpop.f32.mrf.mxu0  ;;  %v2510_v21 = vadd.f32 %v5987_v6, %v6123_v14  ;;  %v6130_v43 = vld [vmem:[#allocation7_spill] sm:$0xff]  ;;  %v6131_v30 = vld [vmem:[#allocation18_spill] sm:$0xff] }
 0x1fd   : > { %v3177_v38 = vpop.f32.mrf.mxu1  ;;  %v2512_v23 = vadd.f32 %v6131_v30, %v6130_v43 }
 0x1fe   : > { %v4326_v25 = vpack.c.bf16 %v3709_v24, %v3708_v59  ;;  %v3707_v33 = vmax.f32 %v3611_v58, 0.0  ;;  %v3244_v28 = vadd.f32 %v3177_v38, %v6121_v20  ;;  %v5027_v9 = vpop.f32.mrf.mxu0  ;;  %v3616_v8 = vadd.f32 %v5026_v17, %v3246_v62  ;;  %v6132_v62 = vld [vmem:[#allocation14_spill] sm:$0xff] }
 0x1ff   : > { %v4979_v39 = vpop.f32.mrf.mxu1  ;;  %v2881_v12 = vadd.f32 %v6125_v54, %v2510_v21 }
 0x200   : > { %4381 = vst [vmem:[%s6030_s13 + $0x48] sm:$0xff] %v4326_v25   ;;  %v4321_v63 = vpack.c.bf16 %v3707_v33, %v3706_v1  ;;  %v3247_v55 = vadd.f32 %v4979_v39, %v2877_v36  ;;  %v3550_v53 = vpop.f32.mrf.mxu0  ;;  %v3614_v4 = vadd.f32 %v3547_v51, %v3244_v28  ;;  %v3712_v49 = vmax.f32 %v3616_v8, 0.0  ;;  %v6133_v36 = vld [vmem:[#allocation16_spill] sm:$0xff]  ;;  %v6134_v28 = vld [vmem:[#allocation17_spill] sm:$0xff] }
 0x201   : > { %v3180_v41 = vpop.f32.mrf.mxu1 }
 0x202   : > { %4380 = vst [vmem:[%s6030_s13 + $0x40] sm:$0xff] %v4321_v63   ;;  %v3617_v37 = vadd.f32 %v5027_v9, %v3247_v55  ;;  %v3245_v29 = vadd.f32 %v3180_v41, %v2875_v60  ;;  %v5030_v13 = vpop.f32.mrf.mxu0  ;;  %v3710_v46 = vmax.f32 %v3614_v4, 0.0  ;;  %v6135_v60 = vld [vmem:[#allocation19_spill] sm:$0xff] }
 0x203   : > { %v4982_v10 = vpop.f32.mrf.mxu1  ;;  %v2883_v63 = vadd.f32 %v6135_v60, %v2512_v23 }
 0x204   : > { %v3713_v3 = vmax.f32 %v3617_v37, 0.0  ;;  %v3615_v27 = vadd.f32 %v3550_v53, %v3245_v29  ;;  %v3250_v35 = vadd.f32 %v4982_v10, %v5984_v45  ;;  %v3563_v47 = vpop.f32.mrf.mxu0  ;;  %v6129_v45 = vld [vmem:[#allocation15_spill] sm:$0xff] }
 0x205   : > { %v3193_v6 = vpop.f32.mrf.mxu1  ;;  %v2514_v32 = vadd.f32 %v6129_v45, %v6128_v5 }
 0x206   : > { %v4336_v52 = vpack.c.bf16 %v3713_v3, %v3712_v49  ;;  %v3711_v2 = vmax.f32 %v3615_v27, 0.0  ;;  %v3248_v48 = vadd.f32 %v3193_v6, %v6126_v15  ;;  %v5031_v42 = vpop.f32.mrf.mxu0  ;;  %v3620_v7 = vadd.f32 %v5030_v13, %v3250_v35 }
 0x207   : > { %v4983_v61 = vpop.f32.mrf.mxu1  ;;  %v2885_v38 = vadd.f32 %v6133_v36, %v2514_v32 }
 0x208   : > { %4383 = vst [vmem:[%s6030_s13 + $0x58] sm:$0xff] %v4336_v52   ;;  %v4331_v26 = vpack.c.bf16 %v3711_v2, %v3710_v46  ;;  %v3251_v44 = vadd.f32 %v4983_v61, %v2881_v12  ;;  %v3566_v16 = vpop.f32.mrf.mxu0  ;;  %v3618_v34 = vadd.f32 %v3563_v47, %v3248_v48  ;;  %v3716_v59 = vmax.f32 %v3620_v7, 0.0 }
 0x209   : > { %v3196_v18 = vpop.f32.mrf.mxu1 }
 0x20a   : > { %4382 = vst [vmem:[%s6030_s13 + $0x50] sm:$0xff] %v4331_v26   ;;  %v3621_v0 = vadd.f32 %v5031_v42, %v3251_v44  ;;  %v3249_v56 = vadd.f32 %v3196_v18, %v2879_v11  ;;  %v5034_v17 = vpop.f32.mrf.mxu0  ;;  %v3714_v25 = vmax.f32 %v3618_v34, 0.0 }
 0x20b   : > { %v4986_v22 = vpop.f32.mrf.mxu1 }
 0x20c   : > { %v3717_v24 = vmax.f32 %v3621_v0, 0.0  ;;  %v3619_v58 = vadd.f32 %v3566_v16, %v3249_v56  ;;  %v3254_v31 = vadd.f32 %v4986_v22, %v6132_v62  ;;  %v3579_v1 = vpop.f32.mrf.mxu0 }
 0x20d   : > { %v3209_v51 = vpop.f32.mrf.mxu1 }
 0x20e   : > { %v4346_v33 = vpack.c.bf16 %v3717_v24, %v3716_v59  ;;  %v3715_v20 = vmax.f32 %v3619_v58, 0.0  ;;  %v3252_v39 = vadd.f32 %v3209_v51, %v6134_v28  ;;  %v5035_v57 = vpop.f32.mrf.mxu0  ;;  %v3624_v55 = vadd.f32 %v5034_v17, %v3254_v31 }
 0x20f   : > { %v4987_v9 = vpop.f32.mrf.mxu1 }
 0x210   : > { %4385 = vst [vmem:[%s6030_s13 + $0x68] sm:$0xff] %v4346_v33   ;;  %v4341_v8 = vpack.c.bf16 %v3715_v20, %v3714_v25  ;;  %v3255_v14 = vadd.f32 %v4987_v9, %v2885_v38  ;;  %v3622_v41 = vadd.f32 %v3579_v1, %v3252_v39  ;;  %v3582_v37 = vpop.f32.mrf.mxu0  ;;  %v3720_v29 = vmax.f32 %v3624_v55, 0.0 }
 0x211   : > { %v3212_v21 = vpop.f32.mrf.mxu1 }
 0x212   : > { %4384 = vst [vmem:[%s6030_s13 + $0x60] sm:$0xff] %v4341_v8   ;;  %v3625_v53 = vadd.f32 %v5035_v57, %v3255_v14  ;;  %v3253_v4 = vadd.f32 %v3212_v21, %v2883_v63  ;;  %v3718_v10 = vmax.f32 %v3622_v41, 0.0 }
 0x214   : > { %v3721_v50 = vmax.f32 %v3625_v53, 0.0  ;;  %v3623_v40 = vadd.f32 %v3582_v37, %v3253_v4 }
 0x216   : > { %v4356_v13 = vpack.c.bf16 %v3721_v50, %v3720_v29  ;;  %v3719_v49 = vmax.f32 %v3623_v40, 0.0 }
 0x218   : > { %4387 = vst [vmem:[%s6030_s13 + $0x78] sm:$0xff] %v4356_v13   ;;  %v4351_v3 = vpack.c.bf16 %v3719_v49, %v3718_v10 }
 0x21a   : > { %4386 = vst [vmem:[%s6030_s13 + $0x70] sm:$0xff] %v4351_v3  }
 0x21b PF: > { %s12_s9 = sadd.s32 1, %s5156_s9  }
 0x21c   : > { %p9_p4 = scmp.ge.s32.totalorder %s12_s9, 4  }
 0x21e   :  { %11 = sbr.rel (!%p9_p4) target bundleno = 1 (0x1), region = 68 }

</bundles_post_ra>
